<compile_context>
chip_gen: v7x
topology: tpu7x:2x2x1
jax: 0.10.0
libtpu: 0.0.40
codegen_flags: <defaults>
</compile_context>

<pallas_src>
import functools
import numpy as np
import jax
import jax.numpy as jnp
from jax.experimental import pallas as pl
from jax.experimental.pallas import tpu as pltpu  # noqa: F401  (TPU backend assumed)


# --------------------------------------------------------------------------- #
# In-kernel helpers (f32 elementwise math; bf16 only as MXU operands)
# --------------------------------------------------------------------------- #
_SQRT_HALF = 0.7071067811865476


def _erf(x):
    # Abramowitz & Stegun 7.1.26 (|err| <= 1.5e-7): matches nn.GELU's exact (erf)
    # formulation without relying on an erf lowering inside Mosaic.
    a1, a2, a3, a4, a5 = 0.254829592, -0.284496736, 1.421413741, -1.453152027, 1.061405429
    p = 0.3275911
    s = jnp.where(x < 0.0, -1.0, 1.0)
    ax = jnp.abs(x)
    t = 1.0 / (1.0 + p * ax)
    poly = ((((a5 * t + a4) * t + a3) * t + a2) * t + a1) * t
    return s * (1.0 - poly * jnp.exp(-ax * ax))


def _gelu_exact(x):
    return 0.5 * x * (1.0 + _erf(x * _SQRT_HALF))


def _layernorm(x, g, b, eps=1e-5):
    mu = jnp.mean(x, axis=-1, keepdims=True)
    var = jnp.mean(jnp.square(x - mu), axis=-1, keepdims=True)
    return (x - mu) * jax.lax.rsqrt(var + eps) * g + b


def _mxu(x):
    return x.astype(jnp.bfloat16)


# --------------------------------------------------------------------------- #
# Pallas kernels (no grid: full arrays live in VMEM for these small shapes)
# --------------------------------------------------------------------------- #
def _patch_embed_kernel(p_ref, w_ref, b_ref, g_ref, beta_ref, o_ref):
    # Conv2d(k=ps, s=ps) over flattened patches + LayerNorm2d (per-token channel LN)
    x = jnp.dot(_mxu(p_ref[...]), w_ref[...], preferred_element_type=jnp.float32) + b_ref[...]
    o_ref[...] = _layernorm(x, g_ref[...], beta_ref[...]).astype(o_ref.dtype)


def _swin_block_kernel(x_ref, bias_ref, n1g_ref, n1b_ref, wqkv_ref, bqkv_ref,
                       wp_ref, bp_ref, n2g_ref, n2b_ref, w1_ref, b1_ref,
                       w2_ref, b2_ref, o_ref, *, num_heads, scale):
    """Full SwinTransformerBlock on window-ordered tokens, all VMEM resident."""
    x = x_ref[...].astype(jnp.float32)                      # (R, C)
    r, c = x.shape
    hd = c // num_heads

    # ---- W-MSA / SW-MSA ---------------------------------------------------- #
    xn = _layernorm(x, n1g_ref[...], n1b_ref[...])
    # fused pre_proj; columns ordered [v | q | k] (matches reference's (v, q, k) split)
    qkv = jnp.dot(_mxu(xn), wqkv_ref[...], preferred_element_type=jnp.float32) + bqkv_ref[...]
    heads = []
    for h in range(num_heads):                              # nh is tiny -> static unroll
        vh = qkv[:, h * hd:(h + 1) * hd]
        qh = qkv[:, c + h * hd:c + (h + 1) * hd]
        kh = qkv[:, 2 * c + h * hd:2 * c + (h + 1) * hd]
        # one (R, R) score matmul over all windows; cross-window pairs carry -1e9 in
        # the precomputed bias so the softmax is exactly the per-window softmax.
        s = jax.lax.dot_general(_mxu(qh), _mxu(kh), (((1,), (1,)), ((), ())),
                                preferred_element_type=jnp.float32) * scale
        s = s + bias_ref[h]                                 # rel-pos (+ shift mask) (+ window mask)
        s = s - jnp.max(s, axis=-1, keepdims=True)
        p = jnp.exp(s)
        p = p / jnp.sum(p, axis=-1, keepdims=True)
        heads.append(jnp.dot(_mxu(p), _mxu(vh), preferred_element_type=jnp.float32))
    attn = jnp.concatenate(heads, axis=-1)                  # (R, C)
    attn = jnp.dot(_mxu(attn), wp_ref[...], preferred_element_type=jnp.float32) + bp_ref[...]
    x = x + attn                                            # residual 1

    # ---- MLP: fc1 -> exact GELU -> fc2 (hidden stays in VMEM) --------------- #
    yn = _layernorm(x, n2g_ref[...], n2b_ref[...])
    hdn = jnp.dot(_mxu(yn), w1_ref[...], preferred_element_type=jnp.float32) + b1_ref[...]
    hdn = _gelu_exact(hdn)
    mlp = jnp.dot(_mxu(hdn), w2_ref[...], preferred_element_type=jnp.float32) + b2_ref[...]
    o_ref[...] = (x + mlp).astype(o_ref.dtype)              # residual 2


def _head_kernel(x_ref, g_ref, b_ref, pool_ref, w_ref, hb_ref, o_ref):
    # final LayerNorm + per-image token mean (as a pooling matmul) + classifier
    y = _layernorm(x_ref[...].astype(jnp.float32), g_ref[...], b_ref[...])
    pooled = jnp.dot(pool_ref[...], y, preferred_element_type=jnp.float32)   # (B, C)
    o_ref[...] = (jnp.dot(_mxu(pooled), w_ref[...], preferred_element_type=jnp.float32)
                  + hb_ref[...]).astype(o_ref.dtype)


# --------------------------------------------------------------------------- #
# pallas_call wrappers
# --------------------------------------------------------------------------- #
def pallas_patch_embed(patches, w, b, g, beta):
    m, e = patches.shape[0], w.shape[1]
    return pl.pallas_call(
        _patch_embed_kernel,
        out_shape=jax.ShapeDtypeStruct((m, e), jnp.float32),
    )(patches, w, b, g, beta)


def pallas_swin_block(xw, blk, num_heads):
    r, c = xw.shape
    scale = float((c // num_heads) ** -0.5)
    kernel = functools.partial(_swin_block_kernel, num_heads=num_heads, scale=scale)
    return pl.pallas_call(
        kernel,
        out_shape=jax.ShapeDtypeStruct((r, c), xw.dtype),
    )(xw, blk["attn_bias"], blk["norm1_g"], blk["norm1_b"],
      blk["wqkv"], blk["bqkv"], blk["proj_w"], blk["proj_b"],
      blk["norm2_g"], blk["norm2_b"], blk["fc1_w"], blk["fc1_b"],
      blk["fc2_w"], blk["fc2_b"])


def pallas_norm_pool_head(x, g, b, pool, w, hb):
    bsz, ncls = pool.shape[0], w.shape[1]
    return pl.pallas_call(
        _head_kernel,
        out_shape=jax.ShapeDtypeStruct((bsz, ncls), jnp.float32),
    )(x, g, b, pool, w, hb)


# --------------------------------------------------------------------------- #
# Static tables (numpy, trace-time constants)
# --------------------------------------------------------------------------- #
def relative_position_index(ws):
    coords = np.stack(np.meshgrid(np.arange(ws), np.arange(ws), indexing="ij"))
    cf = coords.reshape(2, -1)
    # reference: coords_flatten[:, None, :] - coords_flatten[:, :, None]
    rel = cf[:, None, :] - cf[:, :, None]
    rel = rel.transpose(1, 2, 0).astype(np.int64)
    rel[:, :, 0] += ws - 1
    rel[:, :, 1] += ws - 1
    rel[:, :, 0] *= 2 * ws - 1
    return rel.sum(-1).reshape(-1)                 # (N*N,)


def shift_attn_mask(h, w, ws, shift):
    img_mask = np.zeros((1, h, w, 1), np.float32)
    cnt = 0
    for hs in (slice(0, -ws), slice(-ws, -shift), slice(-shift, None)):
        for wsl in (slice(0, -ws), slice(-ws, -shift), slice(-shift, None)):
            img_mask[:, hs, wsl, :] = cnt
            cnt += 1
    mw = img_mask.reshape(1, h // ws, ws, w // ws, ws, 1)
    mw = mw.transpose(0, 1, 3, 2, 4, 5).reshape(-1, ws * ws)
    am = mw[:, None, :] - mw[:, :, None]
    return np.where(am != 0, -100.0, 0.0).astype(np.float32)   # (nW, N, N)


def window_order_perm(batch, h, w, ws, shift):
    """Permutation such that x_flat[perm] == roll+window_partition of x (row order)."""
    idx = np.arange(batch * h * w, dtype=np.int32).reshape(batch, h, w)
    if shift > 0:
        idx = np.roll(idx, (-shift, -shift), axis=(1, 2))
    idx = idx.reshape(batch, h // ws, ws, w // ws, ws)
    return idx.transpose(0, 1, 3, 2, 4).reshape(-1)


def block_diag_attn_bias(rb, rel_idx, shift_mask, batch, nw, nh, n):
    """(nh, R, R) additive bias: rel-pos (+ shift mask) in diag blocks, -1e9 elsewhere."""
    rel = rb[:, rel_idx].reshape(nh, n, n)                       # == cal_rb()
    per_win = jnp.broadcast_to(rel[:, None], (nh, nw, n, n))
    if shift_mask is not None:
        per_win = per_win + shift_mask[None]
    per_win = jnp.tile(per_win, (1, batch, 1, 1))                # flat window index = b*nW + w
    wt = batch * nw
    eye = jnp.eye(wt, dtype=jnp.float32)
    full = jnp.einsum("hwij,wx->hwixj", per_win, eye)            # diag blocks only
    full = full + ((1.0 - eye) * -1e9)[None, :, None, :, None]   # mask cross-window pairs
    return full.reshape(nh, wt * n, wt * n)


# --------------------------------------------------------------------------- #
# Parameter init (synthetic, PyTorch-like layout) and inference prep
# --------------------------------------------------------------------------- #
def init_params(key, cfg):
    e, cin, ps = cfg["embed_dim"], cfg["in_chans"], cfg["patch_size"]
    nh, ws, ncls = cfg["num_heads"], cfg["window_size"], cfg["num_classes"]
    hidden = int(e * cfg["mlp_ratio"])
    keys = iter(jax.random.split(key, 64))

    def tn(shape, std=0.02):
        return std * jax.random.truncated_normal(next(keys), -2.0, 2.0, shape, jnp.float32)

    params = {
        "patch_w": tn((cin * ps * ps, e)),
        "patch_b": jnp.zeros((e,), jnp.float32),
        "patch_norm_g": jnp.ones((e,), jnp.float32),
        "patch_norm_b": jnp.zeros((e,), jnp.float32),
        "norm_g": jnp.ones((e,), jnp.float32),
        "norm_b": jnp.zeros((e,), jnp.float32),
        "head_w": tn((e, ncls)),
        "head_b": jnp.zeros((ncls,), jnp.float32),
        "blocks": [],
    }
    for _ in range(cfg["depth"]):
        params["blocks"].append({
            "norm1_g": jnp.ones((e,), jnp.float32), "norm1_b": jnp.zeros((e,), jnp.float32),
            "norm2_g": jnp.ones((e,), jnp.float32), "norm2_b": jnp.zeros((e,), jnp.float32),
            "rb": tn((nh, (2 * ws - 1) * (2 * ws - 1))),
            # pre_proj output order in the reference is (v, q, k); stored as split mats.
            "wv": tn((e, e)), "wq": tn((e, e)), "wk": tn((e, e)),
            "bv": jnp.zeros((e,), jnp.float32),
            "bq": jnp.zeros((e,), jnp.float32),
            "bk": jnp.zeros((e,), jnp.float32),
            "proj_w": tn((e, e)), "proj_b": jnp.zeros((e,), jnp.float32),
            "fc1_w": tn((e, hidden)), "fc1_b": jnp.zeros((hidden,), jnp.float32),
            "fc2_w": tn((hidden, e)), "fc2_b": jnp.zeros((e,), jnp.float32),
        })
    return params


def prepare_inference_params(params, cfg, batch):
    """One-time prep: bf16 weight casts, fused QKV, block-diag attention biases,
    window-order permutations and the mean-pool matrix."""
    ps, ws, nh = cfg["patch_size"], cfg["window_size"], cfg["num_heads"]
    gh = gw = cfg["img_size"] // ps
    l, n = gh * gw, ws * ws
    nw = l // n
    rel_idx = jnp.asarray(relative_position_index(ws))
    smask = jnp.asarray(shift_attn_mask(gh, gw, ws, ws // 2)) if ws // 2 > 0 else None

    def row(a):
        return jnp.asarray(a, jnp.float32).reshape(1, -1)

    prep = {
        "patch_w": params["patch_w"].astype(jnp.bfloat16),
        "patch_b": row(params["patch_b"]),
        "patch_norm_g": row(params["patch_norm_g"]),
        "patch_norm_b": row(params["patch_norm_b"]),
        "norm_g": row(params["norm_g"]),
        "norm_b": row(params["norm_b"]),
        "head_w": params["head_w"].astype(jnp.bfloat16),
        "head_b": row(params["head_b"]),
        "pool": jnp.asarray(np.kron(np.eye(batch, dtype=np.float32),
                                    np.ones((1, l), np.float32) / l)),
        "blocks": [],
        "trans": (),
    }
    perms = []
    for i, bp in enumerate(params["blocks"]):
        shift = 0 if i % 2 == 0 else ws // 2
        perms.append(window_order_perm(batch, gh, gw, ws, shift))
        bias = block_diag_attn_bias(bp["rb"], rel_idx,
                                    smask if shift > 0 else None, batch, nw, nh, n)
        prep["blocks"].append({
            "attn_bias": bias,
            "norm1_g": row(bp["norm1_g"]), "norm1_b": row(bp["norm1_b"]),
            "norm2_g": row(bp["norm2_g"]), "norm2_b": row(bp["norm2_b"]),
            "wqkv": jnp.concatenate([bp["wv"], bp["wq"], bp["wk"]], axis=1).astype(jnp.bfloat16),
            "bqkv": jnp.concatenate([bp["bv"], bp["bq"], bp["bk"]]).reshape(1, -1).astype(jnp.float32),
            "proj_w": bp["proj_w"].astype(jnp.bfloat16), "proj_b": row(bp["proj_b"]),
            "fc1_w": bp["fc1_w"].astype(jnp.bfloat16), "fc1_b": row(bp["fc1_b"]),
            "fc2_w": bp["fc2_w"].astype(jnp.bfloat16), "fc2_b": row(bp["fc2_b"]),
        })
    # transition permutations: into block-0 window order, then inv(P_i) composed with P_{i+1}
    trans = [jnp.asarray(perms[0])]
    for i in range(len(perms) - 1):
        inv = np.empty_like(perms[i])
        inv[perms[i]] = np.arange(perms[i].size, dtype=np.int32)
        trans.append(jnp.asarray(inv[perms[i + 1]]))
    prep["trans"] = tuple(trans)
    prep["blocks"] = tuple(prep["blocks"])
    return prep


# --------------------------------------------------------------------------- #
# Forward
# --------------------------------------------------------------------------- #
def elsa_swin_forward(prep, x_nchw, cfg):
    b, cin, hi, wi = x_nchw.shape
    ps, nh = cfg["patch_size"], cfg["num_heads"]
    gh, gw = hi // ps, wi // ps
    l = gh * gw

    # patch embed: Conv2d(k=ps, s=ps) == matmul over flattened patches (+ LayerNorm2d)
    patches = x_nchw.reshape(b, cin, gh, ps, gw, ps).transpose(0, 2, 4, 1, 3, 5)
    patches = patches.reshape(b * l, cin * ps * ps)
    x = pallas_patch_embed(patches, prep["patch_w"], prep["patch_b"],
                           prep["patch_norm_g"], prep["patch_norm_b"])       # (B*L, E)

    # fused Swin blocks; the only inter-kernel glue is one static row permutation
    # per block (cyclic shift + window partition/reverse collapse to this gather).
    for blk, perm in zip(prep["blocks"], prep["trans"]):
        x = jnp.take(x, perm, axis=0)
        x = pallas_swin_block(x, blk, nh)

    # final LayerNorm + token mean + head (token mean is permutation invariant,
    # so no un-permute of the window order is needed).
    return pallas_norm_pool_head(x, prep["norm_g"], prep["norm_b"],
                                 prep["pool"], prep["head_w"], prep["head_b"])


# --------------------------------------------------------------------------- #
if __name__ == "__main__":
    cfg = dict(img_size=32, patch_size=4, in_chans=3, num_classes=10,
               embed_dim=32, depth=2, num_heads=2, window_size=4, mlp_ratio=4.0)

    key = jax.random.PRNGKey(0)
    kx, kp = jax.random.split(key)
    x = jax.random.normal(kx, (2, cfg["in_chans"], cfg["img_size"], cfg["img_size"]), jnp.float32)
    params = init_params(kp, cfg)
    prep = prepare_inference_params(params, cfg, batch=2)

    fwd = jax.jit(lambda p, inp: elsa_swin_forward(p, inp, cfg))
    out = jax.block_until_ready(fwd(prep, x))
    assert out.shape == (2, cfg["num_classes"]), out.shape
    print("KERNEL_OK")
</pallas_src>

<mosaic_0001>
module attributes {stable_mosaic.version = 11 : i64} {
  func.func @_patch_embed_kernel(%arg0: memref<128x48xf32, #tpu.memory_space<vmem>>, %arg1: memref<48x32xbf16, #tpu.memory_space<vmem>>, %arg2: memref<1x32xf32, #tpu.memory_space<vmem>>, %arg3: memref<1x32xf32, #tpu.memory_space<vmem>>, %arg4: memref<1x32xf32, #tpu.memory_space<vmem>>, %arg5: memref<128x32xf32, #tpu.memory_space<vmem>>) attributes {dimension_semantics = [], scalar_prefetch = 0 : i64, scratch_operands = 0 : i64, tpu.core_type = #tpu.core_type<tc>} {
    %c0 = arith.constant 0 : index
    %c0_0 = arith.constant 0 : index
    %0 = vector.load %arg0[%c0, %c0_0] : memref<128x48xf32, #tpu.memory_space<vmem>>, vector<128x48xf32>
    %1 = arith.truncf %0 : vector<128x48xf32> to vector<128x48xbf16>
    %c0_1 = arith.constant 0 : index
    %c0_2 = arith.constant 0 : index
    %2 = vector.load %arg1[%c0_1, %c0_2] : memref<48x32xbf16, #tpu.memory_space<vmem>>, vector<48x32xbf16>
    %cst = arith.constant dense<0.000000e+00> : vector<128x32xf32>
    %3 = tpu.matmul %1, %2, %cst {dimension_numbers = #tpu.dot_dimension_numbers<[1], [0], [0], [1], [0, 0, 1, 1], [], []>} : vector<128x48xbf16>, vector<48x32xbf16>, vector<128x32xf32> -> vector<128x32xf32>
    %c0_3 = arith.constant 0 : index
    %c0_4 = arith.constant 0 : index
    %4 = vector.load %arg2[%c0_3, %c0_4] : memref<1x32xf32, #tpu.memory_space<vmem>>, vector<1x32xf32>
    %5 = vector.broadcast %4 : vector<1x32xf32> to vector<128x32xf32>
    %6 = arith.addf %3, %5 : vector<128x32xf32>
    %c0_5 = arith.constant 0 : index
    %c0_6 = arith.constant 0 : index
    %7 = vector.load %arg3[%c0_5, %c0_6] : memref<1x32xf32, #tpu.memory_space<vmem>>, vector<1x32xf32>
    %c0_7 = arith.constant 0 : index
    %c0_8 = arith.constant 0 : index
    %8 = vector.load %arg4[%c0_7, %c0_8] : memref<1x32xf32, #tpu.memory_space<vmem>>, vector<1x32xf32>
    %cst_9 = arith.constant dense<0.000000e+00> : vector<128xf32>
    %9 = vector.multi_reduction <add>, %6, %cst_9 [1] : vector<128x32xf32> to vector<128xf32>
    %10 = vector.shape_cast %9 : vector<128xf32> to vector<128x1xf32>
    %cst_10 = arith.constant 3.200000e+01 : f32
    %11 = vector.broadcast %cst_10 : f32 to vector<128x1xf32>
    %12 = arith.divf %10, %11 : vector<128x1xf32>
    %13 = vector.broadcast %12 : vector<128x1xf32> to vector<128x32xf32>
    %14 = arith.subf %6, %13 : vector<128x32xf32>
    %15 = arith.mulf %14, %14 : vector<128x32xf32>
    %cst_11 = arith.constant dense<0.000000e+00> : vector<128xf32>
    %16 = vector.multi_reduction <add>, %15, %cst_11 [1] : vector<128x32xf32> to vector<128xf32>
    %17 = vector.shape_cast %16 : vector<128xf32> to vector<128x1xf32>
    %cst_12 = arith.constant 3.200000e+01 : f32
    %18 = vector.broadcast %cst_12 : f32 to vector<128x1xf32>
    %19 = arith.divf %17, %18 : vector<128x1xf32>
    %20 = vector.broadcast %12 : vector<128x1xf32> to vector<128x32xf32>
    %21 = arith.subf %6, %20 : vector<128x32xf32>
    %cst_13 = arith.constant 9.99999974E-6 : f32
    %22 = vector.broadcast %cst_13 : f32 to vector<128x1xf32>
    %23 = arith.addf %19, %22 : vector<128x1xf32>
    %24 = math.rsqrt %23 : vector<128x1xf32>
    %25 = vector.broadcast %24 : vector<128x1xf32> to vector<128x32xf32>
    %26 = arith.mulf %21, %25 : vector<128x32xf32>
    %27 = vector.broadcast %7 : vector<1x32xf32> to vector<128x32xf32>
    %28 = arith.mulf %26, %27 : vector<128x32xf32>
    %29 = vector.broadcast %8 : vector<1x32xf32> to vector<128x32xf32>
    %30 = arith.addf %28, %29 : vector<128x32xf32>
    %c0_14 = arith.constant 0 : index
    %c0_15 = arith.constant 0 : index
    %31 = vector.load %arg5[%c0_14, %c0_15] : memref<128x32xf32, #tpu.memory_space<vmem>>, vector<128x32xf32>
    tpu.vector_store %arg5[%c0_14, %c0_15], %30 {strides = array<i32>} : memref<128x32xf32, #tpu.memory_space<vmem>>, vector<128x32xf32>,
    return
  }
}

module attributes {stable_mosaic.version = 11 : i64} {
  func.func @_head_kernel(%arg0: memref<128x32xf32, #tpu.memory_space<vmem>>, %arg1: memref<1x32xf32, #tpu.memory_space<vmem>>, %arg2: memref<1x32xf32, #tpu.memory_space<vmem>>, %arg3: memref<2x128xf32, #tpu.memory_space<vmem>>, %arg4: memref<32x10xbf16, #tpu.memory_space<vmem>>, %arg5: memref<1x10xf32, #tpu.memory_space<vmem>>, %arg6: memref<2x10xf32, #tpu.memory_space<vmem>>) attributes {dimension_semantics = [], scalar_prefetch = 0 : i64, scratch_operands = 0 : i64, tpu.core_type = #tpu.core_type<tc>} {
    %c0 = arith.constant 0 : index
    %c0_0 = arith.constant 0 : index
    %0 = vector.load %arg0[%c0, %c0_0] : memref<128x32xf32, #tpu.memory_space<vmem>>, vector<128x32xf32>
    %c0_1 = arith.constant 0 : index
    %c0_2 = arith.constant 0 : index
    %1 = vector.load %arg1[%c0_1, %c0_2] : memref<1x32xf32, #tpu.memory_space<vmem>>, vector<1x32xf32>
    %c0_3 = arith.constant 0 : index
    %c0_4 = arith.constant 0 : index
    %2 = vector.load %arg2[%c0_3, %c0_4] : memref<1x32xf32, #tpu.memory_space<vmem>>, vector<1x32xf32>
    %cst = arith.constant dense<0.000000e+00> : vector<128xf32>
    %3 = vector.multi_reduction <add>, %0, %cst [1] : vector<128x32xf32> to vector<128xf32>
    %4 = vector.shape_cast %3 : vector<128xf32> to vector<128x1xf32>
    %cst_5 = arith.constant 3.200000e+01 : f32
    %5 = vector.broadcast %cst_5 : f32 to vector<128x1xf32>
    %6 = arith.divf %4, %5 : vector<128x1xf32>
    %7 = vector.broadcast %6 : vector<128x1xf32> to vector<128x32xf32>
    %8 = arith.subf %0, %7 : vector<128x32xf32>
    %9 = arith.mulf %8, %8 : vector<128x32xf32>
    %cst_6 = arith.constant dense<0.000000e+00> : vector<128xf32>
    %10 = vector.multi_reduction <add>, %9, %cst_6 [1] : vector<128x32xf32> to vector<128xf32>
    %11 = vector.shape_cast %10 : vector<128xf32> to vector<128x1xf32>
    %cst_7 = arith.constant 3.200000e+01 : f32
    %12 = vector.broadcast %cst_7 : f32 to vector<128x1xf32>
    %13 = arith.divf %11, %12 : vector<128x1xf32>
    %14 = vector.broadcast %6 : vector<128x1xf32> to vector<128x32xf32>
    %15 = arith.subf %0, %14 : vector<128x32xf32>
    %cst_8 = arith.constant 9.99999974E-6 : f32
    %16 = vector.broadcast %cst_8 : f32 to vector<128x1xf32>
    %17 = arith.addf %13, %16 : vector<128x1xf32>
    %18 = math.rsqrt %17 : vector<128x1xf32>
    %19 = vector.broadcast %18 : vector<128x1xf32> to vector<128x32xf32>
    %20 = arith.mulf %15, %19 : vector<128x32xf32>
    %21 = vector.broadcast %1 : vector<1x32xf32> to vector<128x32xf32>
    %22 = arith.mulf %20, %21 : vector<128x32xf32>
    %23 = vector.broadcast %2 : vector<1x32xf32> to vector<128x32xf32>
    %24 = arith.addf %22, %23 : vector<128x32xf32>
    %c0_9 = arith.constant 0 : index
    %c0_10 = arith.constant 0 : index
    %25 = vector.load %arg3[%c0_9, %c0_10] : memref<2x128xf32, #tpu.memory_space<vmem>>, vector<2x128xf32>
    %cst_11 = arith.constant dense<0.000000e+00> : vector<2x32xf32>
    %26 = tpu.matmul %25, %24, %cst_11 {dimension_numbers = #tpu.dot_dimension_numbers<[1], [0], [0], [1], [0, 0, 1, 1], [], []>} : vector<2x128xf32>, vector<128x32xf32>, vector<2x32xf32> -> vector<2x32xf32>
    %27 = arith.truncf %26 : vector<2x32xf32> to vector<2x32xbf16>
    %c0_12 = arith.constant 0 : index
    %c0_13 = arith.constant 0 : index
    %28 = vector.load %arg4[%c0_12, %c0_13] : memref<32x10xbf16, #tpu.memory_space<vmem>>, vector<32x10xbf16>
    %cst_14 = arith.constant dense<0.000000e+00> : vector<2x10xf32>
    %29 = tpu.matmul %27, %28, %cst_14 {dimension_numbers = #tpu.dot_dimension_numbers<[1], [0], [0], [1], [0, 0, 1, 1], [], []>} : vector<2x32xbf16>, vector<32x10xbf16>, vector<2x10xf32> -> vector<2x10xf32>
    %c0_15 = arith.constant 0 : index
    %c0_16 = arith.constant 0 : index
    %30 = vector.load %arg5[%c0_15, %c0_16] : memref<1x10xf32, #tpu.memory_space<vmem>>, vector<1x10xf32>
    %31 = vector.broadcast %30 : vector<1x10xf32> to vector<2x10xf32>
    %32 = arith.addf %29, %31 : vector<2x10xf32>
    %c0_17 = arith.constant 0 : index
    %c0_18 = arith.constant 0 : index
    %33 = vector.load %arg6[%c0_17, %c0_18] : memref<2x10xf32, #tpu.memory_space<vmem>>, vector<2x10xf32>
    tpu.vector_store %arg6[%c0_17, %c0_18], %32 {strides = array<i32>} : memref<2x10xf32, #tpu.memory_space<vmem>>, vector<2x10xf32>,
    return
  }
}

module attributes {stable_mosaic.version = 11 : i64} {
  func.func @_swin_block_kernel(%arg0: memref<128x32xf32, #tpu.memory_space<vmem>>, %arg1: memref<2x128x128xf32, #tpu.memory_space<vmem>>, %arg2: memref<1x32xf32, #tpu.memory_space<vmem>>, %arg3: memref<1x32xf32, #tpu.memory_space<vmem>>, %arg4: memref<32x96xbf16, #tpu.memory_space<vmem>>, %arg5: memref<1x96xf32, #tpu.memory_space<vmem>>, %arg6: memref<32x32xbf16, #tpu.memory_space<vmem>>, %arg7: memref<1x32xf32, #tpu.memory_space<vmem>>, %arg8: memref<1x32xf32, #tpu.memory_space<vmem>>, %arg9: memref<1x32xf32, #tpu.memory_space<vmem>>, %arg10: memref<32x128xbf16, #tpu.memory_space<vmem>>, %arg11: memref<1x128xf32, #tpu.memory_space<vmem>>, %arg12: memref<128x32xbf16, #tpu.memory_space<vmem>>, %arg13: memref<1x32xf32, #tpu.memory_space<vmem>>, %arg14: memref<128x32xf32, #tpu.memory_space<vmem>>) attributes {dimension_semantics = [], scalar_prefetch = 0 : i64, scratch_operands = 0 : i64, tpu.core_type = #tpu.core_type<tc>} {
    %c0 = arith.constant 0 : index
    %c0_0 = arith.constant 0 : index
    %0 = vector.load %arg0[%c0, %c0_0] : memref<128x32xf32, #tpu.memory_space<vmem>>, vector<128x32xf32>
    %c0_1 = arith.constant 0 : index
    %c0_2 = arith.constant 0 : index
    %1 = vector.load %arg2[%c0_1, %c0_2] : memref<1x32xf32, #tpu.memory_space<vmem>>, vector<1x32xf32>
    %c0_3 = arith.constant 0 : index
    %c0_4 = arith.constant 0 : index
    %2 = vector.load %arg3[%c0_3, %c0_4] : memref<1x32xf32, #tpu.memory_space<vmem>>, vector<1x32xf32>
    %cst = arith.constant dense<0.000000e+00> : vector<128xf32>
    %3 = vector.multi_reduction <add>, %0, %cst [1] : vector<128x32xf32> to vector<128xf32>
    %4 = vector.shape_cast %3 : vector<128xf32> to vector<128x1xf32>
    %cst_5 = arith.constant 3.200000e+01 : f32
    %5 = vector.broadcast %cst_5 : f32 to vector<128x1xf32>
    %6 = arith.divf %4, %5 : vector<128x1xf32>
    %7 = vector.broadcast %6 : vector<128x1xf32> to vector<128x32xf32>
    %8 = arith.subf %0, %7 : vector<128x32xf32>
    %9 = arith.mulf %8, %8 : vector<128x32xf32>
    %cst_6 = arith.constant dense<0.000000e+00> : vector<128xf32>
    %10 = vector.multi_reduction <add>, %9, %cst_6 [1] : vector<128x32xf32> to vector<128xf32>
    %11 = vector.shape_cast %10 : vector<128xf32> to vector<128x1xf32>
    %cst_7 = arith.constant 3.200000e+01 : f32
    %12 = vector.broadcast %cst_7 : f32 to vector<128x1xf32>
    %13 = arith.divf %11, %12 : vector<128x1xf32>
    %14 = vector.broadcast %6 : vector<128x1xf32> to vector<128x32xf32>
    %15 = arith.subf %0, %14 : vector<128x32xf32>
    %cst_8 = arith.constant 9.99999974E-6 : f32
    %16 = vector.broadcast %cst_8 : f32 to vector<128x1xf32>
    %17 = arith.addf %13, %16 : vector<128x1xf32>
    %18 = math.rsqrt %17 : vector<128x1xf32>
    %19 = vector.broadcast %18 : vector<128x1xf32> to vector<128x32xf32>
    %20 = arith.mulf %15, %19 : vector<128x32xf32>
    %21 = vector.broadcast %1 : vector<1x32xf32> to vector<128x32xf32>
    %22 = arith.mulf %20, %21 : vector<128x32xf32>
    %23 = vector.broadcast %2 : vector<1x32xf32> to vector<128x32xf32>
    %24 = arith.addf %22, %23 : vector<128x32xf32>
    %25 = arith.truncf %24 : vector<128x32xf32> to vector<128x32xbf16>
    %c0_9 = arith.constant 0 : index
    %c0_10 = arith.constant 0 : index
    %26 = vector.load %arg4[%c0_9, %c0_10] : memref<32x96xbf16, #tpu.memory_space<vmem>>, vector<32x96xbf16>
    %cst_11 = arith.constant dense<0.000000e+00> : vector<128x96xf32>
    %27 = tpu.matmul %25, %26, %cst_11 {dimension_numbers = #tpu.dot_dimension_numbers<[1], [0], [0], [1], [0, 0, 1, 1], [], []>} : vector<128x32xbf16>, vector<32x96xbf16>, vector<128x96xf32> -> vector<128x96xf32>
    %c0_12 = arith.constant 0 : index
    %c0_13 = arith.constant 0 : index
    %28 = vector.load %arg5[%c0_12, %c0_13] : memref<1x96xf32, #tpu.memory_space<vmem>>, vector<1x96xf32>
    %29 = vector.broadcast %28 : vector<1x96xf32> to vector<128x96xf32>
    %30 = arith.addf %27, %29 : vector<128x96xf32>
    %31 = vector.extract_strided_slice %30 {offsets = [0, 0], sizes = [128, 16], strides = [1, 1]} : vector<128x96xf32> to vector<128x16xf32>
    %32 = vector.extract_strided_slice %30 {offsets = [0, 32], sizes = [128, 16], strides = [1, 1]} : vector<128x96xf32> to vector<128x16xf32>
    %33 = vector.extract_strided_slice %30 {offsets = [0, 64], sizes = [128, 16], strides = [1, 1]} : vector<128x96xf32> to vector<128x16xf32>
    %34 = arith.truncf %32 : vector<128x16xf32> to vector<128x16xbf16>
    %35 = arith.truncf %33 : vector<128x16xf32> to vector<128x16xbf16>
    %cst_14 = arith.constant dense<0.000000e+00> : vector<128x128xf32>
    %36 = tpu.matmul %34, %35, %cst_14 {dimension_numbers = #tpu.dot_dimension_numbers<[1], [1], [0], [0], [0, 0, 1, 0], [], []>} : vector<128x16xbf16>, vector<128x16xbf16>, vector<128x128xf32> -> vector<128x128xf32>
    %cst_15 = arith.constant 2.500000e-01 : f32
    %37 = vector.broadcast %cst_15 : f32 to vector<128x128xf32>
    %38 = arith.mulf %36, %37 : vector<128x128xf32>
    %c0_16 = arith.constant 0 : index
    %c0_17 = arith.constant 0 : index
    %c0_18 = arith.constant 0 : index
    %39 = vector.load %arg1[%c0_16, %c0_17, %c0_18] : memref<2x128x128xf32, #tpu.memory_space<vmem>>, vector<1x128x128xf32>
    %40 = vector.shape_cast %39 : vector<1x128x128xf32> to vector<128x128xf32>
    %41 = arith.addf %38, %40 : vector<128x128xf32>
    %cst_19 = arith.constant dense<0xFF800000> : vector<128xf32>
    %42 = vector.multi_reduction <maximumf>, %41, %cst_19 [1] : vector<128x128xf32> to vector<128xf32>
    %43 = vector.shape_cast %42 : vector<128xf32> to vector<128x1xf32>
    %44 = vector.broadcast %43 : vector<128x1xf32> to vector<128x128xf32>
    %45 = arith.subf %41, %44 : vector<128x128xf32>
    %46 = math.exp %45 : vector<128x128xf32>
    %cst_20 = arith.constant dense<0.000000e+00> : vector<128xf32>
    %47 = vector.multi_reduction <add>, %46, %cst_20 [1] : vector<128x128xf32> to vector<128xf32>
    %48 = vector.shape_cast %47 : vector<128xf32> to vector<128x1xf32>
    %49 = vector.broadcast %48 : vector<128x1xf32> to vector<128x128xf32>
    %50 = arith.divf %46, %49 : vector<128x128xf32>
    %51 = arith.truncf %50 : vector<128x128xf32> to vector<128x128xbf16>
    %52 = arith.truncf %31 : vector<128x16xf32> to vector<128x16xbf16>
    %cst_21 = arith.constant dense<0.000000e+00> : vector<128x16xf32>
    %53 = tpu.matmul %51, %52, %cst_21 {dimension_numbers = #tpu.dot_dimension_numbers<[1], [0], [0], [1], [0, 0, 1, 1], [], []>} : vector<128x128xbf16>, vector<128x16xbf16>, vector<128x16xf32> -> vector<128x16xf32>
    %54 = vector.extract_strided_slice %30 {offsets = [0, 16], sizes = [128, 16], strides = [1, 1]} : vector<128x96xf32> to vector<128x16xf32>
    %55 = vector.extract_strided_slice %30 {offsets = [0, 48], sizes = [128, 16], strides = [1, 1]} : vector<128x96xf32> to vector<128x16xf32>
    %56 = vector.extract_strided_slice %30 {offsets = [0, 80], sizes = [128, 16], strides = [1, 1]} : vector<128x96xf32> to vector<128x16xf32>
    %57 = arith.truncf %55 : vector<128x16xf32> to vector<128x16xbf16>
    %58 = arith.truncf %56 : vector<128x16xf32> to vector<128x16xbf16>
    %cst_22 = arith.constant dense<0.000000e+00> : vector<128x128xf32>
    %59 = tpu.matmul %57, %58, %cst_22 {dimension_numbers = #tpu.dot_dimension_numbers<[1], [1], [0], [0], [0, 0, 1, 0], [], []>} : vector<128x16xbf16>, vector<128x16xbf16>, vector<128x128xf32> -> vector<128x128xf32>
    %cst_23 = arith.constant 2.500000e-01 : f32
    %60 = vector.broadcast %cst_23 : f32 to vector<128x128xf32>
    %61 = arith.mulf %59, %60 : vector<128x128xf32>
    %c1 = arith.constant 1 : index
    %c0_24 = arith.constant 0 : index
    %c0_25 = arith.constant 0 : index
    %62 = vector.load %arg1[%c1, %c0_24, %c0_25] : memref<2x128x128xf32, #tpu.memory_space<vmem>>, vector<1x128x128xf32>
    %63 = vector.shape_cast %62 : vector<1x128x128xf32> to vector<128x128xf32>
    %64 = arith.addf %61, %63 : vector<128x128xf32>
    %cst_26 = arith.constant dense<0xFF800000> : vector<128xf32>
    %65 = vector.multi_reduction <maximumf>, %64, %cst_26 [1] : vector<128x128xf32> to vector<128xf32>
    %66 = vector.shape_cast %65 : vector<128xf32> to vector<128x1xf32>
    %67 = vector.broadcast %66 : vector<128x1xf32> to vector<128x128xf32>
    %68 = arith.subf %64, %67 : vector<128x128xf32>
    %69 = math.exp %68 : vector<128x128xf32>
    %cst_27 = arith.constant dense<0.000000e+00> : vector<128xf32>
    %70 = vector.multi_reduction <add>, %69, %cst_27 [1] : vector<128x128xf32> to vector<128xf32>
    %71 = vector.shape_cast %70 : vector<128xf32> to vector<128x1xf32>
    %72 = vector.broadcast %71 : vector<128x1xf32> to vector<128x128xf32>
    %73 = arith.divf %69, %72 : vector<128x128xf32>
    %74 = arith.truncf %73 : vector<128x128xf32> to vector<128x128xbf16>
    %75 = arith.truncf %54 : vector<128x16xf32> to vector<128x16xbf16>
    %cst_28 = arith.constant dense<0.000000e+00> : vector<128x16xf32>
    %76 = tpu.matmul %74, %75, %cst_28 {dimension_numbers = #tpu.dot_dimension_numbers<[1], [0], [0], [1], [0, 0, 1, 1], [], []>} : vector<128x128xbf16>, vector<128x16xbf16>, vector<128x16xf32> -> vector<128x16xf32>
    %77 = tpu.concatenate %53, %76 in 1 : vector<128x16xf32>, vector<128x16xf32> -> vector<128x32xf32>
    %78 = arith.truncf %77 : vector<128x32xf32> to vector<128x32xbf16>
    %c0_29 = arith.constant 0 : index
    %c0_30 = arith.constant 0 : index
    %79 = vector.load %arg6[%c0_29, %c0_30] : memref<32x32xbf16, #tpu.memory_space<vmem>>, vector<32x32xbf16>
    %cst_31 = arith.constant dense<0.000000e+00> : vector<128x32xf32>
    %80 = tpu.matmul %78, %79, %cst_31 {dimension_numbers = #tpu.dot_dimension_numbers<[1], [0], [0], [1], [0, 0, 1, 1], [], []>} : vector<128x32xbf16>, vector<32x32xbf16>, vector<128x32xf32> -> vector<128x32xf32>
    %c0_32 = arith.constant 0 : index
    %c0_33 = arith.constant 0 : index
    %81 = vector.load %arg7[%c0_32, %c0_33] : memref<1x32xf32, #tpu.memory_space<vmem>>, vector<1x32xf32>
    %82 = vector.broadcast %81 : vector<1x32xf32> to vector<128x32xf32>
    %83 = arith.addf %80, %82 : vector<128x32xf32>
    %84 = arith.addf %0, %83 : vector<128x32xf32>
    %c0_34 = arith.constant 0 : index
    %c0_35 = arith.constant 0 : index
    %85 = vector.load %arg8[%c0_34, %c0_35] : memref<1x32xf32, #tpu.memory_space<vmem>>, vector<1x32xf32>
    %c0_36 = arith.constant 0 : index
    %c0_37 = arith.constant 0 : index
    %86 = vector.load %arg9[%c0_36, %c0_37] : memref<1x32xf32, #tpu.memory_space<vmem>>, vector<1x32xf32>
    %cst_38 = arith.constant dense<0.000000e+00> : vector<128xf32>
    %87 = vector.multi_reduction <add>, %84, %cst_38 [1] : vector<128x32xf32> to vector<128xf32>
    %88 = vector.shape_cast %87 : vector<128xf32> to vector<128x1xf32>
    %cst_39 = arith.constant 3.200000e+01 : f32
    %89 = vector.broadcast %cst_39 : f32 to vector<128x1xf32>
    %90 = arith.divf %88, %89 : vector<128x1xf32>
    %91 = vector.broadcast %90 : vector<128x1xf32> to vector<128x32xf32>
    %92 = arith.subf %84, %91 : vector<128x32xf32>
    %93 = arith.mulf %92, %92 : vector<128x32xf32>
    %cst_40 = arith.constant dense<0.000000e+00> : vector<128xf32>
    %94 = vector.multi_reduction <add>, %93, %cst_40 [1] : vector<128x32xf32> to vector<128xf32>
    %95 = vector.shape_cast %94 : vector<128xf32> to vector<128x1xf32>
    %cst_41 = arith.constant 3.200000e+01 : f32
    %96 = vector.broadcast %cst_41 : f32 to vector<128x1xf32>
    %97 = arith.divf %95, %96 : vector<128x1xf32>
    %98 = vector.broadcast %90 : vector<128x1xf32> to vector<128x32xf32>
    %99 = arith.subf %84, %98 : vector<128x32xf32>
    %cst_42 = arith.constant 9.99999974E-6 : f32
    %100 = vector.broadcast %cst_42 : f32 to vector<128x1xf32>
    %101 = arith.addf %97, %100 : vector<128x1xf32>
    %102 = math.rsqrt %101 : vector<128x1xf32>
    %103 = vector.broadcast %102 : vector<128x1xf32> to vector<128x32xf32>
    %104 = arith.mulf %99, %103 : vector<128x32xf32>
    %105 = vector.broadcast %85 : vector<1x32xf32> to vector<128x32xf32>
    %106 = arith.mulf %104, %105 : vector<128x32xf32>
    %107 = vector.broadcast %86 : vector<1x32xf32> to vector<128x32xf32>
    %108 = arith.addf %106, %107 : vector<128x32xf32>
    %109 = arith.truncf %108 : vector<128x32xf32> to vector<128x32xbf16>
    %c0_43 = arith.constant 0 : index
    %c0_44 = arith.constant 0 : index
    %110 = vector.load %arg10[%c0_43, %c0_44] : memref<32x128xbf16, #tpu.memory_space<vmem>>, vector<32x128xbf16>
    %cst_45 = arith.constant dense<0.000000e+00> : vector<128x128xf32>
    %111 = tpu.matmul %109, %110, %cst_45 {dimension_numbers = #tpu.dot_dimension_numbers<[1], [0], [0], [1], [0, 0, 1, 1], [], []>} : vector<128x32xbf16>, vector<32x128xbf16>, vector<128x128xf32> -> vector<128x128xf32>
    %c0_46 = arith.constant 0 : index
    %c0_47 = arith.constant 0 : index
    %112 = vector.load %arg11[%c0_46, %c0_47] : memref<1x128xf32, #tpu.memory_space<vmem>>, vector<1x128xf32>
    %113 = vector.broadcast %112 : vector<1x128xf32> to vector<128x128xf32>
    %114 = arith.addf %111, %113 : vector<128x128xf32>
    %cst_48 = arith.constant 5.000000e-01 : f32
    %115 = vector.broadcast %cst_48 : f32 to vector<128x128xf32>
    %116 = arith.mulf %115, %114 : vector<128x128xf32>
    %cst_49 = arith.constant 0.707106769 : f32
    %117 = vector.broadcast %cst_49 : f32 to vector<128x128xf32>
    %118 = arith.mulf %114, %117 : vector<128x128xf32>
    %cst_50 = arith.constant 0.000000e+00 : f32
    %119 = vector.broadcast %cst_50 : f32 to vector<128x128xf32>
    %120 = arith.cmpf olt, %118, %119 : vector<128x128xf32>
    %cst_51 = arith.constant -1.000000e+00 : f32
    %cst_52 = arith.constant 1.000000e+00 : f32
    %121 = vector.broadcast %cst_51 : f32 to vector<128x128xf32>
    %122 = vector.broadcast %cst_52 : f32 to vector<128x128xf32>
    %123 = arith.select %120, %121, %122 : vector<128x128xi1>, vector<128x128xf32>
    %124 = math.absf %118 : vector<128x128xf32>
    %cst_53 = arith.constant 0.327591091 : f32
    %125 = vector.broadcast %cst_53 : f32 to vector<128x128xf32>
    %126 = arith.mulf %125, %124 : vector<128x128xf32>
    %cst_54 = arith.constant 1.000000e+00 : f32
    %127 = vector.broadcast %cst_54 : f32 to vector<128x128xf32>
    %128 = arith.addf %127, %126 : vector<128x128xf32>
    %cst_55 = arith.constant 1.000000e+00 : f32
    %129 = vector.broadcast %cst_55 : f32 to vector<128x128xf32>
    %130 = arith.divf %129, %128 : vector<128x128xf32>
    %cst_56 = arith.constant 1.06140542 : f32
    %131 = vector.broadcast %cst_56 : f32 to vector<128x128xf32>
    %132 = arith.mulf %131, %130 : vector<128x128xf32>
    %cst_57 = arith.constant -1.45315206 : f32
    %133 = vector.broadcast %cst_57 : f32 to vector<128x128xf32>
    %134 = arith.addf %132, %133 : vector<128x128xf32>
    %135 = arith.mulf %134, %130 : vector<128x128xf32>
    %cst_58 = arith.constant 1.42141378 : f32
    %136 = vector.broadcast %cst_58 : f32 to vector<128x128xf32>
    %137 = arith.addf %135, %136 : vector<128x128xf32>
    %138 = arith.mulf %137, %130 : vector<128x128xf32>
    %cst_59 = arith.constant -0.284496725 : f32
    %139 = vector.broadcast %cst_59 : f32 to vector<128x128xf32>
    %140 = arith.addf %138, %139 : vector<128x128xf32>
    %141 = arith.mulf %140, %130 : vector<128x128xf32>
    %cst_60 = arith.constant 0.254829586 : f32
    %142 = vector.broadcast %cst_60 : f32 to vector<128x128xf32>
    %143 = arith.addf %141, %142 : vector<128x128xf32>
    %144 = arith.mulf %143, %130 : vector<128x128xf32>
    %cst_61 = arith.constant 0.000000e+00 : f32
    %145 = vector.broadcast %cst_61 : f32 to vector<128x128xf32>
    %146 = arith.subf %145, %124 : vector<128x128xf32>
    %147 = arith.mulf %146, %124 : vector<128x128xf32>
    %148 = math.exp %147 : vector<128x128xf32>
    %149 = arith.mulf %144, %148 : vector<128x128xf32>
    %cst_62 = arith.constant 1.000000e+00 : f32
    %150 = vector.broadcast %cst_62 : f32 to vector<128x128xf32>
    %151 = arith.subf %150, %149 : vector<128x128xf32>
    %152 = arith.mulf %123, %151 : vector<128x128xf32>
    %cst_63 = arith.constant 1.000000e+00 : f32
    %153 = vector.broadcast %cst_63 : f32 to vector<128x128xf32>
    %154 = arith.addf %153, %152 : vector<128x128xf32>
    %155 = arith.mulf %116, %154 : vector<128x128xf32>
    %156 = arith.truncf %155 : vector<128x128xf32> to vector<128x128xbf16>
    %c0_64 = arith.constant 0 : index
    %c0_65 = arith.constant 0 : index
    %157 = vector.load %arg12[%c0_64, %c0_65] : memref<128x32xbf16, #tpu.memory_space<vmem>>, vector<128x32xbf16>
    %cst_66 = arith.constant dense<0.000000e+00> : vector<128x32xf32>
    %158 = tpu.matmul %156, %157, %cst_66 {dimension_numbers = #tpu.dot_dimension_numbers<[1], [0], [0], [1], [0, 0, 1, 1], [], []>} : vector<128x128xbf16>, vector<128x32xbf16>, vector<128x32xf32> -> vector<128x32xf32>
    %c0_67 = arith.constant 0 : index
    %c0_68 = arith.constant 0 : index
    %159 = vector.load %arg13[%c0_67, %c0_68] : memref<1x32xf32, #tpu.memory_space<vmem>>, vector<1x32xf32>
    %160 = vector.broadcast %159 : vector<1x32xf32> to vector<128x32xf32>
    %161 = arith.addf %158, %160 : vector<128x32xf32>
    %162 = arith.addf %84, %161 : vector<128x32xf32>
    %c0_69 = arith.constant 0 : index
    %c0_70 = arith.constant 0 : index
    %163 = vector.load %arg14[%c0_69, %c0_70] : memref<128x32xf32, #tpu.memory_space<vmem>>, vector<128x32xf32>
    tpu.vector_store %arg14[%c0_69, %c0_70], %162 {strides = array<i32>} : memref<128x32xf32, #tpu.memory_space<vmem>>, vector<128x32xf32>,
    return
  }
}

</mosaic_0001>

<bundles_post_ra>
// kernel: _lambda_.7
= control target key start
LH: loop header
LB: loop body
LE: loop exit
PB: predicated region body
PF: predicated region fallthrough
CT: control target
= control target key end

     0   :  { %vm43_vm0 = vcmask 261120   ;;  %s920_s0 = inlined_call_operand.vmem [shape: f32[128,32], index: 0, kind: input, shape index: {}]   ;;  %s921_s1 = inlined_call_operand.vmem [shape: f32[1,32], index: 1, kind: input, shape index: {}]   ;;  %s922_s2 = inlined_call_operand.vmem [shape: f32[1,32], index: 2, kind: input, shape index: {}]   ;;  %s923_s3 = inlined_call_operand.vmem [shape: f32[2,128], index: 3, kind: input, shape index: {}]   ;;  %s924_s4 = inlined_call_operand.vmem [shape: bf16[32,10], index: 4, kind: input, shape index: {}]   ;;  %s925_s5 = inlined_call_operand.vmem [shape: f32[1,10], index: 5, kind: input, shape index: {}]   ;;  %s926_s6 = inlined_call_operand.hbm [shape: f32[2,10], index: 6, kind: output, shape index: {}]  }
   0x1   :  { %v25_v0 = vld [vmem:[%s920_s0] sm:$0xff]  ;;  %v27_v1 = vld [vmem:[%s920_s0 + $0x10] sm:$0xff]  ;;  %v26_v2 = vld [vmem:[%s920_s0 + $0x8] sm:$0xff] }
   0x2   :  { %v44_v3 = vsel %vm43_vm0, %v25_v0, 0.0  ;;  %v50_v4 = vsel %vm43_vm0, %v27_v1, 0.0  ;;  %v28_v5 = vld [vmem:[%s920_s0 + $0x18] sm:$0xff]  ;;  %v47_v6 = vsel %vm43_vm0, %v26_v2, 0.0  ;;  %v29_v8 = vld [vmem:[%s920_s0 + $0x20] sm:$0xff]  ;;  %v30_v9 = vld [vmem:[%s920_s0 + $0x28] sm:$0xff] }
   0x3   :  { %45 = vadd.xlane.f32.xlu0 %v44_v3  ;;  %51 = vadd.xlane.f32.xlu1 %v50_v4  ;;  %v53_v7 = vsel %vm43_vm0, %v28_v5, 0.0  ;;  %v56_v10 = vsel %vm43_vm0, %v29_v8, 0.0  ;;  %v59_v11 = vsel %vm43_vm0, %v30_v9, 0.0 }
   0x7   :  { %48 = vadd.xlane.f32.xlu0 %v47_v6  ;;  %54 = vadd.xlane.f32.xlu1 %v53_v7 }
   0x8   :  { %11 = vsyncpa [#allocation3], 0  ;;  %v672_v12 = vld [vmem:[%s920_s0 + $0x30] sm:$0xff]  ;;  %v677_v13 = vld [vmem:[%s920_s0 + $0x38] sm:$0xff]  ;;  %vm607_vm1 = vmmov 0   ;;  %s609_s14 = smov [#allocation2]  }
   0x9   :  { %v62_v14 = vsel %vm43_vm0, %v672_v12, 0.0  ;;  %v65_v15 = vsel %vm43_vm0, %v677_v13, 0.0  ;;  %v686_v16 = vld [vmem:[%s920_s0 + $0x40] sm:$0xff]  ;;  %v691_v17 = vld [vmem:[%s920_s0 + $0x48] sm:$0xff]  ;;  %v700_v20 = vld [vmem:[%s920_s0 + $0x50] sm:$0xff]  ;;  %s443_s15 = sshll.u32 %s609_s14, 4  ;;  %s444_s15 = int_to_ptr.vmem [resolvable:$true] %s443_s15 }
   0xa   :  { %v68_v18 = vsel %vm43_vm0, %v686_v16, 0.0  ;;  %v71_v19 = vsel %vm43_vm0, %v691_v17, 0.0  ;;  %v705_v21 = vld [vmem:[%s920_s0 + $0x58] sm:$0xff]  ;;  %v74_v22 = vsel %vm43_vm0, %v700_v20, 0.0  ;;  %v714_v24 = vld [vmem:[%s920_s0 + $0x60] sm:$0xff]  ;;  %v719_v25 = vld [vmem:[%s920_s0 + $0x68] sm:$0xff]  ;;  %p587_p1 = scmp.lt.s32.totalorder %s444_s15, %s444_s15 }
   0xb   :  { %57 = vadd.xlane.f32.xlu0 %v56_v10  ;;  %60 = vadd.xlane.f32.xlu1 %v59_v11  ;;  %v77_v23 = vsel %vm43_vm0, %v705_v21, 0.0  ;;  %v80_v26 = vsel %vm43_vm0, %v714_v24, 0.0  ;;  %v83_v27 = vsel %vm43_vm0, %v719_v25, 0.0  ;;  %v728_v28 = vld [vmem:[%s920_s0 + $0x70] sm:$0xff]  ;;  %v733_v29 = vld [vmem:[%s920_s0 + $0x78] sm:$0xff]  ;;  %vm435_vm2 = vcmask 74752  }
   0xc   :  { %v86_v30 = vsel %vm43_vm0, %v728_v28, 0.0  ;;  %v89_v31 = vsel %vm43_vm0, %v733_v29, 0.0 }
   0xf   :  { %63 = vadd.xlane.f32.xlu0 %v62_v14  ;;  %66 = vadd.xlane.f32.xlu1 %v65_v15 }
  0x13   :  { %69 = vadd.xlane.f32.xlu0 %v68_v18  ;;  %72 = vadd.xlane.f32.xlu1 %v71_v19 }
  0x17   :  { %75 = vadd.xlane.f32.xlu0 %v74_v22  ;;  %78 = vadd.xlane.f32.xlu1 %v77_v23 }
  0x1b   :  { %81 = vadd.xlane.f32.xlu0 %v80_v26  ;;  %84 = vadd.xlane.f32.xlu1 %v83_v27 }
  0x1f   :  { %87 = vadd.xlane.f32.xlu0 %v86_v30  ;;  %90 = vadd.xlane.f32.xlu1 %v89_v31 }
  0x90   :  { %v46_v32 = vpop.xlane.xlu0 %45  ;;  %v52_v33 = vpop.xlane.xlu1 %51 }
  0x91   :  { %v93_v34 = vmul.f32 0.03125, %v46_v32  ;;  %v95_v35 = vmul.f32 0.03125, %v52_v33 }
  0x93   :  { %v739_v36 = vsub.f32 %v25_v0, %v93_v34  ;;  %v741_v37 = vsub.f32 %v27_v1, %v95_v35 }
  0x94   :  { %v49_v38 = vpop.xlane.xlu0 %48  ;;  %v55_v39 = vpop.xlane.xlu1 %54 }
  0x95   :  { %v94_v40 = vmul.f32 0.03125, %v49_v38  ;;  %v96_v41 = vmul.f32 0.03125, %v55_v39  ;;  %v125_v42 = vmul.f32 %v739_v36, %v739_v36  ;;  %v127_v43 = vmul.f32 %v741_v37, %v741_v37 }
  0x97   :  { %v747_v44 = vsub.f32 %v26_v2, %v94_v40  ;;  %v749_v45 = vsub.f32 %v28_v5, %v96_v41  ;;  %v141_v46 = vsel %vm43_vm0, %v125_v42, 0.0  ;;  %v147_v49 = vsel %vm43_vm0, %v127_v43, 0.0 }
  0x98   :  { %142 = vadd.xlane.f32.xlu0 %v141_v46  ;;  %v58_v47 = vpop.xlane.xlu0 %57  ;;  %v61_v48 = vpop.xlane.xlu1 %60 }
  0x99   :  { %v97_v50 = vmul.f32 0.03125, %v58_v47  ;;  %v98_v51 = vmul.f32 0.03125, %v61_v48  ;;  %v126_v52 = vmul.f32 %v747_v44, %v747_v44  ;;  %v128_v53 = vmul.f32 %v749_v45, %v749_v45 }
  0x9b   :  { %v757_v54 = vsub.f32 %v29_v8, %v97_v50  ;;  %v759_v55 = vsub.f32 %v30_v9, %v98_v51  ;;  %v144_v56 = vsel %vm43_vm0, %v126_v52, 0.0  ;;  %v150_v59 = vsel %vm43_vm0, %v128_v53, 0.0 }
  0x9c   :  { %148 = vadd.xlane.f32.xlu0 %v147_v49  ;;  %145 = vadd.xlane.f32.xlu1 %v144_v56  ;;  %v64_v57 = vpop.xlane.xlu0 %63  ;;  %v67_v58 = vpop.xlane.xlu1 %66  ;;  %v608_v53 = vmov 0.0   ;;  %v548_v56 = vld [vmem:[%s924_s4] sm:$0xff]  }
  0x9d   :  { %v99_v60 = vmul.f32 0.03125, %v64_v57  ;;  %v100_v61 = vmul.f32 0.03125, %v67_v58  ;;  %v129_v62 = vmul.f32 %v757_v54, %v757_v54  ;;  %v130_v63 = vmul.f32 %v759_v55, %v759_v55  ;;  %509 = vmatprep.mubr.msk.f32.mxu0 %vm607_vm1, %v608_v53  ;;  %512 = vmatprep.subr.bf16.mxu1 %v608_v53 }
  0x9e   :  { %516 = vmatprep.mubr.msk.bf16.mxu1 %vm607_vm1, %v608_v53  ;;  %513 = vmatpush3.bf16.msra.mxu1 %v548_v56 }
  0x9f   :  { %v768_v0 = vsub.f32 %v672_v12, %v99_v60  ;;  %v771_v1 = vsub.f32 %v677_v13, %v100_v61  ;;  %v153_v2 = vsel %vm43_vm0, %v129_v62, 0.0  ;;  %v156_v5 = vsel %vm43_vm0, %v130_v63, 0.0  ;;  %514 = vmatprep.subr.bf16.mxu1 %v608_v53 }
  0xa0   :  { %151 = vadd.xlane.f32.xlu1 %v150_v59  ;;  %154 = vadd.xlane.f32.xlu0 %v153_v2  ;;  %v70_v3 = vpop.xlane.xlu0 %69  ;;  %v73_v4 = vpop.xlane.xlu1 %72 }
  0xa1   :  { %v101_v6 = vmul.f32 0.03125, %v70_v3  ;;  %v102_v7 = vmul.f32 0.03125, %v73_v4  ;;  %v131_v8 = vmul.f32 %v768_v0, %v768_v0  ;;  %v132_v9 = vmul.f32 %v771_v1, %v771_v1 }
  0xa3   :  { %v780_v10 = vsub.f32 %v686_v16, %v101_v6  ;;  %v783_v11 = vsub.f32 %v691_v17, %v102_v7  ;;  %v159_v12 = vsel %vm43_vm0, %v131_v8, 0.0  ;;  %v162_v15 = vsel %vm43_vm0, %v132_v9, 0.0 }
  0xa4   :  { %157 = vadd.xlane.f32.xlu1 %v156_v5  ;;  %160 = vadd.xlane.f32.xlu0 %v159_v12  ;;  %v76_v13 = vpop.xlane.xlu0 %75  ;;  %v79_v14 = vpop.xlane.xlu1 %78 }
  0xa5   :  { %v103_v18 = vmul.f32 0.03125, %v76_v13  ;;  %v104_v19 = vmul.f32 0.03125, %v79_v14  ;;  %v133_v22 = vmul.f32 %v780_v10, %v780_v10  ;;  %v134_v16 = vmul.f32 %v783_v11, %v783_v11 }
  0xa7   :  { %v792_v23 = vsub.f32 %v700_v20, %v103_v18  ;;  %v795_v17 = vsub.f32 %v705_v21, %v104_v19  ;;  %v165_v26 = vsel %vm43_vm0, %v133_v22, 0.0  ;;  %v168_v31 = vsel %vm43_vm0, %v134_v16, 0.0 }
  0xa8   :  { %163 = vadd.xlane.f32.xlu1 %v162_v15  ;;  %166 = vadd.xlane.f32.xlu0 %v165_v26  ;;  %v82_v27 = vpop.xlane.xlu0 %81  ;;  %v85_v30 = vpop.xlane.xlu1 %84 }
  0xa9   :  { %v105_v32 = vmul.f32 0.03125, %v82_v27  ;;  %v106_v33 = vmul.f32 0.03125, %v85_v30  ;;  %v135_v34 = vmul.f32 %v792_v23, %v792_v23  ;;  %v136_v20 = vmul.f32 %v795_v17, %v795_v17 }
  0xab   :  { %v804_v35 = vsub.f32 %v714_v24, %v105_v32  ;;  %v807_v21 = vsub.f32 %v719_v25, %v106_v33  ;;  %v171_v38 = vsel %vm43_vm0, %v135_v34, 0.0  ;;  %v174_v41 = vsel %vm43_vm0, %v136_v20, 0.0  ;;  %v837_v32 = vld [vmem:[%s921_s1] ss:$0 sm:$0xff] }
  0xac   :  { %169 = vadd.xlane.f32.xlu1 %v168_v31  ;;  %172 = vadd.xlane.f32.xlu0 %v171_v38  ;;  %v88_v39 = vpop.xlane.xlu0 %87  ;;  %v91_v40 = vpop.xlane.xlu1 %90 }
  0xad   :  { %v107_v42 = vmul.f32 0.03125, %v88_v39  ;;  %v108_v43 = vmul.f32 0.03125, %v91_v40  ;;  %v137_v46 = vmul.f32 %v804_v35, %v804_v35  ;;  %v138_v24 = vmul.f32 %v807_v21, %v807_v21 }
  0xaf   :  { %v816_v47 = vsub.f32 %v728_v28, %v107_v42  ;;  %v819_v25 = vsub.f32 %v733_v29, %v108_v43  ;;  %v177_v48 = vsel %vm43_vm0, %v137_v46, 0.0  ;;  %v180_v49 = vsel %vm43_vm0, %v138_v24, 0.0  ;;  %v844_v46 = vld [vmem:[%s922_s2] ss:$0 sm:$0xff] }
  0xb0   :  { %175 = vadd.xlane.f32.xlu1 %v174_v41  ;;  %178 = vadd.xlane.f32.xlu0 %v177_v48  ;;  %v606_v29 = vmov 0.0|0.0  }
  0xb1   :  { %v139_v50 = vmul.f32 %v816_v47, %v816_v47  ;;  %v140_v51 = vmul.f32 %v819_v25, %v819_v25  ;;  %520 = vmatprep.subr.bf16.mxu0 %v606_v29 }
  0xb3   :  { %v183_v52 = vsel %vm43_vm0, %v139_v50, 0.0  ;;  %v186_v28 = vsel %vm43_vm0, %v140_v51, 0.0 }
  0xb4   :  { %181 = vadd.xlane.f32.xlu1 %v180_v49  ;;  %184 = vadd.xlane.f32.xlu0 %v183_v52 }
  0xb8   :  { %187 = vadd.xlane.f32.xlu1 %v186_v28 }
 0x125   :  { %v143_v57 = vpop.xlane.xlu0 %142 }
 0x126   :  { %v189_v58 = vmul.f32 0.03125, %v143_v57 }
 0x128   :  { %v205_v59 = vadd.f32 1e-05, %v189_v58 }
 0x129   :  { %v146_v60 = vpop.xlane.xlu1 %145  ;;  %v149_v61 = vpop.xlane.xlu0 %148 }
 0x12a   :  { %550 = vrsqrt.f32 %v205_v59  ;;  %v190_v62 = vmul.f32 0.03125, %v146_v60  ;;  %v191_v63 = vmul.f32 0.03125, %v149_v61 }
 0x12c   :  { %v206_v2 = vadd.f32 1e-05, %v190_v62  ;;  %v207_v3 = vadd.f32 1e-05, %v191_v63 }
 0x12d   :  { %v152_v4 = vpop.xlane.xlu1 %151  ;;  %v155_v5 = vpop.xlane.xlu0 %154 }
 0x12e   :  { %552 = vrsqrt.f32 %v206_v2  ;;  %v192_v6 = vmul.f32 0.03125, %v152_v4  ;;  %v193_v7 = vmul.f32 0.03125, %v155_v5 }
 0x12f   :  { %554 = vrsqrt.f32 %v207_v3 }
 0x130   :  { %v208_v8 = vadd.f32 1e-05, %v192_v6  ;;  %v209_v9 = vadd.f32 1e-05, %v193_v7 }
 0x131   :  { %v158_v12 = vpop.xlane.xlu1 %157  ;;  %v161_v13 = vpop.xlane.xlu0 %160 }
 0x132   :  { %556 = vrsqrt.f32 %v208_v8  ;;  %v194_v14 = vmul.f32 0.03125, %v158_v12  ;;  %v195_v15 = vmul.f32 0.03125, %v161_v13 }
 0x133   :  { %558 = vrsqrt.f32 %v209_v9 }
 0x134   :  { %v551_v18 = vpop.eup %550  ;;  %v210_v19 = vadd.f32 1e-05, %v194_v14  ;;  %v211_v22 = vadd.f32 1e-05, %v195_v15 }
 0x135   :  { %v164_v16 = vpop.xlane.xlu1 %163  ;;  %v167_v26 = vpop.xlane.xlu0 %166  ;;  %v237_v27 = vmul.f32 %v551_v18, %v739_v36 }
 0x136   :  { %560 = vrsqrt.f32 %v210_v19  ;;  %v196_v30 = vmul.f32 0.03125, %v164_v16  ;;  %v197_v31 = vmul.f32 0.03125, %v167_v26 }
 0x137   :  { %562 = vrsqrt.f32 %v211_v22  ;;  %v259_v42 = vmul.f32 %v837_v32, %v237_v27 }
 0x138   :  { %v553_v33 = vpop.eup %552  ;;  %v212_v34 = vadd.f32 1e-05, %v196_v30  ;;  %v213_v20 = vadd.f32 1e-05, %v197_v31 }
 0x139   :  { %v555_v38 = vpop.eup %554  ;;  %v170_v39 = vpop.xlane.xlu1 %169  ;;  %v238_v41 = vmul.f32 %v553_v33, %v747_v44  ;;  %v281_v53 = vadd.f32 %v844_v46, %v259_v42 }
 0x13a   :  { %v173_v40 = vpop.xlane.xlu0 %172  ;;  %564 = vrsqrt.f32 %v212_v34  ;;  %v198_v36 = vmul.f32 0.03125, %v170_v39  ;;  %v239_v24 = vmul.f32 %v555_v38, %v741_v37 }
 0x13b   :  { %v199_v43 = vmul.f32 0.03125, %v173_v40  ;;  %566 = vrsqrt.f32 %v213_v20  ;;  %v260_v48 = vmul.f32 %v837_v32, %v238_v41 }
 0x13c   :  { %v557_v49 = vpop.eup %556  ;;  %v214_v50 = vadd.f32 1e-05, %v198_v36  ;;  %v261_v58 = vmul.f32 %v837_v32, %v239_v24 }
 0x13d   :  { %v215_v51 = vadd.f32 1e-05, %v199_v43  ;;  %v559_v52 = vpop.eup %558  ;;  %v176_v44 = vpop.xlane.xlu1 %175  ;;  %v282_v56 = vadd.f32 %v844_v46, %v260_v48  ;;  %v240_v57 = vmul.f32 %v557_v49, %v749_v45 }
 0x13e   :  { %v179_v28 = vpop.xlane.xlu0 %178  ;;  %568 = vrsqrt.f32 %v214_v50  ;;  %v200_v59 = vmul.f32 0.03125, %v176_v44  ;;  %v241_v62 = vmul.f32 %v559_v52, %v757_v54  ;;  %v283_v45 = vadd.f32 %v844_v46, %v261_v58 }
 0x13f   :  { %v201_v37 = vmul.f32 0.03125, %v179_v28  ;;  %570 = vrsqrt.f32 %v215_v51  ;;  %v521_v60 = vpack.c.bf16 %v282_v56, %v281_v53  ;;  %v262_v61 = vmul.f32 %v837_v32, %v240_v57 }
 0x140   :  { %v561_v63 = vpop.eup %560  ;;  %v216_v2 = vadd.f32 1e-05, %v200_v59  ;;  %v263_v9 = vmul.f32 %v837_v32, %v241_v62 }
 0x141   :  { %v217_v3 = vadd.f32 1e-05, %v201_v37  ;;  %v563_v4 = vpop.eup %562  ;;  %v182_v5 = vpop.xlane.xlu1 %181  ;;  %522 = vmatpush3.bf16.msra.mxu0 %v521_v60  ;;  %v284_v7 = vadd.f32 %v844_v46, %v262_v61  ;;  %v242_v8 = vmul.f32 %v561_v63, %v759_v55 }
 0x142   :  { %v185_v6 = vpop.xlane.xlu0 %184  ;;  %572 = vrsqrt.f32 %v216_v2  ;;  %v202_v12 = vmul.f32 0.03125, %v182_v5  ;;  %523 = vmatprep.subr.bf16.mxu0 %v606_v29  ;;  %v243_v54 = vmul.f32 %v563_v4, %v768_v0  ;;  %v285_v55 = vadd.f32 %v844_v46, %v263_v9 }
 0x143   :  { %v203_v13 = vmul.f32 0.03125, %v185_v6  ;;  %574 = vrsqrt.f32 %v217_v3  ;;  %v524_v14 = vpack.c.bf16 %v284_v7, %v283_v45  ;;  %v264_v15 = vmul.f32 %v837_v32, %v242_v8  ;;  %v549_v45 = vld [vmem:[%s924_s4 + $0x8] sm:$0xff]  }
 0x144   :  { %v565_v18 = vpop.eup %564  ;;  %v218_v19 = vadd.f32 1e-05, %v202_v12  ;;  %v265_v31 = vmul.f32 %v837_v32, %v243_v54  ;;  %515 = vmatpush3.bf16.msra.mxu1 %v549_v45 }
 0x145   :  { %v219_v22 = vadd.f32 1e-05, %v203_v13  ;;  %v567_v16 = vpop.eup %566  ;;  %v188_v26 = vpop.xlane.xlu1 %187  ;;  %525 = vmatpush3.bf16.msra.mxu0 %v524_v14  ;;  %v286_v27 = vadd.f32 %v844_v46, %v264_v15  ;;  %v244_v30 = vmul.f32 %v565_v18, %v771_v1 }
 0x146   :  { %576 = vrsqrt.f32 %v218_v19  ;;  %v204_v0 = vmul.f32 0.03125, %v188_v26  ;;  %526 = vmatprep.subr.bf16.mxu0 %v606_v29  ;;  %v245_v33 = vmul.f32 %v567_v16, %v780_v10  ;;  %v287_v41 = vadd.f32 %v844_v46, %v265_v31 }
 0x147   :  { %578 = vrsqrt.f32 %v219_v22  ;;  %v527_v34 = vpack.c.bf16 %v286_v27, %v285_v55  ;;  %v266_v20 = vmul.f32 %v837_v32, %v244_v30 }
 0x148   :  { %v569_v38 = vpop.eup %568  ;;  %v220_v39 = vadd.f32 1e-05, %v204_v0  ;;  %v267_v36 = vmul.f32 %v837_v32, %v245_v33 }
 0x149   :  { %v571_v40 = vpop.eup %570  ;;  %528 = vmatpush3.bf16.msra.mxu0 %v527_v34  ;;  %v288_v1 = vadd.f32 %v844_v46, %v266_v20  ;;  %v246_v42 = vmul.f32 %v569_v38, %v783_v11 }
 0x14a   :  { %580 = vrsqrt.f32 %v220_v39  ;;  %529 = vmatprep.subr.bf16.mxu0 %v606_v29  ;;  %v247_v10 = vmul.f32 %v571_v40, %v792_v23  ;;  %v289_v50 = vadd.f32 %v844_v46, %v267_v36 }
 0x14b   :  { %v530_v43 = vpack.c.bf16 %v288_v1, %v287_v41  ;;  %v268_v24 = vmul.f32 %v837_v32, %v246_v42 }
 0x14c   :  { %v573_v48 = vpop.eup %572  ;;  %v269_v11 = vmul.f32 %v837_v32, %v247_v10 }
 0x14d   :  { %v575_v49 = vpop.eup %574  ;;  %531 = vmatpush3.bf16.msra.mxu0 %v530_v43  ;;  %v290_v51 = vadd.f32 %v844_v46, %v268_v24  ;;  %v248_v52 = vmul.f32 %v573_v48, %v795_v17 }
 0x14e   :  { %532 = vmatprep.subr.bf16.mxu0 %v606_v29  ;;  %v249_v44 = vmul.f32 %v575_v49, %v804_v35  ;;  %v291_v57 = vadd.f32 %v844_v46, %v269_v11 }
 0x14f   :  { %v533_v28 = vpack.c.bf16 %v290_v51, %v289_v50  ;;  %v270_v23 = vmul.f32 %v837_v32, %v248_v52 }
 0x150   :  { %v577_v53 = vpop.eup %576  ;;  %v271_v17 = vmul.f32 %v837_v32, %v249_v44 }
 0x151   :  { %v579_v56 = vpop.eup %578  ;;  %534 = vmatpush3.bf16.msra.mxu0 %v533_v28  ;;  %v292_v58 = vadd.f32 %v844_v46, %v270_v23  ;;  %v250_v59 = vmul.f32 %v577_v53, %v807_v21 }
 0x152   :  { %535 = vmatprep.subr.bf16.mxu0 %v606_v29  ;;  %v251_v37 = vmul.f32 %v579_v56, %v816_v47  ;;  %v293_v62 = vadd.f32 %v844_v46, %v271_v17 }
 0x153   :  { %v536_v60 = vpack.c.bf16 %v292_v58, %v291_v57  ;;  %v272_v35 = vmul.f32 %v837_v32, %v250_v59 }
 0x154   :  { %v581_v61 = vpop.eup %580  ;;  %v273_v3 = vmul.f32 %v837_v32, %v251_v37 }
 0x155   :  { %537 = vmatpush3.bf16.msra.mxu0 %v536_v60  ;;  %v294_v63 = vadd.f32 %v844_v46, %v272_v35  ;;  %v252_v2 = vmul.f32 %v581_v61, %v819_v25  ;;  %v297_v25 = vld [vmem:[%s923_s3] sm:$0x3]  ;;  %s582_s3 = scalar_lea.vmem %s444_s15, 32 }
 0x156   :  { %538 = vmatprep.subr.bf16.mxu0 %v606_v29  ;;  %v295_v47 = vadd.f32 %v844_v46, %v273_v3  ;;  %p583_p0 = scmp.ne.s32.totalorder %s444_s15, %s582_s3  ;;  %p588_p2 = scmp.lt.s32.totalorder %s582_s3, %s582_s3 }
 0x157   :  { %v539_v21 = vpack.c.bf16 %v294_v63, %v293_v62  ;;  %v274_v4 = vmul.f32 %v837_v32, %v252_v2 }
 0x158   :  { %p589_p3 = por %p588_p2, %p587_p1 }
 0x159   :  { %540 = vmatpush3.bf16.msra.mxu0 %v539_v21  ;;  %v296_v5 = vadd.f32 %v844_v46, %v274_v4 }
 0x15a   :  { %541 = vmatprep.subr.bf16.mxu0 %v606_v29  ;;  %v453_v29 = vld [vmem:[%s925_s5] ss:$0 sm:$0xff]  ;;  %p590_p4 = pnand %p589_p3, %p583_p0 }
 0x15b   :  { %v542_v6 = vpack.c.bf16 %v296_v5, %v295_v47 }
 0x15d   :  { %543 = vmatpush3.bf16.msra.mxu0 %v542_v6 }
 0x160   :  { %510 = vmatmul.mubr.f32.vlgmr.msra.gmra.mrb[0].mxu0 %v297_v25 }
 0x233   :  { %v364_v32 = vpop.f32.mrb[0].mxu0 }
 0x234   :  { %v368_v7 = vpack.c.bf16 %v364_v32, %v364_v32  ;;  %v511_v8 = vpop.f32.mrb[1].mxu0 }
 0x236   :  { %517 = vmatmul.mubr.msk.bf16.vlgmr.msra.gmra.mrb[0].mxu1 %vm43_vm0, %v368_v7 }
 0x309   :  { %v429_v46 = vpop.f32.mrb[0].mxu1 }
 0x30a   :  { %v430_v9 = vadd.f32 %v453_v29, %v429_v46  ;;  %v518_v12 = vpop.f32.mrb[1].mxu1 }
 0x30b   :  { %v432_v13 = vpop.f32.mrb[2].mxu1 }
 0x30c   :  { %v519_v54 = vpop.f32.mrb[3].mxu1  ;;  %436 = vst.msk [vmem:[#allocation2] sm:$0x3] %vm435_vm2, %v430_v9 }
 0x30d   :  { %593 = shalt.err (!%p590_p4)
}
 0x30e   :  { %s594_s5 = scalar_lea.hbm %s926_s6, 32 }
 0x30f   :  { %p595_p5 = scmp.ne.s32.totalorder %s926_s6, %s594_s5  ;;  %p598_p6 = scmp.lt.u32.totalorder %s594_s5, %s926_s6 }
 0x311   :  { %p600_p7 = pnand %p598_p6, %p595_p5 }
 0x313   :  { %603 = shalt.err (!%p600_p7)
}
 0x314   :  { %446 = dma.vmem_to_hbm [thread:$0]  %s444_s15, 32, %s926_s6, [#allocation3]  }
 0x315   :  { %604 = dma.done.wait [#allocation3], 32  }
 0x316   :  { %605 = vsyncadd [#allocation3], 4294967264 }
 0x317   :  { %450 = vsyncpa [#allocation3], 1 }

// kernel: _lambda_.4
= control target key start
LH: loop header
LB: loop body
LE: loop exit
PB: predicated region body
PF: predicated region fallthrough
CT: control target
= control target key end

     0   :  { %vm76_vm0 = vcmask 392192   ;;  %vm200_vm1 = vcmask 261120   ;;  %s942_s1 = inlined_call_operand.vmem [shape: bf16[48,32], index: 1, kind: input, shape index: {}]   ;;  %s943_s0 = inlined_call_operand.vmem [shape: f32[128,48], index: 0, kind: input, shape index: {}]   ;;  %s944_s2 = inlined_call_operand.vmem [shape: f32[1,32], index: 2, kind: input, shape index: {}]   ;;  %s945_s3 = inlined_call_operand.vmem [shape: f32[1,32], index: 3, kind: input, shape index: {}]   ;;  %s946_s4 = inlined_call_operand.vmem [shape: f32[1,32], index: 4, kind: input, shape index: {}]   ;;  %s947_s5 = inlined_call_operand.vmem [shape: f32[128,32], index: 5, kind: output, shape index: {}]  }
   0x1   :  { %v527_v0 = vld [vmem:[%s942_s1] sm:$0xff]   ;;  %v528_v1 = vld [vmem:[%s942_s1 + $0x8] sm:$0xff]   ;;  %v529_v5 = vld [vmem:[%s942_s1 + $0x10] sm:$0xff]  }
   0x2   :  { %499 = vmatprep.subr.bf16.mxu0 %v527_v0  ;;  %521 = vmatprep.subr.bf16.mxu1 %v527_v0  ;;  %v21_v2 = vld [vmem:[%s943_s0] sm:$0xff]  ;;  %v22_v3 = vld [vmem:[%s943_s0 + $0x8] sm:$0xff]  ;;  %v23_v9 = vld [vmem:[%s943_s0 + $0x10] sm:$0xff] }
   0x3   :  { %500 = vmatpush3.bf16.msra.mxu0 %v527_v0  ;;  %524 = vmatpush3.bf16.msra.mxu1 %v527_v0  ;;  %v29_v4 = vld [vmem:[%s943_s0 + $0x40] sm:$0xff]  ;;  %v37_v6 = vpack.c.bf16 %v22_v3, %v21_v2  ;;  %v30_v7 = vld [vmem:[%s943_s0 + $0x48] sm:$0xff]  ;;  %v24_v10 = vld [vmem:[%s943_s0 + $0x18] sm:$0xff] }
   0x4   :  { %501 = vmatprep.subr.bf16.mxu0 %v528_v1  ;;  %522 = vmatprep.subr.bf16.mxu1 %v528_v1  ;;  %v41_v8 = vpack.c.bf16 %v30_v7, %v29_v4  ;;  %v31_v11 = vld [vmem:[%s943_s0 + $0x50] sm:$0xff]  ;;  %v32_v12 = vld [vmem:[%s943_s0 + $0x58] sm:$0xff]  ;;  %v25_v13 = vld [vmem:[%s943_s0 + $0x20] sm:$0xff]  ;;  %v38_v17 = vpack.c.bf16 %v24_v10, %v23_v9 }
   0x5   :  { %505 = vmatprep.mubr.msk.bf16.mxu0 %vm76_vm0, %v37_v6  ;;  %v26_v14 = vld [vmem:[%s943_s0 + $0x28] sm:$0xff]  ;;  %v33_v15 = vld [vmem:[%s943_s0 + $0x60] sm:$0xff]  ;;  %v42_v18 = vpack.c.bf16 %v32_v12, %v31_v11  ;;  %v27_v21 = vld [vmem:[%s943_s0 + $0x30] sm:$0xff] }
   0x6   :  { %v34_v16 = vld [vmem:[%s943_s0 + $0x68] sm:$0xff]  ;;  %513 = vmatprep.mubr.msk.bf16.mxu1 %vm76_vm0, %v41_v8  ;;  %v39_v19 = vpack.c.bf16 %v26_v14, %v25_v13  ;;  %v28_v22 = vld [vmem:[%s943_s0 + $0x38] sm:$0xff]  ;;  %v35_v23 = vld [vmem:[%s943_s0 + $0x70] sm:$0xff] }
   0x7   :  { %502 = vmatpush3.bf16.msra.mxu0 %v528_v1  ;;  %525 = vmatpush3.bf16.msra.mxu1 %v528_v1  ;;  %v43_v20 = vpack.c.bf16 %v34_v16, %v33_v15  ;;  %v36_v24 = vld [vmem:[%s943_s0 + $0x78] sm:$0xff]  ;;  %v40_v25 = vpack.c.bf16 %v28_v22, %v27_v21  ;;  %v474_v27 = vld [vmem:[%s944_s2] ss:$0 sm:$0xff] }
   0x8   :  { %503 = vmatprep.subr.bf16.mxu0 %v529_v5  ;;  %523 = vmatprep.subr.bf16.mxu1 %v529_v5  ;;  %v44_v26 = vpack.c.bf16 %v36_v24, %v35_v23 }
   0xb   :  { %504 = vmatpush3.bf16.msra.mxu0 %v529_v5  ;;  %526 = vmatpush3.bf16.msra.mxu1 %v529_v5 }
   0xe   :  { %506 = vmatmul.mubr.msk.bf16.vlgmr.msra.gmra.mrb[0].mxu0 %vm76_vm0, %v38_v17  ;;  %514 = vmatmul.mubr.msk.bf16.vlgmr.msra.gmra.mrb[0].mxu1 %vm76_vm0, %v42_v18 }
   0xf   :  { %509 = vmatprep.mubr.msk.bf16.mxu0 %vm76_vm0, %v39_v19  ;;  %517 = vmatprep.mubr.msk.bf16.mxu1 %vm76_vm0, %v43_v20 }
  0x16   :  { %510 = vmatmul.mubr.msk.bf16.gmra.mrb[4].mxu0 %vm76_vm0, %v40_v25  ;;  %518 = vmatmul.mubr.msk.bf16.gmra.mrb[4].mxu1 %vm76_vm0, %v44_v26 }
  0xe1   :  { %v507_v28 = vpop.f32.mrb[0].mxu0  ;;  %v515_v29 = vpop.f32.mrb[0].mxu1 }
  0xe2   :  { %v660_v30 = vadd.f32 %v507_v28, %v474_v27  ;;  %v662_v31 = vadd.f32 %v515_v29, %v474_v27  ;;  %v135_v32 = vpop.f32.mrb[1].mxu0  ;;  %v167_v33 = vpop.f32.mrb[1].mxu1 }
  0xe3   :  { %v508_v34 = vpop.f32.mrb[2].mxu0  ;;  %v516_v35 = vpop.f32.mrb[2].mxu1  ;;  %v664_v36 = vadd.f32 %v474_v27, %v135_v32  ;;  %v672_v42 = vadd.f32 %v474_v27, %v167_v33 }
  0xe4   :  { %v666_v37 = vadd.f32 %v508_v34, %v474_v27  ;;  %v138_v38 = vpop.f32.mrb[3].mxu0  ;;  %v170_v39 = vpop.f32.mrb[3].mxu1  ;;  %v231_v40 = vsel %vm200_vm1, %v662_v31, 0.0  ;;  %v207_v41 = vsel %vm200_vm1, %v660_v30, 0.0  ;;  %v674_v43 = vadd.f32 %v516_v35, %v474_v27 }
  0xe5   :  { %232 = vadd.xlane.f32.xlu0 %v231_v40  ;;  %208 = vadd.xlane.f32.xlu1 %v207_v41  ;;  %v201_v45 = vsel %vm200_vm1, %v664_v36, 0.0  ;;  %v680_v52 = vadd.f32 %v474_v27, %v138_v38  ;;  %v682_v53 = vadd.f32 %v474_v27, %v170_v39  ;;  %v225_v55 = vsel %vm200_vm1, %v672_v42, 0.0 }
  0xe6   :  { %v210_v44 = vsel %vm200_vm1, %v666_v37, 0.0  ;;  %v234_v54 = vsel %vm200_vm1, %v674_v43, 0.0 }
  0xe7   :  { %v228_v60 = vsel %vm200_vm1, %v682_v53, 0.0  ;;  %v204_v61 = vsel %vm200_vm1, %v680_v52, 0.0 }
  0xe9   :  { %211 = vadd.xlane.f32.xlu1 %v210_v44  ;;  %202 = vadd.xlane.f32.xlu0 %v201_v45  ;;  %v511_v46 = vpop.f32.mrb[4].mxu0  ;;  %v519_v47 = vpop.f32.mrb[4].mxu1 }
  0xea   :  { %v151_v48 = vpop.f32.mrb[5].mxu0  ;;  %v183_v49 = vpop.f32.mrb[5].mxu1  ;;  %v688_v58 = vadd.f32 %v511_v46, %v474_v27  ;;  %v716_v8 = vadd.f32 %v519_v47, %v474_v27 }
  0xeb   :  { %v512_v50 = vpop.f32.mrb[6].mxu0  ;;  %v520_v51 = vpop.f32.mrb[6].mxu1  ;;  %v700_v0 = vadd.f32 %v474_v27, %v151_v48  ;;  %v704_v2 = vadd.f32 %v474_v27, %v183_v49 }
  0xec   :  { %v154_v56 = vpop.f32.mrb[7].mxu0  ;;  %v186_v57 = vpop.f32.mrb[7].mxu1  ;;  %v690_v59 = vadd.f32 %v512_v50, %v474_v27  ;;  %v219_v63 = vsel %vm200_vm1, %v688_v58, 0.0  ;;  %v718_v9 = vadd.f32 %v520_v51, %v474_v27  ;;  %v243_v11 = vsel %vm200_vm1, %v716_v8, 0.0 }
  0xed   :  { %235 = vadd.xlane.f32.xlu1 %v234_v54  ;;  %226 = vadd.xlane.f32.xlu0 %v225_v55  ;;  %v702_v1 = vadd.f32 %v474_v27, %v154_v56  ;;  %v706_v3 = vadd.f32 %v474_v27, %v186_v57  ;;  %v213_v5 = vsel %vm200_vm1, %v700_v0, 0.0  ;;  %v237_v7 = vsel %vm200_vm1, %v704_v2, 0.0 }
  0xee   :  { %v222_v62 = vsel %vm200_vm1, %v690_v59, 0.0  ;;  %v246_v10 = vsel %vm200_vm1, %v718_v9, 0.0 }
  0xef   :  { %v216_v4 = vsel %vm200_vm1, %v702_v1, 0.0  ;;  %v240_v6 = vsel %vm200_vm1, %v706_v3, 0.0 }
  0xf1   :  { %229 = vadd.xlane.f32.xlu1 %v228_v60  ;;  %205 = vadd.xlane.f32.xlu0 %v204_v61 }
  0xf5   :  { %223 = vadd.xlane.f32.xlu1 %v222_v62  ;;  %220 = vadd.xlane.f32.xlu0 %v219_v63 }
  0xf9   :  { %217 = vadd.xlane.f32.xlu1 %v216_v4  ;;  %214 = vadd.xlane.f32.xlu0 %v213_v5 }
  0xfd   :  { %241 = vadd.xlane.f32.xlu1 %v240_v6  ;;  %238 = vadd.xlane.f32.xlu0 %v237_v7 }
 0x101   :  { %247 = vadd.xlane.f32.xlu1 %v246_v10  ;;  %244 = vadd.xlane.f32.xlu0 %v243_v11 }
 0x172   :  { %v233_v12 = vpop.xlane.xlu0 %232  ;;  %v209_v13 = vpop.xlane.xlu1 %208 }
 0x173   :  { %v260_v14 = vmul.f32 0.03125, %v233_v12  ;;  %v252_v15 = vmul.f32 0.03125, %v209_v13 }
 0x175   :  { %v725_v16 = vsub.f32 %v662_v31, %v260_v14  ;;  %v728_v17 = vsub.f32 %v660_v30, %v252_v15 }
 0x176   :  { %v212_v18 = vpop.xlane.xlu1 %211  ;;  %v203_v19 = vpop.xlane.xlu0 %202 }
 0x177   :  { %v253_v20 = vmul.f32 0.03125, %v212_v18  ;;  %v250_v21 = vmul.f32 0.03125, %v203_v19  ;;  %v284_v22 = vmul.f32 %v728_v17, %v728_v17  ;;  %v292_v26 = vmul.f32 %v725_v16, %v725_v16 }
 0x179   :  { %v733_v23 = vsub.f32 %v666_v37, %v253_v20  ;;  %v736_v24 = vsub.f32 %v664_v36, %v250_v21  ;;  %v304_v25 = vsel %vm200_vm1, %v284_v22, 0.0  ;;  %v328_v36 = vsel %vm200_vm1, %v292_v26, 0.0 }
 0x17a   :  { %v236_v27 = vpop.xlane.xlu1 %235  ;;  %305 = vadd.xlane.f32.xlu0 %v304_v25  ;;  %v227_v28 = vpop.xlane.xlu0 %226 }
 0x17b   :  { %v261_v29 = vmul.f32 0.03125, %v236_v27  ;;  %v258_v30 = vmul.f32 0.03125, %v227_v28  ;;  %v285_v31 = vmul.f32 %v733_v23, %v733_v23  ;;  %v282_v32 = vmul.f32 %v736_v24, %v736_v24 }
 0x17d   :  { %v746_v33 = vsub.f32 %v674_v43, %v261_v29  ;;  %v749_v34 = vsub.f32 %v672_v42, %v258_v30  ;;  %v307_v35 = vsel %vm200_vm1, %v285_v31, 0.0  ;;  %v298_v44 = vsel %vm200_vm1, %v282_v32, 0.0 }
 0x17e   :  { %v230_v37 = vpop.xlane.xlu1 %229  ;;  %308 = vadd.xlane.f32.xlu1 %v307_v35  ;;  %329 = vadd.xlane.f32.xlu0 %v328_v36  ;;  %v206_v38 = vpop.xlane.xlu0 %205 }
 0x17f   :  { %v259_v39 = vmul.f32 0.03125, %v230_v37  ;;  %v251_v40 = vmul.f32 0.03125, %v206_v38  ;;  %v293_v41 = vmul.f32 %v746_v33, %v746_v33  ;;  %v290_v46 = vmul.f32 %v749_v34, %v749_v34 }
 0x181   :  { %v757_v43 = vsub.f32 %v682_v53, %v259_v39  ;;  %v760_v42 = vsub.f32 %v680_v52, %v251_v40  ;;  %v331_v45 = vsel %vm200_vm1, %v293_v41, 0.0  ;;  %v322_v55 = vsel %vm200_vm1, %v290_v46, 0.0 }
 0x182   :  { %v224_v47 = vpop.xlane.xlu1 %223  ;;  %332 = vadd.xlane.f32.xlu1 %v331_v45  ;;  %299 = vadd.xlane.f32.xlu0 %v298_v44  ;;  %v221_v48 = vpop.xlane.xlu0 %220 }
 0x183   :  { %v257_v49 = vmul.f32 0.03125, %v224_v47  ;;  %v256_v50 = vmul.f32 0.03125, %v221_v48  ;;  %v283_v51 = vmul.f32 %v760_v42, %v760_v42  ;;  %v291_v53 = vmul.f32 %v757_v43, %v757_v43 }
 0x185   :  { %v770_v52 = vsub.f32 %v690_v59, %v257_v49  ;;  %v773_v54 = vsub.f32 %v688_v58, %v256_v50  ;;  %v301_v56 = vsel %vm200_vm1, %v283_v51, 0.0  ;;  %v325_v4 = vsel %vm200_vm1, %v291_v53, 0.0 }
 0x186   :  { %v218_v57 = vpop.xlane.xlu1 %217  ;;  %323 = vadd.xlane.f32.xlu0 %v322_v55  ;;  %302 = vadd.xlane.f32.xlu1 %v301_v56  ;;  %v215_v60 = vpop.xlane.xlu0 %214 }
 0x187   :  { %v255_v61 = vmul.f32 0.03125, %v218_v57  ;;  %v254_v62 = vmul.f32 0.03125, %v215_v60  ;;  %v288_v63 = vmul.f32 %v773_v54, %v773_v54  ;;  %v289_v6 = vmul.f32 %v770_v52, %v770_v52  ;;  %v823_v60 = vld [vmem:[%s945_s3] ss:$0 sm:$0xff] }
 0x189   :  { %v781_v59 = vsub.f32 %v702_v1, %v255_v61  ;;  %v784_v58 = vsub.f32 %v700_v0, %v254_v62  ;;  %v316_v5 = vsel %vm200_vm1, %v288_v63, 0.0  ;;  %v319_v15 = vsel %vm200_vm1, %v289_v6, 0.0  ;;  %v829_v6 = vld [vmem:[%s946_s4] ss:$0 sm:$0xff] }
 0x18a   :  { %v242_v7 = vpop.xlane.xlu1 %241  ;;  %326 = vadd.xlane.f32.xlu1 %v325_v4  ;;  %317 = vadd.xlane.f32.xlu0 %v316_v5  ;;  %v239_v10 = vpop.xlane.xlu0 %238 }
 0x18b   :  { %v263_v11 = vmul.f32 0.03125, %v242_v7  ;;  %v262_v12 = vmul.f32 0.03125, %v239_v10  ;;  %v286_v13 = vmul.f32 %v784_v58, %v784_v58  ;;  %v287_v1 = vmul.f32 %v781_v59, %v781_v59 }
 0x18d   :  { %v794_v0 = vsub.f32 %v706_v3, %v263_v11  ;;  %v797_v14 = vsub.f32 %v704_v2, %v262_v12  ;;  %v310_v18 = vsel %vm200_vm1, %v286_v13, 0.0  ;;  %v313_v26 = vsel %vm200_vm1, %v287_v1, 0.0 }
 0x18e   :  { %v248_v19 = vpop.xlane.xlu1 %247  ;;  %320 = vadd.xlane.f32.xlu1 %v319_v15  ;;  %311 = vadd.xlane.f32.xlu0 %v310_v18  ;;  %v245_v20 = vpop.xlane.xlu0 %244 }
 0x18f   :  { %v265_v21 = vmul.f32 0.03125, %v248_v19  ;;  %v264_v22 = vmul.f32 0.03125, %v245_v20  ;;  %v294_v25 = vmul.f32 %v797_v14, %v797_v14  ;;  %v295_v28 = vmul.f32 %v794_v0, %v794_v0 }
 0x191   :  { %v805_v3 = vsub.f32 %v718_v9, %v265_v21  ;;  %v808_v2 = vsub.f32 %v716_v8, %v264_v22  ;;  %v334_v27 = vsel %vm200_vm1, %v294_v25, 0.0  ;;  %v337_v30 = vsel %vm200_vm1, %v295_v28, 0.0 }
 0x192   :  { %314 = vadd.xlane.f32.xlu1 %v313_v26  ;;  %335 = vadd.xlane.f32.xlu0 %v334_v27 }
 0x193   :  { %v296_v29 = vmul.f32 %v808_v2, %v808_v2  ;;  %v297_v9 = vmul.f32 %v805_v3, %v805_v3 }
 0x195   :  { %v340_v31 = vsel %vm200_vm1, %v296_v29, 0.0  ;;  %v343_v8 = vsel %vm200_vm1, %v297_v9, 0.0 }
 0x196   :  { %338 = vadd.xlane.f32.xlu1 %v337_v30  ;;  %341 = vadd.xlane.f32.xlu0 %v340_v31 }
 0x19a   :  { %344 = vadd.xlane.f32.xlu1 %v343_v8 }
 0x207   :  { %v306_v32 = vpop.xlane.xlu0 %305 }
 0x208   :  { %v348_v35 = vmul.f32 0.03125, %v306_v32 }
 0x20a   :  { %v364_v36 = vadd.f32 1e-05, %v348_v35 }
 0x20b   :  { %v309_v37 = vpop.xlane.xlu1 %308  ;;  %v330_v38 = vpop.xlane.xlu0 %329 }
 0x20c   :  { %530 = vrsqrt.f32 %v364_v36  ;;  %v349_v39 = vmul.f32 0.03125, %v309_v37  ;;  %v356_v40 = vmul.f32 0.03125, %v330_v38 }
 0x20e   :  { %v365_v41 = vadd.f32 1e-05, %v349_v39  ;;  %v372_v44 = vadd.f32 1e-05, %v356_v40 }
 0x20f   :  { %v333_v45 = vpop.xlane.xlu1 %332  ;;  %v300_v46 = vpop.xlane.xlu0 %299 }
 0x210   :  { %532 = vrsqrt.f32 %v365_v41  ;;  %v357_v47 = vmul.f32 0.03125, %v333_v45  ;;  %v346_v48 = vmul.f32 0.03125, %v300_v46 }
 0x211   :  { %534 = vrsqrt.f32 %v372_v44 }
 0x212   :  { %v373_v49 = vadd.f32 1e-05, %v357_v47  ;;  %v362_v50 = vadd.f32 1e-05, %v346_v48 }
 0x213   :  { %v303_v51 = vpop.xlane.xlu1 %302  ;;  %v324_v53 = vpop.xlane.xlu0 %323 }
 0x214   :  { %536 = vrsqrt.f32 %v373_v49  ;;  %v347_v55 = vmul.f32 0.03125, %v303_v51  ;;  %v354_v56 = vmul.f32 0.03125, %v324_v53 }
 0x215   :  { %538 = vrsqrt.f32 %v362_v50 }
 0x216   :  { %v531_v57 = vpop.eup %530  ;;  %v363_v61 = vadd.f32 1e-05, %v347_v55  ;;  %v370_v62 = vadd.f32 1e-05, %v354_v56 }
 0x217   :  { %v396_v63 = vmul.f32 %v531_v57, %v728_v17  ;;  %v327_v4 = vpop.xlane.xlu1 %326  ;;  %v318_v5 = vpop.xlane.xlu0 %317 }
 0x218   :  { %540 = vrsqrt.f32 %v363_v61  ;;  %v355_v7 = vmul.f32 0.03125, %v327_v4  ;;  %v352_v10 = vmul.f32 0.03125, %v318_v5 }
 0x219   :  { %v418_v11 = vmul.f32 %v823_v60, %v396_v63  ;;  %542 = vrsqrt.f32 %v370_v62 }
 0x21a   :  { %v533_v12 = vpop.eup %532  ;;  %v371_v13 = vadd.f32 1e-05, %v355_v7  ;;  %v368_v1 = vadd.f32 1e-05, %v352_v10 }
 0x21b   :  { %v535_v15 = vpop.eup %534  ;;  %v440_v18 = vadd.f32 %v829_v6, %v418_v11  ;;  %v397_v17 = vmul.f32 %v533_v12, %v733_v23  ;;  %v321_v19 = vpop.xlane.xlu1 %320 }
 0x21c   :  { %v312_v20 = vpop.xlane.xlu0 %311  ;;  %v404_v21 = vmul.f32 %v535_v15, %v725_v16  ;;  %544 = vrsqrt.f32 %v371_v13  ;;  %v353_v22 = vmul.f32 0.03125, %v321_v19 }
 0x21d   :  { %v350_v25 = vmul.f32 0.03125, %v312_v20  ;;  %456 = vst.msk [vmem:[%s947_s5 + $0x10] sm:$0xff] %vm200_vm1, %v440_v18  ;;  %v419_v26 = vmul.f32 %v823_v60, %v397_v17  ;;  %546 = vrsqrt.f32 %v368_v1 }
 0x21e   :  { %v537_v27 = vpop.eup %536  ;;  %v426_v28 = vmul.f32 %v823_v60, %v404_v21  ;;  %v369_v29 = vadd.f32 1e-05, %v353_v22 }
 0x21f   :  { %v366_v23 = vadd.f32 1e-05, %v350_v25  ;;  %v539_v30 = vpop.eup %538  ;;  %v441_v31 = vadd.f32 %v829_v6, %v419_v26  ;;  %v405_v16 = vmul.f32 %v537_v27, %v746_v33  ;;  %v315_v9 = vpop.xlane.xlu1 %314 }
 0x220   :  { %v336_v8 = vpop.xlane.xlu0 %335  ;;  %v448_v32 = vadd.f32 %v829_v6, %v426_v28  ;;  %v394_v35 = vmul.f32 %v539_v30, %v736_v24  ;;  %548 = vrsqrt.f32 %v369_v29  ;;  %v351_v36 = vmul.f32 0.03125, %v315_v9 }
 0x221   :  { %457 = vst.msk [vmem:[%s947_s5 + $0x18] sm:$0xff] %vm200_vm1, %v441_v31  ;;  %v427_v37 = vmul.f32 %v823_v60, %v405_v16  ;;  %550 = vrsqrt.f32 %v366_v23  ;;  %v358_v38 = vmul.f32 0.03125, %v336_v8 }
 0x222   :  { %v541_v39 = vpop.eup %540  ;;  %464 = vst.msk [vmem:[%s947_s5 + $0x50] sm:$0xff] %vm200_vm1, %v448_v32  ;;  %v416_v33 = vmul.f32 %v823_v60, %v394_v35  ;;  %v367_v24 = vadd.f32 1e-05, %v351_v36 }
 0x223   :  { %v543_v40 = vpop.eup %542  ;;  %v449_v41 = vadd.f32 %v829_v6, %v427_v37  ;;  %v395_v44 = vmul.f32 %v541_v39, %v760_v42  ;;  %v374_v45 = vadd.f32 1e-05, %v358_v38  ;;  %v339_v46 = vpop.xlane.xlu1 %338 }
 0x224   :  { %v342_v47 = vpop.xlane.xlu0 %341  ;;  %v438_v48 = vadd.f32 %v829_v6, %v416_v33  ;;  %v402_v49 = vmul.f32 %v543_v40, %v749_v34  ;;  %552 = vrsqrt.f32 %v367_v24  ;;  %v359_v50 = vmul.f32 0.03125, %v339_v46 }
 0x225   :  { %465 = vst.msk [vmem:[%s947_s5 + $0x58] sm:$0xff] %vm200_vm1, %v449_v41  ;;  %v417_v51 = vmul.f32 %v823_v60, %v395_v44  ;;  %554 = vrsqrt.f32 %v374_v45  ;;  %v360_v53 = vmul.f32 0.03125, %v342_v47 }
 0x226   :  { %v545_v55 = vpop.eup %544  ;;  %454 = vst.msk [vmem:[%s947_s5] sm:$0xff] %vm200_vm1, %v438_v48  ;;  %v424_v42 = vmul.f32 %v823_v60, %v402_v49  ;;  %v375_v34 = vadd.f32 1e-05, %v359_v50 }
 0x227   :  { %v547_v56 = vpop.eup %546  ;;  %v439_v57 = vadd.f32 %v829_v6, %v417_v51  ;;  %v403_v61 = vmul.f32 %v545_v55, %v757_v43  ;;  %v376_v62 = vadd.f32 1e-05, %v360_v53  ;;  %v345_v63 = vpop.xlane.xlu1 %344 }
 0x228   :  { %v446_v4 = vadd.f32 %v829_v6, %v424_v42  ;;  %v400_v5 = vmul.f32 %v547_v56, %v773_v54  ;;  %556 = vrsqrt.f32 %v375_v34  ;;  %v361_v7 = vmul.f32 0.03125, %v345_v63 }
 0x229   :  { %455 = vst.msk [vmem:[%s947_s5 + $0x8] sm:$0xff] %vm200_vm1, %v439_v57  ;;  %v425_v10 = vmul.f32 %v823_v60, %v403_v61  ;;  %558 = vrsqrt.f32 %v376_v62 }
 0x22a   :  { %v549_v11 = vpop.eup %548  ;;  %462 = vst.msk [vmem:[%s947_s5 + $0x40] sm:$0xff] %vm200_vm1, %v446_v4  ;;  %v422_v43 = vmul.f32 %v823_v60, %v400_v5  ;;  %v377_v12 = vadd.f32 1e-05, %v361_v7 }
 0x22b   :  { %v551_v54 = vpop.eup %550  ;;  %v447_v13 = vadd.f32 %v829_v6, %v425_v10  ;;  %v401_v1 = vmul.f32 %v549_v11, %v770_v52 }
 0x22c   :  { %v444_v15 = vadd.f32 %v829_v6, %v422_v43  ;;  %v398_v18 = vmul.f32 %v551_v54, %v784_v58  ;;  %560 = vrsqrt.f32 %v377_v12 }
 0x22d   :  { %463 = vst.msk [vmem:[%s947_s5 + $0x48] sm:$0xff] %vm200_vm1, %v447_v13  ;;  %v423_v17 = vmul.f32 %v823_v60, %v401_v1 }
 0x22e   :  { %v553_v19 = vpop.eup %552  ;;  %460 = vst.msk [vmem:[%s947_s5 + $0x30] sm:$0xff] %vm200_vm1, %v444_v15  ;;  %v420_v52 = vmul.f32 %v823_v60, %v398_v18 }
 0x22f   :  { %v555_v20 = vpop.eup %554  ;;  %v445_v21 = vadd.f32 %v829_v6, %v423_v17  ;;  %v399_v58 = vmul.f32 %v553_v19, %v781_v59 }
 0x230   :  { %v442_v22 = vadd.f32 %v829_v6, %v420_v52  ;;  %v406_v25 = vmul.f32 %v555_v20, %v797_v14 }
 0x231   :  { %461 = vst.msk [vmem:[%s947_s5 + $0x38] sm:$0xff] %vm200_vm1, %v445_v21  ;;  %v421_v26 = vmul.f32 %v823_v60, %v399_v58 }
 0x232   :  { %v557_v27 = vpop.eup %556  ;;  %458 = vst.msk [vmem:[%s947_s5 + $0x20] sm:$0xff] %vm200_vm1, %v442_v22  ;;  %v428_v28 = vmul.f32 %v823_v60, %v406_v25 }
 0x233   :  { %v559_v59 = vpop.eup %558  ;;  %v443_v29 = vadd.f32 %v829_v6, %v421_v26  ;;  %v407_v14 = vmul.f32 %v557_v27, %v794_v0 }
 0x234   :  { %v450_v23 = vadd.f32 %v829_v6, %v428_v28  ;;  %v408_v30 = vmul.f32 %v559_v59, %v808_v2 }
 0x235   :  { %459 = vst.msk [vmem:[%s947_s5 + $0x28] sm:$0xff] %vm200_vm1, %v443_v29  ;;  %v429_v31 = vmul.f32 %v823_v60, %v407_v14 }
 0x236   :  { %v561_v16 = vpop.eup %560  ;;  %466 = vst.msk [vmem:[%s947_s5 + $0x60] sm:$0xff] %vm200_vm1, %v450_v23  ;;  %v430_v9 = vmul.f32 %v823_v60, %v408_v30 }
 0x237   :  { %v451_v0 = vadd.f32 %v829_v6, %v429_v31  ;;  %v409_v8 = vmul.f32 %v561_v16, %v805_v3 }
 0x238   :  { %v452_v2 = vadd.f32 %v829_v6, %v430_v9 }
 0x239   :  { %467 = vst.msk [vmem:[%s947_s5 + $0x68] sm:$0xff] %vm200_vm1, %v451_v0  ;;  %v431_v32 = vmul.f32 %v823_v60, %v409_v8 }
 0x23a   :  { %468 = vst.msk [vmem:[%s947_s5 + $0x70] sm:$0xff] %vm200_vm1, %v452_v2 }
 0x23b   :  { %v453_v35 = vadd.f32 %v829_v6, %v431_v32 }
 0x23d   :  { %469 = vst.msk [vmem:[%s947_s5 + $0x78] sm:$0xff] %vm200_vm1, %v453_v35 }

// kernel: _lambda_.5
= control target key start
LH: loop header
LB: loop body
LE: loop exit
PB: predicated region body
PF: predicated region fallthrough
CT: control target
= control target key end

     0   :  { %vm66_vm0 = vcmask 261120   ;;  %s3533_s20 = smov 64   ;;  %s3535_s21 = smov 48   ;;  %vm520_vm1 = vcmask 130048   ;;  %s5255_s0 = inlined_call_operand.vmem [shape: f32[128,32], index: 0, kind: input, shape index: {}]   ;;  %s5256_s4 = inlined_call_operand.vmem [shape: bf16[32,96], index: 4, kind: input, shape index: {}]   ;;  %s5257_s2 = inlined_call_operand.vmem [shape: f32[1,32], index: 2, kind: input, shape index: {}]   ;;  %s5258_s3 = inlined_call_operand.vmem [shape: f32[1,32], index: 3, kind: input, shape index: {}]   ;;  %s5259_s5 = inlined_call_operand.vmem [shape: f32[1,96], index: 5, kind: input, shape index: {}]   ;;  %s5260_s1 = inlined_call_operand.vmem [shape: f32[2,128,128], index: 1, kind: input, shape index: {}]   ;;  %s5261_s6 = inlined_call_operand.vmem [shape: bf16[32,32], index: 6, kind: input, shape index: {}]   ;;  %s5262_s7 = inlined_call_operand.vmem [shape: f32[1,32], index: 7, kind: input, shape index: {}]   ;;  %s5263_s10 = inlined_call_operand.vmem [shape: bf16[32,128], index: 10, kind: input, shape index: {}]   ;;  %s5264_s8 = inlined_call_operand.vmem [shape: f32[1,32], index: 8, kind: input, shape index: {}]   ;;  %s5265_s9 = inlined_call_operand.vmem [shape: f32[1,32], index: 9, kind: input, shape index: {}]   ;;  %s5266_s12 = inlined_call_operand.vmem [shape: bf16[128,32], index: 12, kind: input, shape index: {}]   ;;  %s5267_s11 = inlined_call_operand.vmem [shape: f32[1,128], index: 11, kind: input, shape index: {}]   ;;  %s5268_s13 = inlined_call_operand.vmem [shape: f32[1,32], index: 13, kind: input, shape index: {}]   ;;  %s5269_s14 = inlined_call_operand.vmem [shape: f32[128,32], index: 14, kind: output, shape index: {}]  }
   0x1   :  { %v48_v0 = vld [vmem:[%s5255_s0] sm:$0xff]  ;;  %v50_v1 = vld [vmem:[%s5255_s0 + $0x10] sm:$0xff]  ;;  %v49_v2 = vld [vmem:[%s5255_s0 + $0x8] sm:$0xff]  ;;  %s3536_s18 = smov 80   ;;  %s3537_s19 = smov 112  }
   0x2   :  { %v67_v3 = vsel %vm66_vm0, %v48_v0, 0.0  ;;  %v73_v4 = vsel %vm66_vm0, %v50_v1, 0.0  ;;  %v51_v5 = vld [vmem:[%s5255_s0 + $0x18] sm:$0xff]  ;;  %v70_v6 = vsel %vm66_vm0, %v49_v2, 0.0  ;;  %v52_v8 = vld [vmem:[%s5255_s0 + $0x20] sm:$0xff]  ;;  %v53_v9 = vld [vmem:[%s5255_s0 + $0x28] sm:$0xff] }
   0x3   :  { %68 = vadd.xlane.f32.xlu0 %v67_v3  ;;  %74 = vadd.xlane.f32.xlu1 %v73_v4  ;;  %v76_v7 = vsel %vm66_vm0, %v51_v5, 0.0  ;;  %v79_v10 = vsel %vm66_vm0, %v52_v8, 0.0  ;;  %v82_v11 = vsel %vm66_vm0, %v53_v9, 0.0  ;;  %v3642_v12 = vld [vmem:[%s5255_s0 + $0x30] sm:$0xff]  ;;  %v3647_v13 = vld [vmem:[%s5255_s0 + $0x38] sm:$0xff]  ;;  %v3656_v16 = vld [vmem:[%s5255_s0 + $0x40] sm:$0xff] }
   0x4   :  { %v85_v14 = vsel %vm66_vm0, %v3642_v12, 0.0  ;;  %v88_v15 = vsel %vm66_vm0, %v3647_v13, 0.0  ;;  %v3661_v17 = vld [vmem:[%s5255_s0 + $0x48] sm:$0xff]  ;;  %v91_v18 = vsel %vm66_vm0, %v3656_v16, 0.0  ;;  %v3670_v20 = vld [vmem:[%s5255_s0 + $0x50] sm:$0xff]  ;;  %v3675_v21 = vld [vmem:[%s5255_s0 + $0x58] sm:$0xff] }
   0x5   :  { %v94_v19 = vsel %vm66_vm0, %v3661_v17, 0.0  ;;  %v97_v22 = vsel %vm66_vm0, %v3670_v20, 0.0  ;;  %v100_v23 = vsel %vm66_vm0, %v3675_v21, 0.0  ;;  %v3684_v24 = vld [vmem:[%s5255_s0 + $0x60] sm:$0xff]  ;;  %v3689_v25 = vld [vmem:[%s5255_s0 + $0x68] sm:$0xff]  ;;  %v3698_v28 = vld [vmem:[%s5255_s0 + $0x70] sm:$0xff] }
   0x6   :  { %v103_v26 = vsel %vm66_vm0, %v3684_v24, 0.0  ;;  %v106_v27 = vsel %vm66_vm0, %v3689_v25, 0.0  ;;  %v3703_v29 = vld [vmem:[%s5255_s0 + $0x78] sm:$0xff]  ;;  %v109_v30 = vsel %vm66_vm0, %v3698_v28, 0.0  ;;  %s3538_s16 = smov 16  }
   0x7   :  { %71 = vadd.xlane.f32.xlu0 %v70_v6  ;;  %77 = vadd.xlane.f32.xlu1 %v76_v7  ;;  %v112_v31 = vsel %vm66_vm0, %v3703_v29, 0.0 }
   0xb   :  { %80 = vadd.xlane.f32.xlu0 %v79_v10  ;;  %83 = vadd.xlane.f32.xlu1 %v82_v11 }
   0xf   :  { %86 = vadd.xlane.f32.xlu0 %v85_v14  ;;  %89 = vadd.xlane.f32.xlu1 %v88_v15 }
  0x13   :  { %92 = vadd.xlane.f32.xlu0 %v91_v18  ;;  %95 = vadd.xlane.f32.xlu1 %v94_v19 }
  0x17   :  { %98 = vadd.xlane.f32.xlu0 %v97_v22  ;;  %101 = vadd.xlane.f32.xlu1 %v100_v23 }
  0x1b   :  { %104 = vadd.xlane.f32.xlu0 %v103_v26  ;;  %107 = vadd.xlane.f32.xlu1 %v106_v27 }
  0x1f   :  { %110 = vadd.xlane.f32.xlu0 %v109_v30  ;;  %113 = vadd.xlane.f32.xlu1 %v112_v31 }
  0x90   :  { %v69_v32 = vpop.xlane.xlu0 %68  ;;  %v75_v33 = vpop.xlane.xlu1 %74 }
  0x91   :  { %v116_v34 = vmul.f32 0.03125, %v69_v32  ;;  %v118_v35 = vmul.f32 0.03125, %v75_v33 }
  0x93   :  { %v3709_v36 = vsub.f32 %v48_v0, %v116_v34  ;;  %v3711_v37 = vsub.f32 %v50_v1, %v118_v35 }
  0x94   :  { %v72_v38 = vpop.xlane.xlu0 %71  ;;  %v78_v39 = vpop.xlane.xlu1 %77 }
  0x95   :  { %v117_v40 = vmul.f32 0.03125, %v72_v38  ;;  %v119_v41 = vmul.f32 0.03125, %v78_v39  ;;  %v148_v42 = vmul.f32 %v3709_v36, %v3709_v36  ;;  %v150_v43 = vmul.f32 %v3711_v37, %v3711_v37 }
  0x97   :  { %v3717_v44 = vsub.f32 %v49_v2, %v117_v40  ;;  %v3719_v45 = vsub.f32 %v51_v5, %v119_v41  ;;  %v164_v46 = vsel %vm66_vm0, %v148_v42, 0.0  ;;  %v170_v49 = vsel %vm66_vm0, %v150_v43, 0.0 }
  0x98   :  { %165 = vadd.xlane.f32.xlu0 %v164_v46  ;;  %v81_v47 = vpop.xlane.xlu0 %80  ;;  %v84_v48 = vpop.xlane.xlu1 %83 }
  0x99   :  { %v120_v50 = vmul.f32 0.03125, %v81_v47  ;;  %v121_v51 = vmul.f32 0.03125, %v84_v48  ;;  %v149_v52 = vmul.f32 %v3717_v44, %v3717_v44  ;;  %v151_v53 = vmul.f32 %v3719_v45, %v3719_v45 }
  0x9b   :  { %v3727_v54 = vsub.f32 %v52_v8, %v120_v50  ;;  %v3729_v55 = vsub.f32 %v53_v9, %v121_v51  ;;  %v167_v56 = vsel %vm66_vm0, %v149_v52, 0.0  ;;  %v173_v59 = vsel %vm66_vm0, %v151_v53, 0.0  ;;  %v3248_v53 = vld [vmem:[%s5256_s4 + $0x8] sm:$0xff]  }
  0x9c   :  { %171 = vadd.xlane.f32.xlu0 %v170_v49  ;;  %168 = vadd.xlane.f32.xlu1 %v167_v56  ;;  %v87_v57 = vpop.xlane.xlu0 %86  ;;  %v90_v58 = vpop.xlane.xlu1 %89 }
  0x9d   :  { %v122_v60 = vmul.f32 0.03125, %v87_v57  ;;  %v123_v61 = vmul.f32 0.03125, %v90_v58  ;;  %v152_v62 = vmul.f32 %v3727_v54, %v3727_v54  ;;  %v153_v63 = vmul.f32 %v3729_v55, %v3729_v55 }
  0x9f   :  { %v3738_v0 = vsub.f32 %v3642_v12, %v122_v60  ;;  %v3741_v1 = vsub.f32 %v3647_v13, %v123_v61  ;;  %v176_v2 = vsel %vm66_vm0, %v152_v62, 0.0  ;;  %v179_v5 = vsel %vm66_vm0, %v153_v63, 0.0 }
  0xa0   :  { %174 = vadd.xlane.f32.xlu1 %v173_v59  ;;  %177 = vadd.xlane.f32.xlu0 %v176_v2  ;;  %v93_v3 = vpop.xlane.xlu0 %92  ;;  %v96_v4 = vpop.xlane.xlu1 %95 }
  0xa1   :  { %v124_v6 = vmul.f32 0.03125, %v93_v3  ;;  %v125_v7 = vmul.f32 0.03125, %v96_v4  ;;  %v154_v8 = vmul.f32 %v3738_v0, %v3738_v0  ;;  %v155_v9 = vmul.f32 %v3741_v1, %v3741_v1 }
  0xa3   :  { %v3750_v10 = vsub.f32 %v3656_v16, %v124_v6  ;;  %v3753_v11 = vsub.f32 %v3661_v17, %v125_v7  ;;  %v182_v12 = vsel %vm66_vm0, %v154_v8, 0.0  ;;  %v185_v15 = vsel %vm66_vm0, %v155_v9, 0.0 }
  0xa4   :  { %180 = vadd.xlane.f32.xlu1 %v179_v5  ;;  %183 = vadd.xlane.f32.xlu0 %v182_v12  ;;  %v99_v13 = vpop.xlane.xlu0 %98  ;;  %v102_v14 = vpop.xlane.xlu1 %101 }
  0xa5   :  { %v126_v18 = vmul.f32 0.03125, %v99_v13  ;;  %v127_v19 = vmul.f32 0.03125, %v102_v14  ;;  %v156_v22 = vmul.f32 %v3750_v10, %v3750_v10  ;;  %v157_v16 = vmul.f32 %v3753_v11, %v3753_v11 }
  0xa7   :  { %v3762_v23 = vsub.f32 %v3670_v20, %v126_v18  ;;  %v3765_v17 = vsub.f32 %v3675_v21, %v127_v19  ;;  %v188_v26 = vsel %vm66_vm0, %v156_v22, 0.0  ;;  %v191_v31 = vsel %vm66_vm0, %v157_v16, 0.0 }
  0xa8   :  { %186 = vadd.xlane.f32.xlu1 %v185_v15  ;;  %189 = vadd.xlane.f32.xlu0 %v188_v26  ;;  %v105_v27 = vpop.xlane.xlu0 %104  ;;  %v108_v30 = vpop.xlane.xlu1 %107 }
  0xa9   :  { %v128_v32 = vmul.f32 0.03125, %v105_v27  ;;  %v129_v33 = vmul.f32 0.03125, %v108_v30  ;;  %v158_v34 = vmul.f32 %v3762_v23, %v3762_v23  ;;  %v159_v20 = vmul.f32 %v3765_v17, %v3765_v17 }
  0xab   :  { %v3774_v35 = vsub.f32 %v3684_v24, %v128_v32  ;;  %v3777_v21 = vsub.f32 %v3689_v25, %v129_v33  ;;  %v194_v38 = vsel %vm66_vm0, %v158_v34, 0.0  ;;  %v197_v41 = vsel %vm66_vm0, %v159_v20, 0.0 }
  0xac   :  { %192 = vadd.xlane.f32.xlu1 %v191_v31  ;;  %195 = vadd.xlane.f32.xlu0 %v194_v38  ;;  %v111_v39 = vpop.xlane.xlu0 %110  ;;  %v114_v40 = vpop.xlane.xlu1 %113  ;;  %v3809_v31 = vld [vmem:[%s5257_s2] ss:$0 sm:$0xff] }
  0xad   :  { %v130_v42 = vmul.f32 0.03125, %v111_v39  ;;  %v131_v43 = vmul.f32 0.03125, %v114_v40  ;;  %v160_v46 = vmul.f32 %v3774_v35, %v3774_v35  ;;  %v161_v24 = vmul.f32 %v3777_v21, %v3777_v21 }
  0xaf   :  { %v3786_v47 = vsub.f32 %v3698_v28, %v130_v42  ;;  %v3789_v25 = vsub.f32 %v3703_v29, %v131_v43  ;;  %v200_v48 = vsel %vm66_vm0, %v160_v46, 0.0  ;;  %v203_v49 = vsel %vm66_vm0, %v161_v24, 0.0  ;;  %v3247_v29 = vld [vmem:[%s5256_s4] sm:$0xff]  }
  0xb0   :  { %198 = vadd.xlane.f32.xlu1 %v197_v41  ;;  %201 = vadd.xlane.f32.xlu0 %v200_v48  ;;  %v3816_v43 = vld [vmem:[%s5258_s3] ss:$0 sm:$0xff] }
  0xb1   :  { %v162_v50 = vmul.f32 %v3786_v47, %v3786_v47  ;;  %v163_v51 = vmul.f32 %v3789_v25, %v3789_v25  ;;  %2948 = vmatprep.subr.bf16.mxu0 %v3247_v29 }
  0xb2   :  { %2949 = vmatpush3.bf16.msra.mxu0 %v3247_v29 }
  0xb3   :  { %v206_v52 = vsel %vm66_vm0, %v162_v50, 0.0  ;;  %v209_v28 = vsel %vm66_vm0, %v163_v51, 0.0  ;;  %2950 = vmatprep.subr.bf16.mxu0 %v3248_v53 }
  0xb4   :  { %204 = vadd.xlane.f32.xlu1 %v203_v49  ;;  %207 = vadd.xlane.f32.xlu0 %v206_v52 }
  0xb6   :  { %2951 = vmatpush3.bf16.msra.mxu0 %v3248_v53 }
  0xb8   :  { %210 = vadd.xlane.f32.xlu1 %v209_v28 }
 0x125   :  { %v166_v56 = vpop.xlane.xlu0 %165 }
 0x126   :  { %v212_v57 = vmul.f32 0.03125, %v166_v56 }
 0x128   :  { %v228_v58 = vadd.f32 1e-05, %v212_v57 }
 0x129   :  { %v169_v59 = vpop.xlane.xlu1 %168  ;;  %v172_v60 = vpop.xlane.xlu0 %171 }
 0x12a   :  { %3261 = vrsqrt.f32 %v228_v58  ;;  %v213_v61 = vmul.f32 0.03125, %v169_v59  ;;  %v214_v62 = vmul.f32 0.03125, %v172_v60 }
 0x12c   :  { %v229_v63 = vadd.f32 1e-05, %v213_v61  ;;  %v230_v2 = vadd.f32 1e-05, %v214_v62 }
 0x12d   :  { %v175_v3 = vpop.xlane.xlu1 %174  ;;  %v178_v4 = vpop.xlane.xlu0 %177 }
 0x12e   :  { %3263 = vrsqrt.f32 %v229_v63  ;;  %v215_v5 = vmul.f32 0.03125, %v175_v3  ;;  %v216_v6 = vmul.f32 0.03125, %v178_v4 }
 0x12f   :  { %3265 = vrsqrt.f32 %v230_v2 }
 0x130   :  { %v231_v7 = vadd.f32 1e-05, %v215_v5  ;;  %v232_v8 = vadd.f32 1e-05, %v216_v6 }
 0x131   :  { %v181_v9 = vpop.xlane.xlu1 %180  ;;  %v184_v12 = vpop.xlane.xlu0 %183 }
 0x132   :  { %3267 = vrsqrt.f32 %v231_v7  ;;  %v217_v13 = vmul.f32 0.03125, %v181_v9  ;;  %v218_v14 = vmul.f32 0.03125, %v184_v12 }
 0x133   :  { %3269 = vrsqrt.f32 %v232_v8 }
 0x134   :  { %v3262_v15 = vpop.eup %3261  ;;  %v233_v18 = vadd.f32 1e-05, %v217_v13  ;;  %v234_v19 = vadd.f32 1e-05, %v218_v14 }
 0x135   :  { %v187_v22 = vpop.xlane.xlu1 %186  ;;  %v190_v16 = vpop.xlane.xlu0 %189  ;;  %v260_v26 = vmul.f32 %v3262_v15, %v3709_v36 }
 0x136   :  { %3271 = vrsqrt.f32 %v233_v18  ;;  %v219_v27 = vmul.f32 0.03125, %v187_v22  ;;  %v220_v30 = vmul.f32 0.03125, %v190_v16 }
 0x137   :  { %3273 = vrsqrt.f32 %v234_v19  ;;  %v282_v41 = vmul.f32 %v3809_v31, %v260_v26 }
 0x138   :  { %v3264_v32 = vpop.eup %3263  ;;  %v235_v33 = vadd.f32 1e-05, %v219_v27  ;;  %v236_v34 = vadd.f32 1e-05, %v220_v30 }
 0x139   :  { %v3266_v20 = vpop.eup %3265  ;;  %v193_v38 = vpop.xlane.xlu1 %192  ;;  %v261_v40 = vmul.f32 %v3264_v32, %v3717_v44  ;;  %v304_v28 = vadd.f32 %v3816_v43, %v282_v41 }
 0x13a   :  { %v196_v39 = vpop.xlane.xlu0 %195  ;;  %3275 = vrsqrt.f32 %v235_v33  ;;  %v221_v36 = vmul.f32 0.03125, %v193_v38  ;;  %v262_v46 = vmul.f32 %v3266_v20, %v3711_v37 }
 0x13b   :  { %v222_v42 = vmul.f32 0.03125, %v196_v39  ;;  %3277 = vrsqrt.f32 %v236_v34  ;;  %v283_v24 = vmul.f32 %v3809_v31, %v261_v40 }
 0x13c   :  { %v3268_v48 = vpop.eup %3267  ;;  %v237_v49 = vadd.f32 1e-05, %v221_v36  ;;  %v284_v56 = vmul.f32 %v3809_v31, %v262_v46 }
 0x13d   :  { %v238_v50 = vadd.f32 1e-05, %v222_v42  ;;  %v3270_v51 = vpop.eup %3269  ;;  %v199_v44 = vpop.xlane.xlu1 %198  ;;  %v305_v29 = vadd.f32 %v3816_v43, %v283_v24  ;;  %v263_v53 = vmul.f32 %v3268_v48, %v3719_v45 }
 0x13e   :  { %v202_v52 = vpop.xlane.xlu0 %201  ;;  %3279 = vrsqrt.f32 %v237_v49  ;;  %v223_v57 = vmul.f32 0.03125, %v199_v44  ;;  %v264_v60 = vmul.f32 %v3270_v51, %v3727_v54  ;;  %v306_v45 = vadd.f32 %v3816_v43, %v284_v56 }
 0x13f   :  { %v224_v37 = vmul.f32 0.03125, %v202_v52  ;;  %3281 = vrsqrt.f32 %v238_v50  ;;  %v320_v58 = vpack.c.bf16 %v305_v29, %v304_v28  ;;  %v285_v59 = vmul.f32 %v3809_v31, %v263_v53 }
 0x140   :  { %v3272_v61 = vpop.eup %3271  ;;  %v239_v62 = vadd.f32 1e-05, %v223_v57  ;;  %v286_v7 = vmul.f32 %v3809_v31, %v264_v60 }
 0x141   :  { %v240_v63 = vadd.f32 1e-05, %v224_v37  ;;  %v3274_v2 = vpop.eup %3273  ;;  %v205_v3 = vpop.xlane.xlu1 %204  ;;  %2952 = vmatprep.mubr.msk.bf16.mxu0 %vm66_vm0, %v320_v58  ;;  %v307_v5 = vadd.f32 %v3816_v43, %v285_v59  ;;  %v265_v6 = vmul.f32 %v3272_v61, %v3729_v55 }
 0x142   :  { %v208_v4 = vpop.xlane.xlu0 %207  ;;  %3283 = vrsqrt.f32 %v239_v62  ;;  %v225_v8 = vmul.f32 0.03125, %v205_v3  ;;  %v266_v54 = vmul.f32 %v3274_v2, %v3738_v0  ;;  %v308_v55 = vadd.f32 %v3816_v43, %v286_v7 }
 0x143   :  { %v226_v9 = vmul.f32 0.03125, %v208_v4  ;;  %3285 = vrsqrt.f32 %v240_v63  ;;  %v321_v12 = vpack.c.bf16 %v307_v5, %v306_v45  ;;  %v287_v13 = vmul.f32 %v3809_v31, %v265_v6  ;;  %v2762_v45 = vld [vmem:[%s5259_s5] ss:$0 sm:$0xff]  ;;  %s3534_s5 = smov 96  }
 0x144   :  { %v3276_v14 = vpop.eup %3275  ;;  %v241_v15 = vadd.f32 1e-05, %v225_v8  ;;  %v288_v27 = vmul.f32 %v3809_v31, %v266_v54 }
 0x145   :  { %v242_v18 = vadd.f32 1e-05, %v226_v9  ;;  %v3278_v19 = vpop.eup %3277  ;;  %v211_v22 = vpop.xlane.xlu1 %210  ;;  %2953 = vmatmul.mubr.msk.bf16.vlgmr.msra.gmra.mrb[0].mxu0 %vm66_vm0, %v321_v12  ;;  %v309_v16 = vadd.f32 %v3816_v43, %v287_v13  ;;  %v267_v26 = vmul.f32 %v3276_v14, %v3741_v1 }
 0x146   :  { %3287 = vrsqrt.f32 %v241_v15  ;;  %v227_v0 = vmul.f32 0.03125, %v211_v22  ;;  %v268_v30 = vmul.f32 %v3278_v19, %v3750_v10  ;;  %v310_v39 = vadd.f32 %v3816_v43, %v288_v27 }
 0x147   :  { %3289 = vrsqrt.f32 %v242_v18  ;;  %v322_v32 = vpack.c.bf16 %v309_v16, %v308_v55  ;;  %v289_v33 = vmul.f32 %v3809_v31, %v267_v26 }
 0x148   :  { %v3280_v34 = vpop.eup %3279  ;;  %v243_v20 = vadd.f32 1e-05, %v227_v0  ;;  %v290_v41 = vmul.f32 %v3809_v31, %v268_v30 }
 0x149   :  { %v3282_v38 = vpop.eup %3281  ;;  %2956 = vmatprep.mubr.msk.bf16.mxu0 %vm66_vm0, %v322_v32  ;;  %v311_v40 = vadd.f32 %v3816_v43, %v289_v33  ;;  %v269_v1 = vmul.f32 %v3280_v34, %v3753_v11 }
 0x14a   :  { %3291 = vrsqrt.f32 %v243_v20  ;;  %v270_v10 = vmul.f32 %v3282_v38, %v3762_v23  ;;  %v312_v48 = vadd.f32 %v3816_v43, %v290_v41 }
 0x14b   :  { %v323_v36 = vpack.c.bf16 %v311_v40, %v310_v39  ;;  %v291_v42 = vmul.f32 %v3809_v31, %v269_v1 }
 0x14c   :  { %v3284_v46 = vpop.eup %3283  ;;  %v292_v11 = vmul.f32 %v3809_v31, %v270_v10 }
 0x14d   :  { %v3286_v24 = vpop.eup %3285  ;;  %2957 = vmatmul.mubr.msk.bf16.gmra.mrb[4].mxu0 %vm66_vm0, %v323_v36  ;;  %v313_v49 = vadd.f32 %v3816_v43, %v291_v42  ;;  %v271_v50 = vmul.f32 %v3284_v46, %v3765_v17 }
 0x14e   :  { %v272_v51 = vmul.f32 %v3286_v24, %v3774_v35  ;;  %v314_v29 = vadd.f32 %v3816_v43, %v292_v11 }
 0x14f   :  { %v324_v44 = vpack.c.bf16 %v313_v49, %v312_v48  ;;  %v293_v23 = vmul.f32 %v3809_v31, %v271_v50 }
 0x150   :  { %v3288_v52 = vpop.eup %3287  ;;  %v294_v57 = vmul.f32 %v3809_v31, %v272_v51 }
 0x151   :  { %v3290_v28 = vpop.eup %3289  ;;  %2960 = vmatprep.mubr.msk.bf16.mxu0 %vm66_vm0, %v324_v44  ;;  %v315_v53 = vadd.f32 %v3816_v43, %v293_v23  ;;  %v273_v56 = vmul.f32 %v3288_v52, %v3777_v21 }
 0x152   :  { %v274_v17 = vmul.f32 %v3290_v28, %v3786_v47  ;;  %v316_v59 = vadd.f32 %v3816_v43, %v294_v57 }
 0x153   :  { %v325_v37 = vpack.c.bf16 %v315_v53, %v314_v29  ;;  %v295_v35 = vmul.f32 %v3809_v31, %v273_v56 }
 0x154   :  { %v3292_v58 = vpop.eup %3291  ;;  %v296_v62 = vmul.f32 %v3809_v31, %v274_v17 }
 0x155   :  { %2961 = vmatmul.mubr.msk.bf16.gmra.mrb[8].mxu0 %vm66_vm0, %v325_v37  ;;  %v317_v60 = vadd.f32 %v3816_v43, %v295_v35  ;;  %v275_v61 = vmul.f32 %v3292_v58, %v3789_v25 }
 0x156   :  { %v318_v47 = vadd.f32 %v3816_v43, %v296_v62 }
 0x157   :  { %v326_v63 = vpack.c.bf16 %v317_v60, %v316_v59  ;;  %v297_v21 = vmul.f32 %v3809_v31, %v275_v61 }
 0x159   :  { %2964 = vmatprep.mubr.msk.bf16.mxu0 %vm66_vm0, %v326_v63  ;;  %v319_v2 = vadd.f32 %v3816_v43, %v297_v21 }
 0x15b   :  { %v327_v3 = vpack.c.bf16 %v319_v2, %v318_v47 }
 0x15d   :  { %2965 = vmatmul.mubr.msk.bf16.gmra.mrb[12].mxu0 %vm66_vm0, %v327_v3 }
 0x218   :  { %v2954_v4 = vpop.f32.mrb[0].mxu0 }
 0x219   :  { %v409_v25 = vpop.f32.mrb[1].mxu0  ;;  %v418_v6 = vadd.f32 %v2954_v4, %v2762_v45 }
 0x21a   :  { %v2955_v5 = vpop.f32.mrb[2].mxu0  ;;  %v410_v31 = vadd.f32 %v2762_v45, %v409_v25 }
 0x21b   :  { %v421_v7 = vadd.f32 %v2955_v5, %v2762_v45  ;;  %v412_v8 = vpop.f32.mrb[3].mxu0  ;;  %v684_v5 = vld [vmem:[%s5260_s1 + $0x10] sm:$0xff] }
 0x21c   :  { %v413_v9 = vadd.f32 %v2762_v45, %v412_v8 }
 0x21d   :  { %v3874_v54 = vpack.c.bf16 %v421_v7, %v418_v6 }
 0x21e   :  { %v3876_v12 = vpack.c.bf16 %v413_v9, %v410_v31 }
 0x21f   :  { %506 = vrot.lane.b32.xlu1 %v3874_v54, %s3533_s20 }
 0x220   :  { %504 = vrot.lane.b32.xlu0 %v3876_v12, %s3533_s20  ;;  %v2958_v43 = vpop.f32.mrb[4].mxu0  ;;  %3000 = vmatprep.subr.bf16.mxu0 %v3876_v12 }
 0x221   :  { %v425_v13 = vpop.f32.mrb[5].mxu0  ;;  %3001 = vmatpush3.bf16.msra.mxu0 %v3876_v12  ;;  %v434_v15 = vadd.f32 %v2958_v43, %v2762_v45 }
 0x222   :  { %v2959_v14 = vpop.f32.mrb[6].mxu0  ;;  %3002 = vmatprep.subr.bf16.mxu0 %v3874_v54  ;;  %v426_v22 = vadd.f32 %v2762_v45, %v425_v13  ;;  %v683_v13 = vld [vmem:[%s5260_s1 + $0x8] sm:$0xff] }
 0x223   :  { %v437_v18 = vadd.f32 %v2959_v14, %v2762_v45  ;;  %v428_v19 = vpop.f32.mrb[7].mxu0 }
 0x224   :  { %v429_v55 = vadd.f32 %v2762_v45, %v428_v19 }
 0x225   :  { %v3885_v16 = vpack.c.bf16 %v437_v18, %v434_v15  ;;  %3003 = vmatpush3.bf16.msra.mxu0 %v3874_v54  ;;  %v682_v15 = vld [vmem:[%s5260_s1] sm:$0xff] }
 0x226   :  { %v3888_v26 = vpack.c.bf16 %v429_v55, %v426_v22 }
 0x228   :  { %508 = vrot.lane.b32.xlu1 %v3888_v26, %s3533_s20  ;;  %v2962_v27 = vpop.f32.mrb[8].mxu0  ;;  %3004 = vmatprep.subr.bf16.mxu0 %v3888_v26 }
 0x229   :  { %v441_v0 = vpop.f32.mrb[9].mxu0  ;;  %3005 = vmatpush3.bf16.msra.mxu0 %v3888_v26  ;;  %v450_v32 = vadd.f32 %v2962_v27, %v2762_v45  ;;  %v685_v27 = vld [vmem:[%s5260_s1 + $0x18] sm:$0xff] }
 0x22a   :  { %v2963_v30 = vpop.f32.mrb[10].mxu0  ;;  %3006 = vmatprep.subr.bf16.mxu0 %v3885_v16  ;;  %v442_v20 = vadd.f32 %v2762_v45, %v441_v0 }
 0x22b   :  { %v453_v33 = vadd.f32 %v2963_v30, %v2762_v45  ;;  %v444_v34 = vpop.f32.mrb[11].mxu0 }
 0x22c   :  { %v445_v38 = vadd.f32 %v2762_v45, %v444_v34  ;;  %510 = vrot.lane.b32.xlu1 %v3885_v16, %s3533_s20 }
 0x22d   :  { %v3897_v39 = vpack.c.bf16 %v453_v33, %v450_v32  ;;  %3007 = vmatpush3.bf16.msra.mxu0 %v3885_v16  ;;  %v689_v32 = vld [vmem:[%s5260_s1 + $0x38] sm:$0xff] }
 0x22e   :  { %v3900_v40 = vpack.c.bf16 %v445_v38, %v442_v20 }
 0x230   :  { %514 = vrot.lane.b32.xlu1 %v3897_v39, %s3533_s20  ;;  %512 = vrot.lane.b32.xlu0 %v3900_v40, %s3533_s20  ;;  %v2966_v1 = vpop.f32.mrb[12].mxu0 }
 0x231   :  { %3008 = vmatprep.subr.bf16.mxu0 %v3900_v40  ;;  %v457_v41 = vpop.f32.mrb[13].mxu0  ;;  %v466_v36 = vadd.f32 %v2966_v1, %v2762_v45  ;;  %v688_v1 = vld [vmem:[%s5260_s1 + $0x30] sm:$0xff] }
 0x232   :  { %3009 = vmatpush3.bf16.msra.mxu0 %v3900_v40  ;;  %v2967_v10 = vpop.f32.mrb[14].mxu0  ;;  %v458_v24 = vadd.f32 %v2762_v45, %v457_v41 }
 0x233   :  { %v469_v42 = vadd.f32 %v2967_v10, %v2762_v45  ;;  %3010 = vmatprep.subr.bf16.mxu0 %v3897_v39  ;;  %v460_v46 = vpop.f32.mrb[15].mxu0 }
 0x234   :  { %v461_v48 = vadd.f32 %v2762_v45, %v460_v46 }
 0x235   :  { %v3909_v49 = vpack.c.bf16 %v469_v42, %v466_v36  ;;  %v687_v36 = vld [vmem:[%s5260_s1 + $0x28] sm:$0xff] }
 0x236   :  { %v3911_v50 = vpack.c.bf16 %v461_v48, %v458_v24  ;;  %3011 = vmatpush3.bf16.msra.mxu0 %v3897_v39  ;;  %v686_v48 = vld [vmem:[%s5260_s1 + $0x20] sm:$0xff] }
 0x237   :  { %518 = vrot.lane.b32.xlu1 %v3909_v49, %s3533_s20 }
 0x238   :  { %516 = vrot.lane.b32.xlu0 %v3911_v50, %s3533_s20  ;;  %3012 = vmatprep.subr.bf16.mxu0 %v3911_v50 }
 0x23a   :  { %3013 = vmatpush3.bf16.msra.mxu0 %v3911_v50 }
 0x23b   :  { %3014 = vmatprep.subr.bf16.mxu0 %v3909_v49  ;;  %490 = vrot.lane.b32.xlu1 %v3874_v54, %s3534_s5 }
 0x23c   :  { %488 = vrot.lane.b32.xlu0 %v3876_v12, %s3534_s5 }
 0x23e   :  { %3015 = vmatpush3.bf16.msra.mxu0 %v3909_v49 }
 0x23f   :  { %494 = vrot.lane.b32.xlu1 %v3885_v16, %s3534_s5 }
 0x240   :  { %492 = vrot.lane.b32.xlu0 %v3888_v26, %s3534_s5 }
 0x243   :  { %498 = vrot.lane.b32.xlu1 %v3897_v39, %s3534_s5 }
 0x244   :  { %496 = vrot.lane.b32.xlu0 %v3900_v40, %s3534_s5 }
 0x247   :  { %502 = vrot.lane.b32.xlu1 %v3909_v49, %s3534_s5 }
 0x248   :  { %500 = vrot.lane.b32.xlu0 %v3911_v50, %s3534_s5 }
 0x24b   :  { %981 = vrot.lane.b32.xlu1 %v3874_v54, %s3535_s21 }
 0x24c   :  { %979 = vrot.lane.b32.xlu0 %v3876_v12, %s3535_s21 }
 0x291   :  { %v507_v44 = vpop.permute.xlu1 %506 }
 0x292   :  { %v505_v11 = vpop.permute.xlu0 %504  ;;  %v549_v23 = vsel %vm520_vm1, %v507_v44, 0 }
 0x293   :  { %3184 = vmatprep.subr.msk.bf16.mxu1 %vm520_vm1, %v505_v11  ;;  %v546_v51 = vsel %vm520_vm1, %v505_v11, 0 }
 0x294   :  { %2969 = vmatpush3.bf16.xpose.msra.mxu1 %v546_v51 }
 0x295   :  { %3185 = vmatprep.subr.msk.bf16.mxu1 %vm520_vm1, %v507_v44 }
 0x29a   :  { %v509_v52 = vpop.permute.xlu1 %508 }
 0x29b   :  { %v552_v28 = vsel %vm520_vm1, %v509_v52, 0 }
 0x29c   :  { %2971 = vmatpush3.bf16.xpose.msra.mxu1 %v549_v23  ;;  %v693_v23 = vld [vmem:[%s5260_s1 + $0x58] sm:$0xff] }
 0x29d   :  { %3186 = vmatprep.subr.msk.bf16.mxu1 %vm520_vm1, %v509_v52 }
 0x29e   :  { %v511_v29 = vpop.permute.xlu1 %510 }
 0x29f   :  { %v555_v57 = vsel %vm520_vm1, %v511_v29, 0 }
 0x2a2   :  { %v513_v53 = vpop.permute.xlu0 %512  ;;  %v515_v58 = vpop.permute.xlu1 %514 }
 0x2a3   :  { %v558_v35 = vsel %vm520_vm1, %v513_v53, 0  ;;  %v561_v61 = vsel %vm520_vm1, %v515_v58, 0 }
 0x2a4   :  { %2973 = vmatpush3.bf16.xpose.msra.mxu1 %v552_v28 }
 0x2a5   :  { %3187 = vmatprep.subr.msk.bf16.mxu1 %vm520_vm1, %v511_v29 }
 0x2a9   :  { %v519_v21 = vpop.permute.xlu1 %518 }
 0x2aa   :  { %v517_v56 = vpop.permute.xlu0 %516  ;;  %v567_v47 = vsel %vm520_vm1, %v519_v21, 0 }
 0x2ab   :  { %v564_v63 = vsel %vm520_vm1, %v517_v56, 0 }
 0x2ac   :  { %2975 = vmatpush3.bf16.xpose.msra.mxu1 %v555_v57 }
 0x2ad   :  { %3188 = vmatprep.subr.msk.bf16.mxu1 %vm520_vm1, %v513_v53  ;;  %v491_v2 = vpop.permute.xlu1 %490 }
 0x2ae   :  { %v489_v17 = vpop.permute.xlu0 %488 }
 0x2af   :  { %2984 = vmatprep.mubr.msk.bf16.mxu1 %vm520_vm1, %v489_v17 }
 0x2b1   :  { %v495_v3 = vpop.permute.xlu1 %494 }
 0x2b2   :  { %v493_v37 = vpop.permute.xlu0 %492 }
 0x2b4   :  { %2977 = vmatpush3.bf16.xpose.msra.mxu1 %v558_v35 }
 0x2b5   :  { %3189 = vmatprep.subr.msk.bf16.mxu1 %vm520_vm1, %v515_v58  ;;  %v499_v4 = vpop.permute.xlu1 %498 }
 0x2b6   :  { %v497_v59 = vpop.permute.xlu0 %496 }
 0x2b9   :  { %v503_v45 = vpop.permute.xlu1 %502 }
 0x2ba   :  { %v501_v60 = vpop.permute.xlu0 %500 }
 0x2bc   :  { %2979 = vmatpush3.bf16.xpose.msra.mxu1 %v561_v61 }
 0x2bd   :  { %3190 = vmatprep.subr.msk.bf16.mxu1 %vm520_vm1, %v517_v56  ;;  %v692_v56 = vld [vmem:[%s5260_s1 + $0x50] sm:$0xff] }
 0x2be   :  { %v3948_v62 = vpop.permute.xlu0 %979 }
 0x2bf   :  { %3192 = vmatprep.subr.msk.bf16.mxu0 %vm520_vm1, %v3948_v62 }
 0x2c4   :  { %2981 = vmatpush3.bf16.xpose.msra.mxu1 %v564_v63 }
 0x2c5   :  { %3191 = vmatprep.subr.msk.bf16.mxu1 %vm520_vm1, %v519_v21 }
 0x2cc   :  { %2983 = vmatpush3.bf16.xpose.msra.mxu1 %v567_v47 }
 0x2d3   :  { %2985 = vmatmul.mubr.msk.bf16.vlgmr.msra.gmra.mrb[0].mxu1 %vm520_vm1, %v491_v2 }
 0x2d4   :  { %2988 = vmatprep.mubr.msk.bf16.mxu1 %vm520_vm1, %v493_v37  ;;  %v691_v37 = vld [vmem:[%s5260_s1 + $0x48] sm:$0xff] }
 0x2db   :  { %2989 = vmatmul.mubr.msk.bf16.gmra.mrb[4].mxu1 %vm520_vm1, %v495_v3 }
 0x2dc   :  { %2992 = vmatprep.mubr.msk.bf16.mxu1 %vm520_vm1, %v497_v59 }
 0x2e3   :  { %2993 = vmatmul.mubr.msk.bf16.gmra.mrb[8].mxu1 %vm520_vm1, %v499_v4  ;;  %v696_v4 = vld [vmem:[%s5260_s1 + $0x70] sm:$0xff] }
 0x2e4   :  { %2996 = vmatprep.mubr.msk.bf16.mxu1 %vm520_vm1, %v501_v60  ;;  %v690_v60 = vld [vmem:[%s5260_s1 + $0x40] sm:$0xff] }
 0x2eb   :  { %2997 = vmatmul.mubr.msk.bf16.gmra.mrb[12].mxu1 %vm520_vm1, %v503_v45 }
 0x3a6   :  { %v2986_v25 = vpop.f32.mrb[0].mxu1 }
 0x3a7   :  { %v668_v6 = vmul.f32 0.25, %v2986_v25  ;;  %v603_v7 = vpop.f32.mrb[1].mxu1 }
 0x3a8   :  { %v2987_v8 = vpop.f32.mrb[2].mxu1  ;;  %v666_v31 = vmul.f32 0.25, %v603_v7 }
 0x3a9   :  { %v606_v9 = vpop.f32.mrb[3].mxu1  ;;  %v3965_v43 = vadd.f32 %v684_v5, %v668_v6  ;;  %v669_v19 = vmul.f32 0.25, %v2987_v8  ;;  %v694_v5 = vld [vmem:[%s5260_s1 + $0x60] sm:$0xff]  ;;  %v697_v8 = vld [vmem:[%s5260_s1 + $0x78] sm:$0xff] }
 0x3aa   :  { %v667_v14 = vmul.f32 0.25, %v606_v9  ;;  %v3976_v22 = vadd.f32 %v682_v15, %v666_v31 }
 0x3ab   :  { %718 = vmax.xlane.f32.xlu0 %v3965_v43  ;;  %v3986_v38 = vadd.f32 %v685_v27, %v669_v19 }
 0x3ac   :  { %v3974_v18 = vadd.f32 %v683_v13, %v667_v14  ;;  %v695_v13 = vld [vmem:[%s5260_s1 + $0x68] sm:$0xff] }
 0x3ae   :  { %716 = vmax.xlane.f32.xlu1 %v3974_v18  ;;  %v2990_v55 = vpop.f32.mrb[4].mxu1 }
 0x3af   :  { %714 = vmax.xlane.f32.xlu0 %v3976_v22  ;;  %v619_v0 = vpop.f32.mrb[5].mxu1  ;;  %v672_v33 = vmul.f32 0.25, %v2990_v55  ;;  %v4060_v55 = vpop.permute.xlu1 %981 }
 0x3b0   :  { %v2991_v30 = vpop.f32.mrb[6].mxu1  ;;  %v670_v42 = vmul.f32 0.25, %v619_v0 }
 0x3b1   :  { %v673_v34 = vmul.f32 0.25, %v2991_v30  ;;  %v622_v20 = vpop.f32.mrb[7].mxu1  ;;  %v3998_v46 = vadd.f32 %v688_v1, %v672_v33 }
 0x3b2   :  { %v671_v41 = vmul.f32 0.25, %v622_v20  ;;  %v4010_v53 = vadd.f32 %v686_v48, %v670_v42 }
 0x3b3   :  { %720 = vmax.xlane.f32.xlu0 %v3986_v38  ;;  %v3992_v10 = vadd.f32 %v689_v32, %v673_v34 }
 0x3b4   :  { %v4004_v51 = vadd.f32 %v687_v36, %v671_v41 }
 0x3b5   :  { %728 = vmax.xlane.f32.xlu1 %v3992_v10 }
 0x3b6   :  { %v2994_v24 = vpop.f32.mrb[8].mxu1 }
 0x3b7   :  { %726 = vmax.xlane.f32.xlu0 %v3998_v46  ;;  %v635_v11 = vpop.f32.mrb[9].mxu1  ;;  %v676_v52 = vmul.f32 0.25, %v2994_v24 }
 0x3b8   :  { %v2995_v44 = vpop.f32.mrb[10].mxu1  ;;  %v674_v35 = vmul.f32 0.25, %v635_v11 }
 0x3b9   :  { %v677_v28 = vmul.f32 0.25, %v2995_v44  ;;  %724 = vmax.xlane.f32.xlu1 %v4004_v51  ;;  %v638_v29 = vpop.f32.mrb[11].mxu1  ;;  %v4022_v58 = vadd.f32 %v692_v56, %v676_v52 }
 0x3ba   :  { %v675_v57 = vmul.f32 0.25, %v638_v29  ;;  %v4031_v3 = vadd.f32 %v690_v60, %v674_v35 }
 0x3bb   :  { %722 = vmax.xlane.f32.xlu0 %v4010_v53  ;;  %v4016_v17 = vadd.f32 %v693_v23, %v677_v28 }
 0x3bc   :  { %v4028_v63 = vadd.f32 %v691_v37, %v675_v57 }
 0x3bd   :  { %736 = vmax.xlane.f32.xlu1 %v4016_v17 }
 0x3be   :  { %v2998_v59 = vpop.f32.mrb[12].mxu1 }
 0x3bf   :  { %734 = vmax.xlane.f32.xlu0 %v4022_v58  ;;  %v651_v61 = vpop.f32.mrb[13].mxu1  ;;  %v680_v47 = vmul.f32 0.25, %v2998_v59 }
 0x3c0   :  { %v2999_v21 = vpop.f32.mrb[14].mxu1  ;;  %v678_v45 = vmul.f32 0.25, %v651_v61 }
 0x3c1   :  { %732 = vmax.xlane.f32.xlu1 %v4028_v63  ;;  %v654_v2 = vpop.f32.mrb[15].mxu1  ;;  %v712_v25 = vadd.f32 %v696_v4, %v680_v47  ;;  %v681_v7 = vmul.f32 0.25, %v2999_v21 }
 0x3c2   :  { %v4040_v6 = vadd.f32 %v694_v5, %v678_v45  ;;  %v679_v31 = vmul.f32 0.25, %v654_v2 }
 0x3c3   :  { %730 = vmax.xlane.f32.xlu0 %v4031_v3  ;;  %v4050_v9 = vadd.f32 %v697_v8, %v681_v7 }
 0x3c4   :  { %v4056_v14 = vadd.f32 %v695_v13, %v679_v31 }
 0x3c7   :  { %742 = vmax.xlane.f32.xlu0 %v712_v25 }
 0x3cb   :  { %738 = vmax.xlane.f32.xlu0 %v4040_v6 }
 0x3d2   :  { %985 = vrot.lane.b32.xlu1 %v3885_v16, %s3535_s21 }
 0x3e1   :  { %983 = vrot.lane.b32.xlu0 %v3888_v26, %s3535_s21 }
 0x3f6   :  { %744 = vmax.xlane.f32.xlu1 %v4050_v9 }
 0x3fa   :  { %740 = vmax.xlane.f32.xlu1 %v4056_v14 }
 0x438   :  { %v719_v15 = vpop.xlane.xlu0 %718 }
 0x439   :  { %v748_v19 = vsub.f32 %v3965_v43, %v719_v15 }
 0x43b   :  { %v766_v27 = vmul.f32 1.442695, %v748_v19  ;;  %v717_v32 = vpop.xlane.xlu1 %716 }
 0x43c   :  { %v715_v0 = vpop.xlane.xlu0 %714  ;;  %v747_v20 = vsub.f32 %v3974_v18, %v717_v32 }
 0x43d   :  { %3293 = vpow2.f32 %v766_v27  ;;  %v746_v30 = vsub.f32 %v3976_v22, %v715_v0 }
 0x43e   :  { %v764_v36 = vmul.f32 1.442695, %v747_v20 }
 0x43f   :  { %v762_v33 = vmul.f32 1.442695, %v746_v30 }
 0x440   :  { %v721_v34 = vpop.xlane.xlu0 %720 }
 0x441   :  { %3295 = vpow2.f32 %v762_v33  ;;  %v749_v1 = vsub.f32 %v3986_v38, %v721_v34 }
 0x442   :  { %v729_v11 = vpop.xlane.xlu1 %728 }
 0x443   :  { %v768_v41 = vmul.f32 1.442695, %v749_v1  ;;  %v753_v61 = vsub.f32 %v3992_v10, %v729_v11 }
 0x444   :  { %v727_v38 = vpop.xlane.xlu0 %726 }
 0x445   :  { %3297 = vpow2.f32 %v768_v41  ;;  %v752_v52 = vsub.f32 %v3998_v46, %v727_v38  ;;  %v776_v46 = vmul.f32 1.442695, %v753_v61 }
 0x446   :  { %3299 = vpow2.f32 %v764_v36  ;;  %v725_v23 = vpop.xlane.xlu1 %724 }
 0x447   :  { %v4065_v42 = vpop.eup %3293  ;;  %v774_v29 = vmul.f32 1.442695, %v752_v52  ;;  %v751_v56 = vsub.f32 %v4004_v51, %v725_v23 }
 0x448   :  { %798 = vadd.xlane.f32.xlu0 %v4065_v42  ;;  %v723_v24 = vpop.xlane.xlu0 %722 }
 0x449   :  { %v750_v37 = vsub.f32 %v4010_v53, %v723_v24  ;;  %3301 = vpow2.f32 %v774_v29  ;;  %v772_v35 = vmul.f32 1.442695, %v751_v56 }
 0x44a   :  { %v737_v57 = vpop.xlane.xlu1 %736 }
 0x44b   :  { %v4068_v43 = vpop.eup %3295  ;;  %v770_v21 = vmul.f32 1.442695, %v750_v37  ;;  %3303 = vpow2.f32 %v772_v35  ;;  %v1020_v37 = vsel %vm520_vm1, %v3948_v62, 0 }
 0x44c   :  { %794 = vadd.xlane.f32.xlu0 %v4068_v43  ;;  %v735_v48 = vpop.xlane.xlu0 %734 }
 0x44d   :  { %3305 = vpow2.f32 %v770_v21  ;;  %v756_v45 = vsub.f32 %v4022_v58, %v735_v48  ;;  %v757_v58 = vsub.f32 %v4016_v17, %v737_v57 }
 0x44e   :  { %v733_v47 = vpop.xlane.xlu1 %732 }
 0x44f   :  { %v4071_v22 = vpop.eup %3297  ;;  %v782_v10 = vmul.f32 1.442695, %v756_v45  ;;  %v755_v27 = vsub.f32 %v4028_v63, %v733_v47 }
 0x450   :  { %800 = vadd.xlane.f32.xlu1 %v4071_v22  ;;  %v4074_v18 = vpop.eup %3299  ;;  %v731_v44 = vpop.xlane.xlu0 %730 }
 0x451   :  { %v780_v30 = vmul.f32 1.442695, %v755_v27 }
 0x452   :  { %v4087_v5 = vpop.permute.xlu1 %985 }
 0x453   :  { %v4089_v53 = vpop.eup %3301  ;;  %v1029_v62 = vsel %vm520_vm1, %v4087_v5, 0 }
 0x454   :  { %796 = vadd.xlane.f32.xlu1 %v4074_v18  ;;  %v743_v28 = vpop.xlane.xlu0 %742 }
 0x455   :  { %v760_v59 = vsub.f32 %v712_v25, %v743_v28  ;;  %v754_v25 = vsub.f32 %v4031_v3, %v731_v44  ;;  %v4093_v8 = vpop.eup %3303  ;;  %v784_v3 = vmul.f32 1.442695, %v757_v58 }
 0x457   :  { %v790_v2 = vmul.f32 1.442695, %v760_v59  ;;  %v778_v31 = vmul.f32 1.442695, %v754_v25  ;;  %v4098_v15 = vpop.eup %3305 }
 0x458   :  { %v739_v60 = vpop.xlane.xlu0 %738 }
 0x459   :  { %v758_v4 = vsub.f32 %v4040_v6, %v739_v60  ;;  %3307 = vpow2.f32 %v790_v2 }
 0x45a   :  { %3309 = vpow2.f32 %v776_v46 }
 0x45b   :  { %v786_v51 = vmul.f32 1.442695, %v758_v4 }
 0x45c   :  { %v984_v36 = vpop.permute.xlu0 %983 }
 0x45d   :  { %3311 = vpow2.f32 %v786_v51 }
 0x45e   :  { %3313 = vpow2.f32 %v782_v10 }
 0x462   :  { %987 = vrot.lane.b32.xlu0 %v3900_v40, %s3535_s21 }
 0x463   :  { %v4100_v19 = vpop.eup %3307 }
 0x465   :  { %989 = vrot.lane.b32.xlu1 %v3897_v39, %s3535_s21 }
 0x481   :  { %806 = vadd.xlane.f32.xlu0 %v4089_v53 }
 0x483   :  { %v745_v7 = vpop.xlane.xlu1 %744 }
 0x484   :  { %v761_v6 = vsub.f32 %v4050_v9, %v745_v7  ;;  %v4105_v9 = vpop.eup %3309 }
 0x485   :  { %804 = vadd.xlane.f32.xlu0 %v4093_v8  ;;  %v4107_v17 = vpop.eup %3311 }
 0x486   :  { %v792_v13 = vmul.f32 1.442695, %v761_v6  ;;  %v4112_v33 = vpop.eup %3313 }
 0x487   :  { %v741_v0 = vpop.xlane.xlu1 %740 }
 0x488   :  { %3315 = vpow2.f32 %v792_v13  ;;  %v759_v32 = vsub.f32 %v4056_v14, %v741_v0 }
 0x489   :  { %802 = vadd.xlane.f32.xlu1 %v4098_v15  ;;  %822 = vadd.xlane.f32.xlu0 %v4100_v19  ;;  %3317 = vpow2.f32 %v778_v31 }
 0x48a   :  { %3319 = vpow2.f32 %v784_v3  ;;  %v788_v63 = vmul.f32 1.442695, %v759_v32 }
 0x48b   :  { %3321 = vpow2.f32 %v780_v30 }
 0x48c   :  { %3323 = vpow2.f32 %v788_v63 }
 0x48d   :  { %808 = vadd.xlane.f32.xlu1 %v4105_v9  ;;  %818 = vadd.xlane.f32.xlu0 %v4107_v17 }
 0x491   :  { %814 = vadd.xlane.f32.xlu1 %v4112_v33 }
 0x492   :  { %v4115_v34 = vpop.eup %3315 }
 0x493   :  { %824 = vadd.xlane.f32.xlu0 %v4115_v34  ;;  %v4118_v20 = vpop.eup %3317 }
 0x494   :  { %v4121_v1 = vpop.eup %3319 }
 0x495   :  { %810 = vadd.xlane.f32.xlu1 %v4118_v20  ;;  %v4124_v14 = vpop.eup %3321 }
 0x496   :  { %v4127_v41 = vpop.eup %3323 }
 0x499   :  { %816 = vadd.xlane.f32.xlu1 %v4121_v1 }
 0x49d   :  { %812 = vadd.xlane.f32.xlu1 %v4124_v14 }
 0x4a1   :  { %820 = vadd.xlane.f32.xlu1 %v4127_v41 }
 0x4a9   :  { %991 = vrot.lane.b32.xlu0 %v3911_v50, %s3535_s21 }
 0x4ad   :  { %963 = vrot.lane.b32.xlu0 %v3876_v12, %s3536_s18 }
 0x4b1   :  { %967 = vrot.lane.b32.xlu0 %v3888_v26, %s3536_s18 }
 0x4b2   :  { %993 = vrot.lane.b32.xlu1 %v3909_v49, %s3535_s21 }
 0x4b5   :  { %971 = vrot.lane.b32.xlu0 %v3900_v40, %s3536_s18 }
 0x4b6   :  { %965 = vrot.lane.b32.xlu1 %v3874_v54, %s3536_s18 }
 0x4b9   :  { %975 = vrot.lane.b32.xlu0 %v3911_v50, %s3536_s18 }
 0x4ba   :  { %969 = vrot.lane.b32.xlu1 %v3885_v16, %s3536_s18 }
 0x4bd   :  { %1341 = vrot.lane.b32.xlu0 %v3876_v12, %s3537_s19 }
 0x4be   :  { %973 = vrot.lane.b32.xlu1 %v3897_v39, %s3536_s18 }
 0x4c1   :  { %1345 = vrot.lane.b32.xlu0 %v3888_v26, %s3537_s19 }
 0x4c2   :  { %977 = vrot.lane.b32.xlu1 %v3909_v49, %s3536_s18 }
 0x4c6   :  { %1343 = vrot.lane.b32.xlu1 %v3874_v54, %s3537_s19 }
 0x4d5   :  { %v799_v38 = vpop.xlane.xlu0 %798 }
 0x4d9   :  { %v795_v24 = vpop.xlane.xlu0 %794 }
 0x4dd   :  { %v801_v48 = vpop.xlane.xlu1 %800 }
 0x4de   :  { %3325 = vrcp.f32 %v801_v48 }
 0x4df   :  { %3327 = vrcp.f32 %v795_v24 }
 0x4e0   :  { %3329 = vrcp.f32 %v799_v38 }
 0x4e1   :  { %v797_v11 = vpop.xlane.xlu1 %796 }
 0x4e2   :  { %3331 = vrcp.f32 %v797_v11 }
 0x4e5   :  { %v990_v35 = vpop.permute.xlu1 %989 }
 0x4e6   :  { %v1035_v47 = vsel %vm520_vm1, %v990_v35, 0 }
 0x4e8   :  { %v3326_v12 = vpop.eup %3325 }
 0x4e9   :  { %v3328_v44 = vpop.eup %3327  ;;  %v833_v26 = vmul.f32 %v3326_v12, %v4071_v22  ;;  %v1023_v22 = vsel %vm520_vm1, %v4060_v55, 0 }
 0x4ea   :  { %v3330_v23 = vpop.eup %3329  ;;  %v827_v28 = vmul.f32 %v3328_v44, %v4068_v43  ;;  %v1026_v43 = vsel %vm520_vm1, %v984_v36, 0 }
 0x4eb   :  { %v831_v54 = vmul.f32 %v3330_v23, %v4065_v42  ;;  %v988_v42 = vpop.permute.xlu0 %987 }
 0x4ec   :  { %v3332_v52 = vpop.eup %3331 }
 0x4ed   :  { %v829_v29 = vmul.f32 %v3332_v52, %v4074_v18  ;;  %v859_v57 = vpack.c.bf16 %v833_v26, %v831_v54 }
 0x4ef   :  { %v858_v56 = vpack.c.bf16 %v829_v29, %v827_v28 }
 0x4f1   :  { %3016 = vmatprep.mubr.bf16.mxu0 %v858_v56 }
 0x4f2   :  { %3017 = vmatmul.mubr.bf16.vlgmr.msra.gmra.mrb[16].mxu0 %v859_v57 }
 0x4f3   :  { %3033 = vmatpush3.bf16.xpose.msra.mxu0 %v1020_v37 }
 0x4f4   :  { %3193 = vmatprep.subr.msk.bf16.mxu0 %vm520_vm1, %v4060_v55  ;;  %v1032_v55 = vsel %vm520_vm1, %v988_v42, 0 }
 0x4fb   :  { %3035 = vmatpush3.bf16.xpose.msra.mxu0 %v1023_v22 }
 0x4fc   :  { %3194 = vmatprep.subr.msk.bf16.mxu0 %vm520_vm1, %v984_v36 }
 0x503   :  { %3037 = vmatpush3.bf16.xpose.msra.mxu0 %v1026_v43 }
 0x504   :  { %3195 = vmatprep.subr.msk.bf16.mxu0 %vm520_vm1, %v4087_v5 }
 0x50b   :  { %3039 = vmatpush3.bf16.xpose.msra.mxu0 %v1029_v62 }
 0x50c   :  { %3196 = vmatprep.subr.msk.bf16.mxu0 %vm520_vm1, %v988_v42 }
 0x50e   :  { %v807_v18 = vpop.xlane.xlu0 %806 }
 0x512   :  { %v805_v59 = vpop.xlane.xlu0 %804 }
 0x513   :  { %3041 = vmatpush3.bf16.xpose.msra.mxu0 %v1032_v55  ;;  %3333 = vrcp.f32 %v805_v59 }
 0x514   :  { %3197 = vmatprep.subr.msk.bf16.mxu0 %vm520_vm1, %v990_v35 }
 0x516   :  { %v803_v60 = vpop.xlane.xlu1 %802  ;;  %v823_v61 = vpop.xlane.xlu0 %822 }
 0x517   :  { %3335 = vrcp.f32 %v803_v60 }
 0x518   :  { %3337 = vrcp.f32 %v807_v18 }
 0x51a   :  { %v809_v21 = vpop.xlane.xlu1 %808  ;;  %v819_v2 = vpop.xlane.xlu0 %818 }
 0x51b   :  { %3339 = vrcp.f32 %v809_v21  ;;  %3043 = vmatpush3.bf16.xpose.msra.mxu0 %v1035_v47 }
 0x51d   :  { %v3334_v46 = vpop.eup %3333 }
 0x51e   :  { %v815_v4 = vpop.xlane.xlu1 %814  ;;  %v837_v25 = vmul.f32 %v3334_v46, %v4093_v8 }
 0x520   :  { %v825_v45 = vpop.xlane.xlu0 %824 }
 0x521   :  { %v3336_v51 = vpop.eup %3335 }
 0x522   :  { %v811_v5 = vpop.xlane.xlu1 %810  ;;  %v835_v10 = vmul.f32 %v3336_v51, %v4098_v15  ;;  %v3338_v7 = vpop.eup %3337 }
 0x523   :  { %v839_v27 = vmul.f32 %v3338_v7, %v4089_v53 }
 0x524   :  { %v992_v6 = vpop.permute.xlu0 %991  ;;  %v860_v58 = vpack.c.bf16 %v837_v25, %v835_v10 }
 0x525   :  { %v3340_v31 = vpop.eup %3339  ;;  %v1038_v13 = vsel %vm520_vm1, %v992_v6, 0  ;;  %3198 = vmatprep.subr.msk.bf16.mxu0 %vm520_vm1, %v992_v6 }
 0x526   :  { %v817_v3 = vpop.xlane.xlu1 %816  ;;  %3020 = vmatprep.mubr.bf16.mxu0 %v860_v58  ;;  %3045 = vmatpush3.bf16.xpose.msra.mxu0 %v1038_v13  ;;  %v841_v0 = vmul.f32 %v3340_v31, %v4105_v9  ;;  %v2791_v58 = vld [vmem:[%s5260_s1 + $0x90] sm:$0xff] }
 0x527   :  { %3341 = vrcp.f32 %v817_v3 }
 0x528   :  { %v964_v30 = vpop.permute.xlu0 %963  ;;  %v861_v15 = vpack.c.bf16 %v841_v0, %v839_v27  ;;  %3343 = vrcp.f32 %v811_v5 }
 0x529   :  { %3345 = vrcp.f32 %v815_v4 }
 0x52a   :  { %v813_v8 = vpop.xlane.xlu1 %812  ;;  %3021 = vmatmul.mubr.bf16.gmra.mrb[20].mxu0 %v861_v15  ;;  %v2790_v15 = vld [vmem:[%s5260_s1 + $0x88] sm:$0xff] }
 0x52b   :  { %3347 = vrcp.f32 %v813_v8  ;;  %v2789_v8 = vld [vmem:[%s5260_s1 + $0x80] sm:$0xff] }
 0x52c   :  { %v968_v32 = vpop.permute.xlu0 %967  ;;  %3349 = vrcp.f32 %v819_v2 }
 0x52e   :  { %v821_v63 = vpop.xlane.xlu1 %820 }
 0x52f   :  { %3351 = vrcp.f32 %v821_v63 }
 0x530   :  { %3353 = vrcp.f32 %v825_v45  ;;  %v972_v36 = vpop.permute.xlu0 %971 }
 0x531   :  { %v3342_v38 = vpop.eup %3341  ;;  %3355 = vrcp.f32 %v823_v61 }
 0x532   :  { %v994_v24 = vpop.permute.xlu1 %993  ;;  %v3344_v53 = vpop.eup %3343  ;;  %v849_v44 = vmul.f32 %v3342_v38, %v4121_v1 }
 0x533   :  { %v1041_v9 = vsel %vm520_vm1, %v994_v24, 0  ;;  %3199 = vmatprep.subr.msk.bf16.mxu0 %vm520_vm1, %v994_v24  ;;  %v3346_v48 = vpop.eup %3345  ;;  %v843_v52 = vmul.f32 %v3344_v53, %v4118_v20  ;;  %v2792_v24 = vld [vmem:[%s5260_s1 + $0x98] sm:$0xff] }
 0x534   :  { %3047 = vmatpush3.bf16.xpose.msra.mxu0 %v1041_v9  ;;  %v976_v11 = vpop.permute.xlu0 %975  ;;  %v847_v29 = vmul.f32 %v3346_v48, %v4112_v33 }
 0x535   :  { %v3348_v12 = vpop.eup %3347 }
 0x536   :  { %v966_v23 = vpop.permute.xlu1 %965  ;;  %v845_v26 = vmul.f32 %v3348_v12, %v4124_v14  ;;  %v3350_v28 = vpop.eup %3349  ;;  %v863_v37 = vpack.c.bf16 %v849_v44, %v847_v29 }
 0x537   :  { %v851_v1 = vmul.f32 %v3350_v28, %v4107_v17 }
 0x538   :  { %v1342_v54 = vpop.permute.xlu0 %1341  ;;  %v862_v56 = vpack.c.bf16 %v845_v26, %v843_v52  ;;  %v2795_v26 = vld [vmem:[%s5260_s1 + $0xb0] sm:$0xff] }
 0x539   :  { %v3352_v57 = vpop.eup %3351  ;;  %3064 = vmatprep.subr.bf16.mxu0 %v1342_v54  ;;  %3168 = vmatprep.subr.bf16.mxu1 %v1342_v54 }
 0x53a   :  { %v3354_v22 = vpop.eup %3353  ;;  %v970_v43 = vpop.permute.xlu1 %969  ;;  %3024 = vmatprep.mubr.bf16.mxu0 %v862_v56  ;;  %3176 = vmatpush3.bf16.msra.mxu1 %v1342_v54  ;;  %v853_v42 = vmul.f32 %v3352_v57, %v4127_v41 }
 0x53b   :  { %3025 = vmatmul.mubr.bf16.gmra.mrb[24].mxu0 %v863_v37  ;;  %v3356_v20 = vpop.eup %3355  ;;  %v857_v62 = vmul.f32 %v3354_v22, %v4115_v34  ;;  %v2793_v37 = vld [vmem:[%s5260_s1 + $0xa0] sm:$0xff] }
 0x53c   :  { %v864_v14 = vpack.c.bf16 %v853_v42, %v851_v1  ;;  %v855_v18 = vmul.f32 %v3356_v20, %v4100_v19  ;;  %v1346_v60 = vpop.permute.xlu0 %1345  ;;  %v2800_v20 = vld [vmem:[%s5260_s1 + $0xd8] sm:$0xff] }
 0x53e   :  { %v974_v33 = vpop.permute.xlu1 %973  ;;  %3028 = vmatprep.mubr.bf16.mxu0 %v864_v14  ;;  %v865_v35 = vpack.c.bf16 %v857_v62, %v855_v18 }
 0x542   :  { %v978_v55 = vpop.permute.xlu1 %977 }
 0x543   :  { %3029 = vmatmul.mubr.bf16.gmra.mrb[28].mxu0 %v865_v35  ;;  %v2799_v35 = vld [vmem:[%s5260_s1 + $0xd0] sm:$0xff] }
 0x544   :  { %3048 = vmatprep.mubr.msk.bf16.mxu0 %vm520_vm1, %v964_v30 }
 0x546   :  { %v1344_v59 = vpop.permute.xlu1 %1343 }
 0x547   :  { %3169 = vmatprep.subr.bf16.mxu1 %v1344_v59 }
 0x548   :  { %3177 = vmatpush3.bf16.msra.mxu1 %v1344_v59 }
 0x549   :  { %3170 = vmatprep.subr.bf16.mxu1 %v1346_v60 }
 0x54b   :  { %3049 = vmatmul.mubr.msk.bf16.vlgmr.msra.gmra.mrb[32].mxu0 %vm520_vm1, %v966_v23 }
 0x54c   :  { %3065 = vmatpush3.bf16.msra.mxu0 %v1342_v54  ;;  %3052 = vmatprep.mubr.msk.bf16.mxu0 %vm520_vm1, %v968_v32  ;;  %v2794_v54 = vld [vmem:[%s5260_s1 + $0xa8] sm:$0xff] }
 0x54d   :  { %3066 = vmatprep.subr.bf16.mxu0 %v1344_v59  ;;  %3178 = vmatpush3.bf16.msra.mxu1 %v1346_v60 }
 0x550   :  { %3067 = vmatpush3.bf16.msra.mxu0 %v1344_v59 }
 0x551   :  { %3068 = vmatprep.subr.bf16.mxu0 %v1346_v60 }
 0x553   :  { %3053 = vmatmul.mubr.msk.bf16.gmra.mrb[36].mxu0 %vm520_vm1, %v970_v43 }
 0x554   :  { %3069 = vmatpush3.bf16.msra.mxu0 %v1346_v60  ;;  %3056 = vmatprep.mubr.msk.bf16.mxu0 %vm520_vm1, %v972_v36  ;;  %v2798_v60 = vld [vmem:[%s5260_s1 + $0xc8] sm:$0xff] }
 0x55b   :  { %3057 = vmatmul.mubr.msk.bf16.gmra.mrb[40].mxu0 %vm520_vm1, %v974_v33 }
 0x55c   :  { %3060 = vmatprep.mubr.msk.bf16.mxu0 %vm520_vm1, %v976_v11  ;;  %v2796_v11 = vld [vmem:[%s5260_s1 + $0xb8] sm:$0xff] }
 0x563   :  { %3061 = vmatmul.mubr.msk.bf16.gmra.mrb[44].mxu0 %vm520_vm1, %v978_v55 }
 0x5c5   :  { %v4192_v19 = vpop.f32.mrb[16].mxu0 }
 0x5c6   :  { %v4194_v17 = vpop.f32.mrb[17].mxu0 }
 0x5c7   :  { %v4196_v34 = vpop.f32.mrb[18].mxu0 }
 0x5c8   :  { %v4198_v41 = vpop.f32.mrb[19].mxu0 }
 0x5fd   :  { %v4200_v61 = vpop.f32.mrb[20].mxu0 }
 0x5fe   :  { %v4202_v21 = vpop.f32.mrb[21].mxu0 }
 0x5ff   :  { %v4204_v47 = vpop.f32.mrb[22].mxu0 }
 0x600   :  { %v4206_v2 = vpop.f32.mrb[23].mxu0 }
 0x60e   :  { %v4208_v4 = vpop.f32.mrb[24].mxu0 }
 0x60f   :  { %v4210_v46 = vpop.f32.mrb[25].mxu0 }
 0x610   :  { %v4212_v45 = vpop.f32.mrb[26].mxu0 }
 0x611   :  { %v4214_v51 = vpop.f32.mrb[27].mxu0 }
 0x616   :  { %v4216_v5 = vpop.f32.mrb[28].mxu0 }
 0x617   :  { %v4218_v10 = vpop.f32.mrb[29].mxu0 }
 0x618   :  { %v4220_v25 = vpop.f32.mrb[30].mxu0 }
 0x619   :  { %v4222_v7 = vpop.f32.mrb[31].mxu0 }
 0x61e   :  { %v3050_v6 = vpop.f32.mrb[32].mxu0 }
 0x61f   :  { %v1142_v31 = vmul.f32 0.25, %v3050_v6  ;;  %v1077_v13 = vpop.f32.mrb[33].mxu0 }
 0x620   :  { %v3051_v3 = vpop.f32.mrb[34].mxu0  ;;  %v1140_v0 = vmul.f32 0.25, %v1077_v13 }
 0x621   :  { %v4227_v27 = vadd.f32 %v2791_v58, %v1142_v31  ;;  %v1080_v30 = vpop.f32.mrb[35].mxu0  ;;  %v1143_v38 = vmul.f32 0.25, %v3051_v3  ;;  %v2797_v31 = vld [vmem:[%s5260_s1 + $0xc0] sm:$0xff] }
 0x622   :  { %v1141_v32 = vmul.f32 0.25, %v1080_v30  ;;  %v4238_v36 = vadd.f32 %v2789_v8, %v1140_v0 }
 0x623   :  { %1193 = vmax.xlane.f32.xlu0 %v4227_v27  ;;  %v4248_v12 = vadd.f32 %v2792_v24, %v1143_v38  ;;  %v2803_v38 = vld [vmem:[%s5260_s1 + $0xf0] sm:$0xff] }
 0x624   :  { %v4236_v63 = vadd.f32 %v2790_v15, %v1141_v32 }
 0x626   :  { %1191 = vmax.xlane.f32.xlu1 %v4236_v63  ;;  %v3054_v53 = vpop.f32.mrb[36].mxu0 }
 0x627   :  { %1189 = vmax.xlane.f32.xlu0 %v4238_v36  ;;  %v1093_v9 = vpop.f32.mrb[37].mxu0  ;;  %v1146_v44 = vmul.f32 0.25, %v3054_v53 }
 0x628   :  { %v3055_v48 = vpop.f32.mrb[38].mxu0  ;;  %v1144_v57 = vmul.f32 0.25, %v1093_v9  ;;  %v2801_v9 = vld [vmem:[%s5260_s1 + $0xe0] sm:$0xff] }
 0x629   :  { %v1147_v23 = vmul.f32 0.25, %v3055_v48  ;;  %v1096_v52 = vpop.f32.mrb[39].mxu0  ;;  %v4259_v56 = vadd.f32 %v2795_v26, %v1146_v44  ;;  %v2804_v44 = vld [vmem:[%s5260_s1 + $0xf8] sm:$0xff]  ;;  %v2802_v26 = vld [vmem:[%s5260_s1 + $0xe8] sm:$0xff] }
 0x62a   :  { %v1145_v29 = vmul.f32 0.25, %v1096_v52  ;;  %v4271_v14 = vadd.f32 %v2793_v37, %v1144_v57 }
 0x62b   :  { %v4253_v28 = vadd.f32 %v2796_v11, %v1147_v23  ;;  %1195 = vmax.xlane.f32.xlu0 %v4248_v12 }
 0x62c   :  { %v4265_v43 = vadd.f32 %v2794_v54, %v1145_v29 }
 0x62d   :  { %1203 = vmax.xlane.f32.xlu1 %v4253_v28 }
 0x62e   :  { %v3058_v22 = vpop.f32.mrb[40].mxu0 }
 0x62f   :  { %1201 = vmax.xlane.f32.xlu0 %v4259_v56  ;;  %v1109_v1 = vpop.f32.mrb[41].mxu0  ;;  %v1150_v62 = vmul.f32 0.25, %v3058_v22 }
 0x630   :  { %v3059_v42 = vpop.f32.mrb[42].mxu0  ;;  %v1148_v58 = vmul.f32 0.25, %v1109_v1 }
 0x631   :  { %v1151_v33 = vmul.f32 0.25, %v3059_v42  ;;  %1199 = vmax.xlane.f32.xlu1 %v4265_v43  ;;  %v1112_v18 = vpop.f32.mrb[43].mxu0  ;;  %v4283_v6 = vadd.f32 %v2799_v35, %v1150_v62 }
 0x632   :  { %v1149_v59 = vmul.f32 0.25, %v1112_v18  ;;  %v4292_v15 = vadd.f32 %v2797_v31, %v1148_v58 }
 0x633   :  { %v4277_v55 = vadd.f32 %v2800_v20, %v1151_v33  ;;  %1197 = vmax.xlane.f32.xlu0 %v4271_v14 }
 0x634   :  { %v4289_v3 = vadd.f32 %v2798_v60, %v1149_v59 }
 0x635   :  { %1211 = vmax.xlane.f32.xlu1 %v4277_v55 }
 0x636   :  { %v3062_v13 = vpop.f32.mrb[44].mxu0 }
 0x637   :  { %1209 = vmax.xlane.f32.xlu0 %v4283_v6  ;;  %v1125_v0 = vpop.f32.mrb[45].mxu0  ;;  %v1154_v8 = vmul.f32 0.25, %v3062_v13 }
 0x638   :  { %v3063_v30 = vpop.f32.mrb[46].mxu0  ;;  %v1152_v53 = vmul.f32 0.25, %v1125_v0 }
 0x639   :  { %1207 = vmax.xlane.f32.xlu1 %v4289_v3  ;;  %v1128_v32 = vpop.f32.mrb[47].mxu0  ;;  %v4299_v24 = vadd.f32 %v2803_v38, %v1154_v8  ;;  %v1155_v11 = vmul.f32 0.25, %v3063_v30 }
 0x63a   :  { %v4305_v48 = vadd.f32 %v2801_v9, %v1152_v53  ;;  %v1153_v52 = vmul.f32 0.25, %v1128_v32 }
 0x63b   :  { %1205 = vmax.xlane.f32.xlu0 %v4292_v15  ;;  %v4315_v23 = vadd.f32 %v2804_v44, %v1155_v11 }
 0x63c   :  { %v4321_v29 = vadd.f32 %v2802_v26, %v1153_v52 }
 0x63f   :  { %1217 = vmax.xlane.f32.xlu0 %v4299_v24 }
 0x643   :  { %1213 = vmax.xlane.f32.xlu0 %v4305_v48 }
 0x64a   :  { %1349 = vrot.lane.b32.xlu1 %v3900_v40, %s3537_s19 }
 0x659   :  { %1347 = vrot.lane.b32.xlu0 %v3885_v16, %s3537_s19 }
 0x66e   :  { %1219 = vmax.xlane.f32.xlu1 %v4315_v23 }
 0x672   :  { %1215 = vmax.xlane.f32.xlu1 %v4321_v29 }
 0x683   :  { %1351 = vrot.lane.b32.xlu1 %v3897_v39, %s3537_s19 }
 0x6b0   :  { %v1194_v16 = vpop.xlane.xlu0 %1193 }
 0x6b1   :  { %v1223_v40 = vsub.f32 %v4227_v27, %v1194_v16 }
 0x6b3   :  { %v1241_v54 = vmul.f32 1.442695, %v1223_v40  ;;  %v1192_v37 = vpop.xlane.xlu1 %1191 }
 0x6b4   :  { %v1190_v57 = vpop.xlane.xlu0 %1189  ;;  %v1222_v42 = vsub.f32 %v4236_v63, %v1192_v37 }
 0x6b5   :  { %3357 = vpow2.f32 %v1241_v54  ;;  %v1221_v22 = vsub.f32 %v4238_v36, %v1190_v57 }
 0x6b6   :  { %v1239_v35 = vmul.f32 1.442695, %v1222_v42 }
 0x6b7   :  { %v1237_v1 = vmul.f32 1.442695, %v1221_v22 }
 0x6b8   :  { %v1196_v20 = vpop.xlane.xlu0 %1195 }
 0x6b9   :  { %3359 = vpow2.f32 %v1237_v1  ;;  %v1224_v62 = vsub.f32 %v4248_v12, %v1196_v20 }
 0x6ba   :  { %v1204_v33 = vpop.xlane.xlu1 %1203 }
 0x6bb   :  { %v1243_v18 = vmul.f32 1.442695, %v1224_v62  ;;  %v1228_v31 = vsub.f32 %v4253_v28, %v1204_v33 }
 0x6bc   :  { %v1202_v39 = vpop.xlane.xlu0 %1201 }
 0x6bd   :  { %3361 = vpow2.f32 %v1243_v18  ;;  %v1227_v27 = vsub.f32 %v4259_v56, %v1202_v39  ;;  %v1251_v32 = vmul.f32 1.442695, %v1228_v31 }
 0x6be   :  { %v1200_v59 = vpop.xlane.xlu1 %1199  ;;  %3363 = vpow2.f32 %v1239_v35 }
 0x6bf   :  { %v4331_v60 = vpop.eup %3357  ;;  %v1249_v58 = vmul.f32 1.442695, %v1227_v27  ;;  %v1226_v36 = vsub.f32 %v4265_v43, %v1200_v59 }
 0x6c0   :  { %1273 = vadd.xlane.f32.xlu1 %v4331_v60  ;;  %v1198_v63 = vpop.xlane.xlu0 %1197 }
 0x6c1   :  { %3365 = vpow2.f32 %v1249_v58  ;;  %v1247_v12 = vmul.f32 1.442695, %v1226_v36  ;;  %v1225_v13 = vsub.f32 %v4271_v14, %v1198_v63 }
 0x6c2   :  { %v1212_v56 = vpop.xlane.xlu1 %1211 }
 0x6c3   :  { %v4337_v0 = vpop.eup %3359  ;;  %v1245_v30 = vmul.f32 1.442695, %v1225_v13  ;;  %3367 = vpow2.f32 %v1247_v12  ;;  %v1232_v28 = vsub.f32 %v4277_v55, %v1212_v56 }
 0x6c4   :  { %1269 = vadd.xlane.f32.xlu1 %v4337_v0  ;;  %v1210_v8 = vpop.xlane.xlu0 %1209 }
 0x6c5   :  { %3369 = vpow2.f32 %v1245_v30  ;;  %v1231_v43 = vsub.f32 %v4283_v6, %v1210_v8  ;;  %v1259_v16 = vmul.f32 1.442695, %v1232_v28 }
 0x6c6   :  { %3371 = vpow2.f32 %v1251_v32  ;;  %v1208_v9 = vpop.xlane.xlu1 %1207 }
 0x6c7   :  { %v4341_v38 = vpop.eup %3361  ;;  %v1257_v53 = vmul.f32 1.442695, %v1231_v43  ;;  %v1230_v6 = vsub.f32 %v4289_v3, %v1208_v9 }
 0x6c8   :  { %1275 = vadd.xlane.f32.xlu1 %v4341_v38  ;;  %v1206_v14 = vpop.xlane.xlu0 %1205  ;;  %v4346_v44 = vpop.eup %3363 }
 0x6c9   :  { %v1229_v11 = vsub.f32 %v4292_v15, %v1206_v14  ;;  %3373 = vpow2.f32 %v1257_v53  ;;  %v1255_v37 = vmul.f32 1.442695, %v1230_v6 }
 0x6ca   :  { %v1350_v62 = vpop.permute.xlu1 %1349 }
 0x6cb   :  { %v4348_v52 = vpop.eup %3365  ;;  %v1253_v26 = vmul.f32 1.442695, %v1229_v11 }
 0x6cc   :  { %1271 = vadd.xlane.f32.xlu1 %v4346_v44  ;;  %1281 = vadd.xlane.f32.xlu0 %v4348_v52  ;;  %v1218_v55 = vpop.xlane.xlu0 %1217 }
 0x6cd   :  { %3375 = vpow2.f32 %v1253_v26  ;;  %v1235_v40 = vsub.f32 %v4299_v24, %v1218_v55  ;;  %v4354_v54 = vpop.eup %3367 }
 0x6ce   :  { %3377 = vpow2.f32 %v1259_v16 }
 0x6cf   :  { %v4356_v15 = vpop.eup %3369  ;;  %v1265_v57 = vmul.f32 1.442695, %v1235_v40 }
 0x6d0   :  { %1279 = vadd.xlane.f32.xlu1 %v4354_v54  ;;  %1277 = vadd.xlane.f32.xlu0 %v4356_v15  ;;  %v1214_v3 = vpop.xlane.xlu0 %1213  ;;  %v4361_v1 = vpop.eup %3371 }
 0x6d1   :  { %3379 = vpow2.f32 %v1265_v57  ;;  %v1233_v22 = vsub.f32 %v4305_v48, %v1214_v3 }
 0x6d2   :  { %3381 = vpow2.f32 %v1255_v37 }
 0x6d3   :  { %v1261_v42 = vmul.f32 1.442695, %v1233_v22  ;;  %v4364_v20 = vpop.eup %3373 }
 0x6d4   :  { %1283 = vadd.xlane.f32.xlu0 %v4361_v1  ;;  %v1348_v24 = vpop.permute.xlu0 %1347 }
 0x6d5   :  { %3383 = vpow2.f32 %v1261_v42  ;;  %3070 = vmatprep.subr.bf16.mxu0 %v1348_v24  ;;  %3171 = vmatprep.subr.bf16.mxu1 %v1348_v24 }
 0x6d6   :  { %3071 = vmatpush3.bf16.msra.mxu0 %v1348_v24  ;;  %3179 = vmatpush3.bf16.msra.mxu1 %v1348_v24 }
 0x6d7   :  { %v4366_v33 = vpop.eup %3375  ;;  %3072 = vmatprep.subr.bf16.mxu0 %v1350_v62  ;;  %3172 = vmatprep.subr.bf16.mxu1 %v1350_v62 }
 0x6d8   :  { %1289 = vadd.xlane.f32.xlu0 %v4364_v20  ;;  %1285 = vadd.xlane.f32.xlu1 %v4366_v33  ;;  %v4370_v48 = vpop.eup %3377 }
 0x6da   :  { %3073 = vmatpush3.bf16.msra.mxu0 %v1350_v62  ;;  %3180 = vmatpush3.bf16.msra.mxu1 %v1350_v62 }
 0x6db   :  { %v4372_v18 = vpop.eup %3379 }
 0x6dc   :  { %1291 = vadd.xlane.f32.xlu0 %v4370_v48  ;;  %1297 = vadd.xlane.f32.xlu1 %v4372_v18  ;;  %v4376_v35 = vpop.eup %3381 }
 0x6df   :  { %v4378_v39 = vpop.eup %3383 }
 0x6e0   :  { %1287 = vadd.xlane.f32.xlu0 %v4376_v35  ;;  %1293 = vadd.xlane.f32.xlu1 %v4378_v39 }
 0x6f1   :  { %1355 = vrot.lane.b32.xlu1 %v3909_v49, %s3537_s19 }
 0x6f6   :  { %1353 = vrot.lane.b32.xlu0 %v3911_v50, %s3537_s19 }
 0x6fb   :  { %v1220_v27 = vpop.xlane.xlu1 %1219 }
 0x6fc   :  { %v1236_v63 = vsub.f32 %v4315_v23, %v1220_v27 }
 0x6fe   :  { %v1267_v12 = vmul.f32 1.442695, %v1236_v63 }
 0x6ff   :  { %v1216_v59 = vpop.xlane.xlu1 %1215 }
 0x700   :  { %v1234_v58 = vsub.f32 %v4321_v29, %v1216_v59 }
 0x702   :  { %v1263_v31 = vmul.f32 1.442695, %v1234_v58 }
 0x703   :  { %v1352_v36 = vpop.permute.xlu1 %1351 }
 0x704   :  { %3074 = vmatprep.subr.bf16.mxu0 %v1352_v36  ;;  %3173 = vmatprep.subr.bf16.mxu1 %v1352_v36  ;;  %3385 = vpow2.f32 %v1263_v31 }
 0x705   :  { %3075 = vmatpush3.bf16.msra.mxu0 %v1352_v36  ;;  %3181 = vmatpush3.bf16.msra.mxu1 %v1352_v36  ;;  %3387 = vpow2.f32 %v1267_v12 }
 0x70e   :  { %v4388_v13 = vpop.eup %3385 }
 0x70f   :  { %v4391_v49 = vpop.eup %3387 }
 0x715   :  { %1295 = vadd.xlane.f32.xlu0 %v4388_v13 }
 0x719   :  { %1299 = vadd.xlane.f32.xlu0 %v4391_v49 }
 0x74d   :  { %v1274_v50 = vpop.xlane.xlu1 %1273 }
 0x751   :  { %v1270_v29 = vpop.xlane.xlu1 %1269 }
 0x752   :  { %3389 = vrcp.f32 %v1270_v29 }
 0x755   :  { %v1276_v30 = vpop.xlane.xlu1 %1275 }
 0x759   :  { %v1272_v56 = vpop.xlane.xlu1 %1271  ;;  %v1282_v8 = vpop.xlane.xlu0 %1281 }
 0x75a   :  { %3391 = vrcp.f32 %v1272_v56 }
 0x75c   :  { %v3390_v28 = vpop.eup %3389 }
 0x75d   :  { %v1280_v23 = vpop.xlane.xlu1 %1279  ;;  %v1278_v32 = vpop.xlane.xlu0 %1277  ;;  %v1302_v11 = vmul.f32 %v3390_v28, %v4337_v0 }
 0x75e   :  { %3393 = vrcp.f32 %v1280_v23 }
 0x75f   :  { %3395 = vrcp.f32 %v1278_v32 }
 0x760   :  { %3397 = vrcp.f32 %v1276_v30 }
 0x761   :  { %v1284_v43 = vpop.xlane.xlu0 %1283 }
 0x762   :  { %3399 = vrcp.f32 %v1284_v43 }
 0x763   :  { %3401 = vrcp.f32 %v1274_v50 }
 0x764   :  { %v3392_v53 = vpop.eup %3391  ;;  %3403 = vrcp.f32 %v1282_v8 }
 0x765   :  { %v1286_v14 = vpop.xlane.xlu1 %1285  ;;  %v1290_v9 = vpop.xlane.xlu0 %1289  ;;  %v1304_v26 = vmul.f32 %v3392_v53, %v4346_v44 }
 0x766   :  { %3405 = vrcp.f32 %v1286_v14 }
 0x767   :  { %v1333_v16 = vpack.c.bf16 %v1304_v26, %v1302_v11 }
 0x768   :  { %v3394_v6 = vpop.eup %3393 }
 0x769   :  { %v3396_v55 = vpop.eup %3395  ;;  %3080 = vmatprep.mubr.bf16.mxu0 %v1333_v16  ;;  %v1298_v40 = vpop.xlane.xlu1 %1297  ;;  %v1312_v37 = vmul.f32 %v3394_v6, %v4354_v54  ;;  %v3249_v16 = vld [vmem:[%s5261_s6] sm:$0xff]  }
 0x76a   :  { %v1292_v57 = vpop.xlane.xlu0 %1291  ;;  %v1310_v3 = vmul.f32 %v3396_v55, %v4356_v15  ;;  %v3398_v44 = vpop.eup %3397 }
 0x76b   :  { %3407 = vrcp.f32 %v1292_v57  ;;  %v1308_v54 = vmul.f32 %v3398_v44, %v4341_v38 }
 0x76c   :  { %v1335_v22 = vpack.c.bf16 %v1312_v37, %v1310_v3  ;;  %v3400_v24 = vpop.eup %3399 }
 0x76d   :  { %v1294_v42 = vpop.xlane.xlu1 %1293  ;;  %v3402_v27 = vpop.eup %3401  ;;  %v1316_v15 = vmul.f32 %v3400_v24, %v4361_v1 }
 0x76e   :  { %v1288_v0 = vpop.xlane.xlu0 %1287  ;;  %3084 = vmatprep.mubr.bf16.mxu1 %v1335_v22  ;;  %v3404_v59 = vpop.eup %3403  ;;  %v1306_v36 = vmul.f32 %v3402_v27, %v4331_v60 }
 0x76f   :  { %3409 = vrcp.f32 %v1288_v0  ;;  %v1314_v63 = vmul.f32 %v3404_v59, %v4348_v52 }
 0x770   :  { %3411 = vrcp.f32 %v1290_v9  ;;  %v3406_v31 = vpop.eup %3405  ;;  %v1334_v50 = vpack.c.bf16 %v1308_v54, %v1306_v36 }
 0x771   :  { %v1356_v58 = vpop.permute.xlu1 %1355  ;;  %v1336_v29 = vpack.c.bf16 %v1316_v15, %v1314_v63  ;;  %v1318_v56 = vmul.f32 %v3406_v31, %v4366_v33  ;;  %3413 = vrcp.f32 %v1294_v42 }
 0x772   :  { %v1354_v62 = vpop.permute.xlu0 %1353 }
 0x773   :  { %3076 = vmatprep.subr.bf16.mxu0 %v1354_v62  ;;  %3174 = vmatprep.subr.bf16.mxu1 %v1354_v62 }
 0x774   :  { %3077 = vmatpush3.bf16.msra.mxu0 %v1354_v62  ;;  %3182 = vmatpush3.bf16.msra.mxu1 %v1354_v62 }
 0x775   :  { %3078 = vmatprep.subr.bf16.mxu0 %v1356_v58  ;;  %3175 = vmatprep.subr.bf16.mxu1 %v1356_v58  ;;  %v3408_v12 = vpop.eup %3407 }
 0x776   :  { %v1324_v23 = vmul.f32 %v3408_v12, %v4370_v48 }
 0x778   :  { %3079 = vmatpush3.bf16.msra.mxu0 %v1356_v58  ;;  %3183 = vmatpush3.bf16.msra.mxu1 %v1356_v58 }
 0x779   :  { %v3410_v30 = vpop.eup %3409  ;;  %3096 = vmatprep.subr.bf16.mxu1 %v3249_v16 }
 0x77a   :  { %v1320_v38 = vmul.f32 %v3410_v30, %v4376_v35  ;;  %v3412_v1 = vpop.eup %3411 }
 0x77b   :  { %3081 = vmatmul.mubr.bf16.vlgmr.msra.gmra.mrb[48].mxu0 %v1334_v50  ;;  %3085 = vmatmul.mubr.bf16.vlgmr.msra.gmra.mrb[16].mxu1 %v1336_v29  ;;  %v1322_v60 = vmul.f32 %v3412_v1, %v4364_v20  ;;  %v3414_v28 = vpop.eup %3413 }
 0x77c   :  { %v1337_v8 = vpack.c.bf16 %v1320_v38, %v1318_v56  ;;  %v1326_v33 = vmul.f32 %v3414_v28, %v4378_v39  ;;  %3097 = vmatpush3.bf16.msra.mxu1 %v3249_v16  ;;  %v3250_v39 = vld [vmem:[%s5261_s6 + $0x8] sm:$0xff]  }
 0x77d   :  { %v1338_v52 = vpack.c.bf16 %v1324_v23, %v1322_v60  ;;  %3098 = vmatprep.subr.bf16.mxu1 %v3250_v39 }
 0x77e   :  { %3088 = vmatprep.mubr.bf16.mxu1 %v1337_v8 }
 0x780   :  { %3099 = vmatpush3.bf16.msra.mxu1 %v3250_v39 }
 0x783   :  { %3089 = vmatmul.mubr.bf16.gmra.mrb[20].mxu1 %v1338_v52 }
 0x7a2   :  { %v1296_v32 = vpop.xlane.xlu0 %1295 }
 0x7a3   :  { %3415 = vrcp.f32 %v1296_v32 }
 0x7a4   :  { %3417 = vrcp.f32 %v1298_v40 }
 0x7a6   :  { %v1300_v43 = vpop.xlane.xlu0 %1299 }
 0x7a7   :  { %3419 = vrcp.f32 %v1300_v43 }
 0x7ad   :  { %v3416_v53 = vpop.eup %3415 }
 0x7ae   :  { %v1328_v35 = vmul.f32 %v3416_v53, %v4388_v13  ;;  %v3418_v14 = vpop.eup %3417 }
 0x7af   :  { %v1330_v20 = vmul.f32 %v3418_v14, %v4372_v18 }
 0x7b0   :  { %v1339_v9 = vpack.c.bf16 %v1328_v35, %v1326_v33 }
 0x7b1   :  { %v3420_v48 = vpop.eup %3419 }
 0x7b2   :  { %3092 = vmatprep.mubr.bf16.mxu1 %v1339_v9  ;;  %v1332_v11 = vmul.f32 %v3420_v48, %v4391_v49 }
 0x7b4   :  { %v1340_v26 = vpack.c.bf16 %v1332_v11, %v1330_v20 }
 0x7b6   :  { %3093 = vmatmul.mubr.bf16.gmra.mrb[24].mxu1 %v1340_v26 }
 0x84e   :  { %v3082_v13 = vpop.f32.mrb[48].mxu0  ;;  %v3086_v6 = vpop.f32.mrb[16].mxu1 }
 0x84f   :  { %v1399_v55 = vpop.f32.mrb[49].mxu0  ;;  %v1415_v18 = vpop.f32.mrb[17].mxu1 }
 0x850   :  { %v3083_v40 = vpop.f32.mrb[50].mxu0  ;;  %v3087_v49 = vpop.f32.mrb[18].mxu1 }
 0x851   :  { %v3212_v57 = vpack.i.bf16 %v3083_v40, %v3082_v13  ;;  %v3222_v37 = vpack.i.bf16 %v3087_v49, %v3086_v6  ;;  %v1402_v3 = vpop.f32.mrb[51].mxu0  ;;  %v1418_v22 = vpop.f32.mrb[19].mxu1 }
 0x852   :  { %v3207_v42 = vpack.i.bf16 %v1402_v3, %v1399_v55  ;;  %v3217_v0 = vpack.i.bf16 %v1418_v22, %v1415_v18 }
 0x853   :  { %3213 = vrot.lane.b32.xlu1 %v3212_v57, %s3538_s16 }
 0x854   :  { %3208 = vrot.lane.b32.xlu0 %v3207_v42, %s3538_s16 }
 0x856   :  { %v3090_v44 = vpop.f32.mrb[20].mxu1 }
 0x857   :  { %v1431_v24 = vpop.f32.mrb[21].mxu1  ;;  %3218 = vrot.lane.b32.xlu1 %v3217_v0, %s3538_s16 }
 0x858   :  { %v3091_v62 = vpop.f32.mrb[22].mxu1 }
 0x859   :  { %v3232_v27 = vpack.i.bf16 %v3091_v62, %v3090_v44  ;;  %v1434_v59 = vpop.f32.mrb[23].mxu1  ;;  %v4459_v44 = vld [vmem:[%s5262_s7] ss:$0 sm:$0xff] }
 0x85a   :  { %v3227_v58 = vpack.i.bf16 %v1434_v59, %v1431_v24 }
 0x85b   :  { %3223 = vrot.lane.b32.xlu1 %v3222_v37, %s3538_s16 }
 0x85c   :  { %3228 = vrot.lane.b32.xlu0 %v3227_v58, %s3538_s16 }
 0x85f   :  { %3233 = vrot.lane.b32.xlu1 %v3232_v27, %s3538_s16 }
 0x889   :  { %v3094_v54 = vpop.f32.mrb[24].mxu1 }
 0x88a   :  { %v1447_v15 = vpop.f32.mrb[25].mxu1 }
 0x88b   :  { %v3095_v36 = vpop.f32.mrb[26].mxu1 }
 0x88c   :  { %v3242_v63 = vpack.i.bf16 %v3095_v36, %v3094_v54  ;;  %v1450_v31 = vpop.f32.mrb[27].mxu1  ;;  %v3518_v54 = vld [vmem:[%s5255_s0 + $0x10] sm:$0xff] }
 0x88d   :  { %v3237_v12 = vpack.i.bf16 %v1450_v31, %v1447_v15 }
 0x88e   :  { %3243 = vrot.lane.b32.xlu1 %v3242_v63, %s3538_s16  ;;  %v3519_v63 = vld [vmem:[%s5255_s0 + $0x8] sm:$0xff] }
 0x88f   :  { %3238 = vrot.lane.b32.xlu0 %v3237_v12, %s3538_s16 }
 0x8c5   :  { %v3214_v50 = vpop.permute.xlu1 %3213 }
 0x8c6   :  { %v3216_v29 = vunpack.i.h.bf16 %v3214_v50  ;;  %v3215_v30 = vunpack.i.l.bf16 %v3214_v50  ;;  %v3209_v56 = vpop.permute.xlu0 %3208 }
 0x8c7   :  { %v3211_v38 = vunpack.i.h.bf16 %v3209_v56  ;;  %v3210_v1 = vunpack.i.l.bf16 %v3209_v56  ;;  %v3520_v56 = vld [vmem:[%s5255_s0 + $0x18] sm:$0xff] }
 0x8c8   :  { %v1529_v8 = vsel %vm520_vm1, %v4196_v34, %v3216_v29  ;;  %v1528_v23 = vsel %vm520_vm1, %v4192_v19, %v3215_v30 }
 0x8c9   :  { %v1543_v60 = vpack.c.bf16 %v1529_v8, %v1528_v23  ;;  %v1527_v52 = vsel %vm520_vm1, %v4198_v41, %v3211_v38  ;;  %v1526_v32 = vsel %vm520_vm1, %v4194_v17, %v3210_v1  ;;  %v3219_v43 = vpop.permute.xlu1 %3218 }
 0x8ca   :  { %v1542_v28 = vpack.c.bf16 %v1527_v52, %v1526_v32  ;;  %v3221_v53 = vunpack.i.h.bf16 %v3219_v43  ;;  %v3220_v33 = vunpack.i.l.bf16 %v3219_v43 }
 0x8cc   :  { %v1531_v35 = vsel %vm520_vm1, %v4206_v2, %v3221_v53  ;;  %v1530_v34 = vsel %vm520_vm1, %v4202_v21, %v3220_v33  ;;  %3100 = vmatprep.mubr.msk.bf16.mxu1 %vm66_vm0, %v1542_v28  ;;  %v3521_v28 = vld [vmem:[%s5255_s0 + $0x20] sm:$0xff]  ;;  %v3522_v33 = vld [vmem:[%s5255_s0 + $0x28] sm:$0xff] }
 0x8cd   :  { %v1544_v19 = vpack.c.bf16 %v1531_v35, %v1530_v34  ;;  %v3224_v14 = vpop.permute.xlu1 %3223  ;;  %3101 = vmatmul.mubr.msk.bf16.vlgmr.msra.gmra.mrb[28].mxu1 %vm66_vm0, %v1543_v60 }
 0x8ce   :  { %v3226_v41 = vunpack.i.h.bf16 %v3224_v14  ;;  %v3225_v9 = vunpack.i.l.bf16 %v3224_v14  ;;  %v3229_v48 = vpop.permute.xlu0 %3228 }
 0x8cf   :  { %v3231_v17 = vunpack.i.h.bf16 %v3229_v48  ;;  %v3230_v20 = vunpack.i.l.bf16 %v3229_v48  ;;  %3104 = vmatprep.mubr.msk.bf16.mxu1 %vm66_vm0, %v1544_v19  ;;  %v3523_v19 = vld [vmem:[%s5255_s0 + $0x38] sm:$0xff] }
 0x8d0   :  { %v1533_v11 = vsel %vm520_vm1, %v4204_v47, %v3226_v41  ;;  %v1532_v2 = vsel %vm520_vm1, %v4200_v61, %v3225_v9 }
 0x8d1   :  { %v1545_v21 = vpack.c.bf16 %v1533_v11, %v1532_v2  ;;  %v1535_v26 = vsel %vm520_vm1, %v4214_v51, %v3231_v17  ;;  %v1534_v16 = vsel %vm520_vm1, %v4210_v46, %v3230_v20  ;;  %v3234_v39 = vpop.permute.xlu1 %3233  ;;  %v3524_v17 = vld [vmem:[%s5255_s0 + $0x30] sm:$0xff] }
 0x8d2   :  { %v1546_v13 = vpack.c.bf16 %v1535_v26, %v1534_v16  ;;  %v3236_v6 = vunpack.i.h.bf16 %v3234_v39  ;;  %v3235_v55 = vunpack.i.l.bf16 %v3234_v39 }
 0x8d4   :  { %v1537_v18 = vsel %vm520_vm1, %v4212_v45, %v3236_v6  ;;  %v1536_v47 = vsel %vm520_vm1, %v4208_v4, %v3235_v55  ;;  %v3525_v55 = vld [vmem:[%s5255_s0 + $0x40] sm:$0xff] }
 0x8d5   :  { %v1547_v40 = vpack.c.bf16 %v1537_v18, %v1536_v47  ;;  %3105 = vmatmul.mubr.msk.bf16.gmra.mrb[32].mxu1 %vm66_vm0, %v1545_v21  ;;  %v3526_v47 = vld [vmem:[%s5255_s0 + $0x48] sm:$0xff] }
 0x8d6   :  { %3108 = vmatprep.mubr.msk.bf16.mxu1 %vm66_vm0, %v1546_v13 }
 0x8dd   :  { %3109 = vmatmul.mubr.msk.bf16.gmra.mrb[36].mxu1 %vm66_vm0, %v1547_v40 }
 0x900   :  { %v3244_v61 = vpop.permute.xlu1 %3243 }
 0x901   :  { %v3246_v51 = vunpack.i.h.bf16 %v3244_v61  ;;  %v3245_v46 = vunpack.i.l.bf16 %v3244_v61  ;;  %v3239_v49 = vpop.permute.xlu0 %3238 }
 0x902   :  { %v3241_v57 = vunpack.i.h.bf16 %v3239_v49  ;;  %v3240_v37 = vunpack.i.l.bf16 %v3239_v49 }
 0x903   :  { %v1541_v3 = vsel %vm520_vm1, %v4220_v25, %v3246_v51  ;;  %v1540_v45 = vsel %vm520_vm1, %v4216_v5, %v3245_v46  ;;  %v3527_v51 = vld [vmem:[%s5255_s0 + $0x58] sm:$0xff] }
 0x904   :  { %v1549_v4 = vpack.c.bf16 %v1541_v3, %v1540_v45  ;;  %v1539_v22 = vsel %vm520_vm1, %v4222_v7, %v3241_v57  ;;  %v1538_v42 = vsel %vm520_vm1, %v4218_v10, %v3240_v37  ;;  %v3517_v10 = vld [vmem:[%s5255_s0] sm:$0xff]  ;;  %v3528_v57 = vld [vmem:[%s5255_s0 + $0x50] sm:$0xff] }
 0x905   :  { %v1548_v0 = vpack.c.bf16 %v1539_v22, %v1538_v42 }
 0x907   :  { %3112 = vmatprep.mubr.msk.bf16.mxu1 %vm66_vm0, %v1548_v0 }
 0x908   :  { %3113 = vmatmul.mubr.msk.bf16.gmra.mrb[40].mxu1 %vm66_vm0, %v1549_v4 }
 0x9a0   :  { %v3102_v25 = vpop.f32.mrb[28].mxu1 }
 0x9a1   :  { %v1631_v24 = vpop.f32.mrb[29].mxu1  ;;  %v1640_v5 = vadd.f32 %v3102_v25, %v4459_v44 }
 0x9a2   :  { %v1632_v62 = vadd.f32 %v4459_v44, %v1631_v24  ;;  %v3103_v7 = vpop.f32.mrb[30].mxu1 }
 0x9a3   :  { %v1634_v27 = vpop.f32.mrb[31].mxu1  ;;  %v4472_v15 = vadd.f32 %v3518_v54, %v1640_v5  ;;  %v1643_v36 = vadd.f32 %v3103_v7, %v4459_v44  ;;  %v3529_v7 = vld [vmem:[%s5255_s0 + $0x60] sm:$0xff] }
 0x9a4   :  { %v4466_v59 = vadd.f32 %v3517_v10, %v1632_v62  ;;  %v1635_v58 = vadd.f32 %v4459_v44, %v1634_v27 }
 0x9a5   :  { %v4487_v38 = vadd.f32 %v3520_v56, %v1643_v36  ;;  %v1718_v23 = vsel %vm66_vm0, %v4472_v15, 0.0  ;;  %v3531_v36 = vld [vmem:[%s5255_s0 + $0x68] sm:$0xff] }
 0x9a6   :  { %v4478_v31 = vadd.f32 %v3519_v63, %v1635_v58  ;;  %v1712_v12 = vsel %vm66_vm0, %v4466_v59, 0.0  ;;  %v3530_v58 = vld [vmem:[%s5255_s0 + $0x70] sm:$0xff] }
 0x9a7   :  { %1713 = vadd.xlane.f32.xlu0 %v1712_v12  ;;  %v1721_v34 = vsel %vm66_vm0, %v4487_v38, 0.0 }
 0x9a8   :  { %v3106_v50 = vpop.f32.mrb[32].mxu1  ;;  %v1715_v29 = vsel %vm66_vm0, %v4478_v31, 0.0 }
 0x9a9   :  { %v1647_v30 = vpop.f32.mrb[33].mxu1  ;;  %1716 = vadd.xlane.f32.xlu1 %v1715_v29  ;;  %v1656_v43 = vadd.f32 %v3106_v50, %v4459_v44 }
 0x9aa   :  { %v1648_v1 = vadd.f32 %v4459_v44, %v1647_v30  ;;  %v3107_v8 = vpop.f32.mrb[34].mxu1 }
 0x9ab   :  { %v1650_v60 = vpop.f32.mrb[35].mxu1  ;;  %1719 = vadd.xlane.f32.xlu0 %v1718_v23  ;;  %v1659_v52 = vadd.f32 %v3107_v8, %v4459_v44  ;;  %v4517_v20 = vadd.f32 %v3524_v17, %v1656_v43 }
 0x9ac   :  { %v1651_v32 = vadd.f32 %v4459_v44, %v1650_v60  ;;  %v4498_v53 = vadd.f32 %v3521_v28, %v1648_v1 }
 0x9ad   :  { %v4510_v14 = vadd.f32 %v3523_v19, %v1659_v52  ;;  %v1730_v61 = vsel %vm66_vm0, %v4517_v20, 0.0 }
 0x9ae   :  { %v4503_v35 = vadd.f32 %v3522_v33, %v1651_v32  ;;  %v1724_v21 = vsel %vm66_vm0, %v4498_v53, 0.0 }
 0x9af   :  { %1722 = vadd.xlane.f32.xlu0 %v1721_v34  ;;  %v1733_v13 = vsel %vm66_vm0, %v4510_v14, 0.0 }
 0x9b0   :  { %5281 = vst [vmem:[#allocation2_spill] sm:$0xff] %v4503_v35  ;;  %v3110_v41 = vpop.f32.mrb[36].mxu1  ;;  %v1727_v9 = vsel %vm66_vm0, %v4503_v35, 0.0 }
 0x9b1   :  { %v1663_v48 = vpop.f32.mrb[37].mxu1  ;;  %1728 = vadd.xlane.f32.xlu1 %v1727_v9  ;;  %v1672_v6 = vadd.f32 %v3110_v41, %v4459_v44 }
 0x9b2   :  { %v1664_v11 = vadd.f32 %v4459_v44, %v1663_v48  ;;  %v3111_v2 = vpop.f32.mrb[38].mxu1 }
 0x9b3   :  { %v1666_v26 = vpop.f32.mrb[39].mxu1  ;;  %1725 = vadd.xlane.f32.xlu0 %v1724_v21  ;;  %v1675_v16 = vadd.f32 %v3111_v2, %v4459_v44  ;;  %v4549_v37 = vadd.f32 %v3528_v57, %v1672_v6 }
 0x9b4   :  { %v1667_v39 = vadd.f32 %v4459_v44, %v1666_v26  ;;  %v4530_v18 = vadd.f32 %v3525_v55, %v1664_v11 }
 0x9b5   :  { %1734 = vadd.xlane.f32.xlu1 %v1733_v13  ;;  %v4542_v46 = vadd.f32 %v3527_v51, %v1675_v16  ;;  %5285 = vst [vmem:[#allocation6_spill] sm:$0xff] %v4549_v37  ;;  %v1742_v4 = vsel %vm66_vm0, %v4549_v37, 0.0 }
 0x9b6   :  { %5282 = vst [vmem:[#allocation3_spill] sm:$0xff] %v4530_v18  ;;  %v4535_v40 = vadd.f32 %v3526_v47, %v1667_v39  ;;  %v1736_v3 = vsel %vm66_vm0, %v4530_v18, 0.0 }
 0x9b7   :  { %1731 = vadd.xlane.f32.xlu0 %v1730_v61  ;;  %5284 = vst [vmem:[#allocation5_spill] sm:$0xff] %v4542_v46  ;;  %v1745_v45 = vsel %vm66_vm0, %v4542_v46, 0.0 }
 0x9b8   :  { %5283 = vst [vmem:[#allocation4_spill] sm:$0xff] %v4535_v40  ;;  %v1739_v49 = vsel %vm66_vm0, %v4535_v40, 0.0 }
 0x9b9   :  { %1740 = vadd.xlane.f32.xlu1 %v1739_v49 }
 0x9bb   :  { %1737 = vadd.xlane.f32.xlu0 %v1736_v3 }
 0x9bd   :  { %1746 = vadd.xlane.f32.xlu1 %v1745_v45 }
 0x9bf   :  { %1743 = vadd.xlane.f32.xlu0 %v1742_v4 }
 0x9db   :  { %v3114_v22 = vpop.f32.mrb[40].mxu1 }
 0x9dc   :  { %v1688_v42 = vadd.f32 %v3114_v22, %v4459_v44  ;;  %v1679_v0 = vpop.f32.mrb[41].mxu1 }
 0x9dd   :  { %v1680_v25 = vadd.f32 %v4459_v44, %v1679_v0  ;;  %v3115_v24 = vpop.f32.mrb[42].mxu1 }
 0x9de   :  { %v1691_v5 = vadd.f32 %v3115_v24, %v4459_v44  ;;  %v1682_v62 = vpop.f32.mrb[43].mxu1  ;;  %v4569_v54 = vadd.f32 %v3530_v58, %v1688_v42 }
 0x9df   :  { %v4563_v27 = vadd.f32 %v3529_v7, %v1680_v25  ;;  %v1683_v10 = vadd.f32 %v4459_v44, %v1682_v62  ;;  %v3532_v44 = vld [vmem:[%s5255_s0 + $0x78] sm:$0xff] }
 0x9e0   :  { %5287 = vst [vmem:[#allocation8_spill] sm:$0xff] %v4569_v54  ;;  %v4581_v50 = vadd.f32 %v3532_v44, %v1691_v5  ;;  %v1754_v30 = vsel %vm66_vm0, %v4569_v54, 0.0 }
 0x9e1   :  { %5286 = vst [vmem:[#allocation7_spill] sm:$0xff] %v4563_v27  ;;  %v4574_v63 = vadd.f32 %v3531_v36, %v1683_v10  ;;  %v1748_v12 = vsel %vm66_vm0, %v4563_v27, 0.0 }
 0x9e2   :  { %1749 = vadd.xlane.f32.xlu0 %v1748_v12  ;;  %5289 = vst [vmem:[#allocation10_spill] sm:$0xff] %v4581_v50  ;;  %v1757_v56 = vsel %vm66_vm0, %v4581_v50, 0.0 }
 0x9e3   :  { %5288 = vst [vmem:[#allocation9_spill] sm:$0xff] %v4574_v63  ;;  %v1751_v29 = vsel %vm66_vm0, %v4574_v63, 0.0 }
 0x9e4   :  { %1752 = vadd.xlane.f32.xlu1 %v1751_v29 }
 0x9e6   :  { %1755 = vadd.xlane.f32.xlu0 %v1754_v30 }
 0x9e8   :  { %1758 = vadd.xlane.f32.xlu1 %v1757_v56 }
 0xa34   :  { %v1714_v1 = vpop.xlane.xlu0 %1713 }
 0xa35   :  { %v1760_v8 = vmul.f32 0.03125, %v1714_v1 }
 0xa36   :  { %v1717_v23 = vpop.xlane.xlu1 %1716 }
 0xa37   :  { %v4590_v60 = vsub.f32 %v4466_v59, %v1760_v8  ;;  %v1761_v52 = vmul.f32 0.03125, %v1717_v23 }
 0xa38   :  { %v1720_v32 = vpop.xlane.xlu0 %1719 }
 0xa39   :  { %v4593_v43 = vsub.f32 %v4478_v31, %v1761_v52  ;;  %v1762_v28 = vmul.f32 0.03125, %v1720_v32  ;;  %v1792_v33 = vmul.f32 %v4590_v60, %v4590_v60 }
 0xa3b   :  { %v4598_v34 = vsub.f32 %v4472_v15, %v1762_v28  ;;  %v1808_v19 = vsel %vm66_vm0, %v1792_v33, 0.0  ;;  %v1793_v41 = vmul.f32 %v4593_v43, %v4593_v43 }
 0xa3c   :  { %1809 = vadd.xlane.f32.xlu0 %v1808_v19  ;;  %v1723_v9 = vpop.xlane.xlu0 %1722 }
 0xa3d   :  { %v1763_v48 = vmul.f32 0.03125, %v1723_v9  ;;  %v1811_v17 = vsel %vm66_vm0, %v1793_v41, 0.0  ;;  %v1794_v11 = vmul.f32 %v4598_v34, %v4598_v34 }
 0xa3e   :  { %1812 = vadd.xlane.f32.xlu1 %v1811_v17  ;;  %v1729_v2 = vpop.xlane.xlu1 %1728 }
 0xa3f   :  { %v4607_v21 = vsub.f32 %v4487_v38, %v1763_v48  ;;  %v1765_v26 = vmul.f32 0.03125, %v1729_v2  ;;  %v1814_v16 = vsel %vm66_vm0, %v1794_v11, 0.0  ;;  %v3251_v11 = vld [vmem:[%s5263_s10] sm:$0xff]   ;;  %v3252_v2 = vld [vmem:[%s5263_s10 + $0x8] sm:$0xff]  }
 0xa40   :  { %1815 = vadd.xlane.f32.xlu0 %v1814_v16  ;;  %v1726_v39 = vpop.xlane.xlu0 %1725  ;;  %3116 = vmatprep.subr.bf16.mxu0 %v3251_v11 }
 0xa41   :  { %v4611_v13 = vsub.f32 %v4503_v35, %v1765_v26  ;;  %v1764_v6 = vmul.f32 0.03125, %v1726_v39  ;;  %v1795_v55 = vmul.f32 %v4607_v21, %v4607_v21  ;;  %3117 = vmatpush3.bf16.msra.mxu0 %v3251_v11 }
 0xa42   :  { %v1735_v47 = vpop.xlane.xlu1 %1734  ;;  %3118 = vmatprep.subr.bf16.mxu0 %v3252_v2 }
 0xa43   :  { %v4616_v61 = vsub.f32 %v4498_v53, %v1764_v6  ;;  %v1767_v51 = vmul.f32 0.03125, %v1735_v47  ;;  %v1817_v49 = vsel %vm66_vm0, %v1795_v55, 0.0  ;;  %v1797_v57 = vmul.f32 %v4611_v13, %v4611_v13 }
 0xa44   :  { %1818 = vadd.xlane.f32.xlu1 %v1817_v49  ;;  %v1732_v3 = vpop.xlane.xlu0 %1731 }
 0xa45   :  { %v4622_v45 = vsub.f32 %v4510_v14, %v1767_v51  ;;  %v1766_v4 = vmul.f32 0.03125, %v1732_v3  ;;  %v1796_v22 = vmul.f32 %v4616_v61, %v4616_v61  ;;  %v1823_v0 = vsel %vm66_vm0, %v1797_v57, 0.0  ;;  %3119 = vmatpush3.bf16.msra.mxu0 %v3252_v2 }
 0xa46   :  { %v1741_v42 = vpop.xlane.xlu1 %1740 }
 0xa47   :  { %v4628_v25 = vsub.f32 %v4517_v20, %v1766_v4  ;;  %v1769_v24 = vmul.f32 0.03125, %v1741_v42  ;;  %v1820_v5 = vsel %vm66_vm0, %v1796_v22, 0.0  ;;  %v1799_v62 = vmul.f32 %v4622_v45, %v4622_v45 }
 0xa48   :  { %1824 = vadd.xlane.f32.xlu1 %v1823_v0  ;;  %1821 = vadd.xlane.f32.xlu0 %v1820_v5  ;;  %v1738_v7 = vpop.xlane.xlu0 %1737 }
 0xa49   :  { %v4634_v10 = vsub.f32 %v4535_v40, %v1769_v24  ;;  %v1768_v58 = vmul.f32 0.03125, %v1738_v7  ;;  %v1798_v36 = vmul.f32 %v4628_v25, %v4628_v25  ;;  %v1829_v44 = vsel %vm66_vm0, %v1799_v62, 0.0 }
 0xa4a   :  { %v1747_v12 = vpop.xlane.xlu1 %1746 }
 0xa4b   :  { %v4640_v29 = vsub.f32 %v4530_v18, %v1768_v58  ;;  %v1771_v30 = vmul.f32 0.03125, %v1747_v12  ;;  %v1826_v56 = vsel %vm66_vm0, %v1798_v36, 0.0  ;;  %v1801_v1 = vmul.f32 %v4634_v10, %v4634_v10 }
 0xa4c   :  { %1830 = vadd.xlane.f32.xlu1 %v1829_v44  ;;  %1827 = vadd.xlane.f32.xlu0 %v1826_v56  ;;  %v1744_v8 = vpop.xlane.xlu0 %1743 }
 0xa4d   :  { %v4646_v23 = vsub.f32 %v4542_v46, %v1771_v30  ;;  %v1770_v52 = vmul.f32 0.03125, %v1744_v8  ;;  %v1800_v32 = vmul.f32 %v4640_v29, %v4640_v29  ;;  %v1835_v33 = vsel %vm66_vm0, %v1801_v1, 0.0 }
 0xa4f   :  { %v4651_v28 = vsub.f32 %v4549_v37, %v1770_v52  ;;  %v1832_v19 = vsel %vm66_vm0, %v1800_v32, 0.0  ;;  %v1803_v41 = vmul.f32 %v4646_v23, %v4646_v23 }
 0xa50   :  { %1836 = vadd.xlane.f32.xlu1 %v1835_v33  ;;  %1833 = vadd.xlane.f32.xlu0 %v1832_v19 }
 0xa51   :  { %v1802_v9 = vmul.f32 %v4651_v28, %v4651_v28  ;;  %v1841_v48 = vsel %vm66_vm0, %v1803_v41, 0.0 }
 0xa53   :  { %v1838_v17 = vsel %vm66_vm0, %v1802_v9, 0.0 }
 0xa54   :  { %1842 = vadd.xlane.f32.xlu1 %v1841_v48  ;;  %1839 = vadd.xlane.f32.xlu0 %v1838_v17 }
 0xa6f   :  { %v1750_v26 = vpop.xlane.xlu0 %1749 }
 0xa70   :  { %v1772_v16 = vmul.f32 0.03125, %v1750_v26 }
 0xa71   :  { %v1753_v39 = vpop.xlane.xlu1 %1752 }
 0xa72   :  { %v4668_v6 = vsub.f32 %v4563_v27, %v1772_v16  ;;  %v1773_v55 = vmul.f32 0.03125, %v1753_v39  ;;  %v4694_v16 = vld [vmem:[%s5264_s8] ss:$0 sm:$0xff] }
 0xa73   :  { %v1756_v47 = vpop.xlane.xlu0 %1755 }
 0xa74   :  { %v4671_v51 = vsub.f32 %v4574_v63, %v1773_v55  ;;  %v1774_v49 = vmul.f32 0.03125, %v1756_v47  ;;  %v1804_v57 = vmul.f32 %v4668_v6, %v4668_v6 }
 0xa75   :  { %v1759_v3 = vpop.xlane.xlu1 %1758 }
 0xa76   :  { %v4676_v4 = vsub.f32 %v4569_v54, %v1774_v49  ;;  %v1775_v22 = vmul.f32 0.03125, %v1759_v3  ;;  %v1844_v42 = vsel %vm66_vm0, %v1804_v57, 0.0  ;;  %v1805_v0 = vmul.f32 %v4671_v51, %v4671_v51 }
 0xa77   :  { %1845 = vadd.xlane.f32.xlu0 %v1844_v42 }
 0xa78   :  { %v4682_v24 = vsub.f32 %v4581_v50, %v1775_v22  ;;  %v1847_v5 = vsel %vm66_vm0, %v1805_v0, 0.0  ;;  %v1806_v62 = vmul.f32 %v4676_v4, %v4676_v4 }
 0xa79   :  { %1848 = vadd.xlane.f32.xlu1 %v1847_v5 }
 0xa7a   :  { %v1850_v7 = vsel %vm66_vm0, %v1806_v62, 0.0  ;;  %v1807_v58 = vmul.f32 %v4682_v24, %v4682_v24 }
 0xa7b   :  { %1851 = vadd.xlane.f32.xlu0 %v1850_v7 }
 0xa7c   :  { %v1853_v36 = vsel %vm66_vm0, %v1807_v58, 0.0 }
 0xa7d   :  { %1854 = vadd.xlane.f32.xlu1 %v1853_v36  ;;  %v4702_v36 = vld [vmem:[%s5265_s9] ss:$0 sm:$0xff] }
 0xac9   :  { %v1810_v12 = vpop.xlane.xlu0 %1809 }
 0xaca   :  { %v1856_v44 = vmul.f32 0.03125, %v1810_v12 }
 0xacb   :  { %v1813_v30 = vpop.xlane.xlu1 %1812 }
 0xacc   :  { %v1872_v56 = vadd.f32 1e-05, %v1856_v44  ;;  %v1857_v1 = vmul.f32 0.03125, %v1813_v30 }
 0xacd   :  { %v1816_v8 = vpop.xlane.xlu0 %1815 }
 0xace   :  { %3421 = vrsqrt.f32 %v1872_v56  ;;  %v1873_v52 = vadd.f32 1e-05, %v1857_v1  ;;  %v1858_v32 = vmul.f32 0.03125, %v1816_v8 }
 0xad0   :  { %3423 = vrsqrt.f32 %v1873_v52  ;;  %v1874_v33 = vadd.f32 1e-05, %v1858_v32 }
 0xad1   :  { %v1819_v19 = vpop.xlane.xlu1 %1818 }
 0xad2   :  { %3425 = vrsqrt.f32 %v1874_v33  ;;  %v1859_v41 = vmul.f32 0.03125, %v1819_v19 }
 0xad4   :  { %v1875_v9 = vadd.f32 1e-05, %v1859_v41 }
 0xad5   :  { %v1825_v48 = vpop.xlane.xlu1 %1824  ;;  %v1822_v17 = vpop.xlane.xlu0 %1821 }
 0xad6   :  { %3427 = vrsqrt.f32 %v1875_v9  ;;  %v1861_v11 = vmul.f32 0.03125, %v1825_v48  ;;  %v1860_v2 = vmul.f32 0.03125, %v1822_v17 }
 0xad8   :  { %v3422_v26 = vpop.eup %3421  ;;  %v1877_v39 = vadd.f32 1e-05, %v1861_v11  ;;  %v1876_v55 = vadd.f32 1e-05, %v1860_v2 }
 0xad9   :  { %v1904_v47 = vmul.f32 %v3422_v26, %v4590_v60  ;;  %v1831_v49 = vpop.xlane.xlu1 %1830  ;;  %v1828_v57 = vpop.xlane.xlu0 %1827 }
 0xada   :  { %v3424_v3 = vpop.eup %3423  ;;  %3429 = vrsqrt.f32 %v1877_v39  ;;  %v1863_v22 = vmul.f32 0.03125, %v1831_v49  ;;  %v1862_v42 = vmul.f32 0.03125, %v1828_v57 }
 0xadb   :  { %v1905_v0 = vmul.f32 %v3424_v3, %v4593_v43  ;;  %3431 = vrsqrt.f32 %v1876_v55  ;;  %v1926_v5 = vmul.f32 %v4694_v16, %v1904_v47 }
 0xadc   :  { %v3426_v62 = vpop.eup %3425  ;;  %v1879_v7 = vadd.f32 1e-05, %v1863_v22  ;;  %v1878_v58 = vadd.f32 1e-05, %v1862_v42 }
 0xadd   :  { %v1906_v60 = vmul.f32 %v3426_v62, %v4598_v34  ;;  %v1837_v12 = vpop.xlane.xlu1 %1836  ;;  %v1834_v44 = vpop.xlane.xlu0 %1833  ;;  %v1927_v30 = vmul.f32 %v4694_v16, %v1905_v0  ;;  %v1948_v1 = vadd.f32 %v4702_v36, %v1926_v5 }
 0xade   :  { %3433 = vrsqrt.f32 %v1879_v7  ;;  %v1865_v56 = vmul.f32 0.03125, %v1837_v12  ;;  %v1864_v43 = vmul.f32 0.03125, %v1834_v44 }
 0xadf   :  { %3435 = vrsqrt.f32 %v1878_v58  ;;  %v1949_v8 = vadd.f32 %v4702_v36, %v1927_v30  ;;  %v1928_v19 = vmul.f32 %v4694_v16, %v1906_v60 }
 0xae0   :  { %v3428_v52 = vpop.eup %3427  ;;  %v1881_v32 = vadd.f32 1e-05, %v1865_v56  ;;  %v1880_v33 = vadd.f32 1e-05, %v1864_v43 }
 0xae1   :  { %v1907_v41 = vmul.f32 %v3428_v52, %v4607_v21  ;;  %v1843_v34 = vpop.xlane.xlu1 %1842  ;;  %v1840_v9 = vpop.xlane.xlu0 %1839  ;;  %v1964_v48 = vpack.c.bf16 %v1949_v8, %v1948_v1  ;;  %v1950_v57 = vadd.f32 %v4702_v36, %v1928_v19 }
 0xae2   :  { %3437 = vrsqrt.f32 %v1881_v32  ;;  %v1867_v17 = vmul.f32 0.03125, %v1843_v34  ;;  %v1866_v11 = vmul.f32 0.03125, %v1840_v9 }
 0xae3   :  { %v1929_v2 = vmul.f32 %v4694_v16, %v1907_v41  ;;  %3439 = vrsqrt.f32 %v1880_v33  ;;  %3120 = vmatprep.mubr.msk.bf16.mxu0 %vm66_vm0, %v1964_v48 }
 0xae4   :  { %v3430_v26 = vpop.eup %3429  ;;  %v1883_v39 = vadd.f32 1e-05, %v1867_v17  ;;  %v1882_v55 = vadd.f32 1e-05, %v1866_v11 }
 0xae5   :  { %v3432_v47 = vpop.eup %3431  ;;  %v1909_v49 = vmul.f32 %v3430_v26, %v4611_v13  ;;  %v1951_v21 = vadd.f32 %v4702_v36, %v1929_v2 }
 0xae6   :  { %v1908_v3 = vmul.f32 %v3432_v47, %v4616_v61  ;;  %3441 = vrsqrt.f32 %v1883_v39 }
 0xae7   :  { %3443 = vrsqrt.f32 %v1882_v55  ;;  %v1965_v22 = vpack.c.bf16 %v1951_v21, %v1950_v57  ;;  %v1931_v42 = vmul.f32 %v4694_v16, %v1909_v49 }
 0xae8   :  { %v3434_v0 = vpop.eup %3433  ;;  %v1930_v5 = vmul.f32 %v4694_v16, %v1908_v3 }
 0xae9   :  { %v3436_v62 = vpop.eup %3435  ;;  %v1911_v7 = vmul.f32 %v3434_v0, %v4622_v45  ;;  %3121 = vmatmul.mubr.msk.bf16.vlgmr.msra.gmra.mrb[52].mxu0 %vm66_vm0, %v1965_v22  ;;  %v1953_v13 = vadd.f32 %v4702_v36, %v1931_v42 }
 0xaea   :  { %v1910_v58 = vmul.f32 %v3436_v62, %v4628_v25  ;;  %v1952_v60 = vadd.f32 %v4702_v36, %v1930_v5 }
 0xaeb   :  { %v1933_v61 = vmul.f32 %v4694_v16, %v1911_v7 }
 0xaec   :  { %v3438_v12 = vpop.eup %3437  ;;  %v1966_v44 = vpack.c.bf16 %v1953_v13, %v1952_v60  ;;  %v1932_v30 = vmul.f32 %v4694_v16, %v1910_v58 }
 0xaed   :  { %v3440_v56 = vpop.eup %3439  ;;  %v1913_v43 = vmul.f32 %v3438_v12, %v4634_v10  ;;  %v1955_v1 = vadd.f32 %v4702_v36, %v1933_v61 }
 0xaee   :  { %v1912_v45 = vmul.f32 %v3440_v56, %v4640_v29  ;;  %3124 = vmatprep.mubr.msk.bf16.mxu0 %vm66_vm0, %v1966_v44  ;;  %v1954_v8 = vadd.f32 %v4702_v36, %v1932_v30 }
 0xaef   :  { %v1935_v25 = vmul.f32 %v4694_v16, %v1913_v43 }
 0xaf0   :  { %v3442_v52 = vpop.eup %3441  ;;  %v1967_v32 = vpack.c.bf16 %v1955_v1, %v1954_v8  ;;  %v1934_v33 = vmul.f32 %v4694_v16, %v1912_v45 }
 0xaf1   :  { %v3444_v19 = vpop.eup %3443  ;;  %v1915_v41 = vmul.f32 %v3442_v52, %v4646_v23  ;;  %v1957_v34 = vadd.f32 %v4702_v36, %v1935_v25  ;;  %v3254_v25 = vld [vmem:[%s5266_s12 + $0x8] sm:$0xff]   ;;  %v3257_v52 = vld [vmem:[%s5266_s12 + $0x20] sm:$0xff]  }
 0xaf2   :  { %v1914_v10 = vmul.f32 %v3444_v19, %v4651_v28  ;;  %3125 = vmatmul.mubr.msk.bf16.gmra.mrb[56].mxu0 %vm66_vm0, %v1967_v32  ;;  %v1956_v29 = vadd.f32 %v4702_v36, %v1934_v33  ;;  %v3258_v32 = vld [vmem:[%s5266_s12 + $0x28] sm:$0xff]   ;;  %v3259_v33 = vld [vmem:[%s5266_s12 + $0x30] sm:$0xff]   ;;  %v3260_v19 = vld [vmem:[%s5266_s12 + $0x38] sm:$0xff]  }
 0xaf3   :  { %v1937_v9 = vmul.f32 %v4694_v16, %v1915_v41  ;;  %v4784_v41 = vld [vmem:[%s5267_s11] ss:$0 sm:$0xff] }
 0xaf4   :  { %v1968_v48 = vpack.c.bf16 %v1957_v34, %v1956_v29  ;;  %v1936_v17 = vmul.f32 %v4694_v16, %v1914_v10 }
 0xaf5   :  { %v1959_v11 = vadd.f32 %v4702_v36, %v1937_v9 }
 0xaf6   :  { %3128 = vmatprep.mubr.msk.bf16.mxu0 %vm66_vm0, %v1968_v48  ;;  %v1958_v2 = vadd.f32 %v4702_v36, %v1936_v17 }
 0xaf8   :  { %v1969_v23 = vpack.c.bf16 %v1959_v11, %v1958_v2 }
 0xafa   :  { %3129 = vmatmul.mubr.msk.bf16.gmra.mrb[60].mxu0 %vm66_vm0, %v1969_v23 }
 0xb04   :  { %v1846_v26 = vpop.xlane.xlu0 %1845 }
 0xb05   :  { %v1868_v28 = vmul.f32 0.03125, %v1846_v26 }
 0xb06   :  { %v1849_v39 = vpop.xlane.xlu1 %1848 }
 0xb07   :  { %v1884_v55 = vadd.f32 1e-05, %v1868_v28  ;;  %v1869_v47 = vmul.f32 0.03125, %v1849_v39 }
 0xb08   :  { %v1852_v49 = vpop.xlane.xlu0 %1851 }
 0xb09   :  { %3445 = vrsqrt.f32 %v1884_v55  ;;  %v1885_v57 = vadd.f32 1e-05, %v1869_v47  ;;  %v1870_v21 = vmul.f32 0.03125, %v1852_v49 }
 0xb0a   :  { %v1855_v3 = vpop.xlane.xlu1 %1854 }
 0xb0b   :  { %3447 = vrsqrt.f32 %v1885_v57  ;;  %v1886_v22 = vadd.f32 1e-05, %v1870_v21  ;;  %v1871_v42 = vmul.f32 0.03125, %v1855_v3 }
 0xb0d   :  { %3449 = vrsqrt.f32 %v1886_v22  ;;  %v1887_v0 = vadd.f32 1e-05, %v1871_v42 }
 0xb0f   :  { %3451 = vrsqrt.f32 %v1887_v0 }
 0xb13   :  { %v3446_v5 = vpop.eup %3445 }
 0xb14   :  { %v1916_v62 = vmul.f32 %v3446_v5, %v4668_v6 }
 0xb15   :  { %v3448_v7 = vpop.eup %3447 }
 0xb16   :  { %v1917_v13 = vmul.f32 %v3448_v7, %v4671_v51  ;;  %v1938_v58 = vmul.f32 %v4694_v16, %v1916_v62 }
 0xb17   :  { %v3450_v60 = vpop.eup %3449 }
 0xb18   :  { %v1918_v61 = vmul.f32 %v3450_v60, %v4676_v4  ;;  %v1939_v12 = vmul.f32 %v4694_v16, %v1917_v13  ;;  %v1960_v56 = vadd.f32 %v4702_v36, %v1938_v58 }
 0xb19   :  { %v3452_v44 = vpop.eup %3451 }
 0xb1a   :  { %v1919_v30 = vmul.f32 %v3452_v44, %v4682_v24  ;;  %v1961_v43 = vadd.f32 %v4702_v36, %v1939_v12  ;;  %v1940_v1 = vmul.f32 %v4694_v16, %v1918_v61  ;;  %v3253_v24 = vld [vmem:[%s5266_s12] sm:$0xff]  }
 0xb1b   :  { %3136 = vmatprep.subr.bf16.mxu1 %v3253_v24 }
 0xb1c   :  { %v1970_v6 = vpack.c.bf16 %v1961_v43, %v1960_v56  ;;  %v1941_v45 = vmul.f32 %v4694_v16, %v1919_v30  ;;  %v1962_v51 = vadd.f32 %v4702_v36, %v1940_v1  ;;  %3137 = vmatpush3.bf16.msra.mxu1 %v3253_v24  ;;  %v3255_v16 = vld [vmem:[%s5266_s12 + $0x10] sm:$0xff]  }
 0xb1d   :  { %3138 = vmatprep.subr.bf16.mxu1 %v3254_v25 }
 0xb1e   :  { %3132 = vmatprep.mubr.msk.bf16.mxu0 %vm66_vm0, %v1970_v6  ;;  %v1963_v4 = vadd.f32 %v4702_v36, %v1941_v45  ;;  %v3256_v36 = vld [vmem:[%s5266_s12 + $0x18] sm:$0xff]  }
 0xb20   :  { %v1971_v8 = vpack.c.bf16 %v1963_v4, %v1962_v51  ;;  %3139 = vmatpush3.bf16.msra.mxu1 %v3254_v25 }
 0xb21   :  { %3140 = vmatprep.subr.bf16.mxu1 %v3255_v16 }
 0xb22   :  { %3133 = vmatmul.mubr.msk.bf16.gmra.mrb[64].mxu0 %vm66_vm0, %v1971_v8 }
 0xb24   :  { %3141 = vmatpush3.bf16.msra.mxu1 %v3255_v16 }
 0xb25   :  { %3142 = vmatprep.subr.bf16.mxu1 %v3256_v36 }
 0xb28   :  { %3143 = vmatpush3.bf16.msra.mxu1 %v3256_v36 }
 0xb29   :  { %3144 = vmatprep.subr.bf16.mxu1 %v3257_v52 }
 0xb2c   :  { %3145 = vmatpush3.bf16.msra.mxu1 %v3257_v52 }
 0xb2d   :  { %3146 = vmatprep.subr.bf16.mxu1 %v3258_v32 }
 0xb30   :  { %3147 = vmatpush3.bf16.msra.mxu1 %v3258_v32 }
 0xb31   :  { %3148 = vmatprep.subr.bf16.mxu1 %v3259_v33 }
 0xb34   :  { %3149 = vmatpush3.bf16.msra.mxu1 %v3259_v33 }
 0xb35   :  { %3150 = vmatprep.subr.bf16.mxu1 %v3260_v19 }
 0xb38   :  { %3151 = vmatpush3.bf16.msra.mxu1 %v3260_v19 }
 0xbbc   :  { %v3122_v34 = vpop.f32.mrb[52].mxu0 }
 0xbbd   :  { %v2062_v10 = vadd.f32 %v3122_v34, %v4784_v41  ;;  %v2053_v29 = vpop.f32.mrb[53].mxu0 }
 0xbbe   :  { %v4788_v9 = vadd.f32 %v4784_v41, %v2053_v29  ;;  %v3123_v48 = vpop.f32.mrb[54].mxu0 }
 0xbbf   :  { %v4790_v17 = vmul.f32 0.70710677, %v2062_v10  ;;  %v4793_v11 = vadd.f32 %v3123_v48, %v4784_v41  ;;  %v2056_v2 = vpop.f32.mrb[55].mxu0 }
 0xbc0   :  { %v4796_v23 = vmul.f32 0.70710677, %v4788_v9  ;;  %v4803_v39 = vadd.f32 %v4784_v41, %v2056_v2 }
 0xbc1   :  { %v2182_v26 = vand.u32 2147483647, %v4790_v17  ;;  %v4800_v28 = vmul.f32 0.70710677, %v4793_v11  ;;  %vm2150_vm2 = vcmp.lt.f32.partialorder %v4790_v17, 0.0 }
 0xbc2   :  { %v2180_v55 = vand.u32 2147483647, %v4796_v23  ;;  %v4808_v3 = vmul.f32 0.70710677, %v4803_v39  ;;  %vm2148_vm4 = vcmp.lt.f32.partialorder %v4796_v23, 0.0 }
 0xbc3   :  { %v2198_v47 = vmul.f32 0.3275911, %v2182_v26  ;;  %v2183_v57 = vand.u32 2147483647, %v4800_v28  ;;  %v2406_v56 = vsub.f32 0.0, %v2182_v26  ;;  %vm2151_vm3 = vcmp.lt.f32.partialorder %v4800_v28, 0.0 }
 0xbc4   :  { %v2196_v49 = vmul.f32 0.3275911, %v2180_v55  ;;  %v2181_v62 = vand.u32 2147483647, %v4808_v3  ;;  %v2404_v45 = vsub.f32 0.0, %v2180_v55  ;;  %vm2149_vm5 = vcmp.lt.f32.partialorder %v4808_v3, 0.0 }
 0xbc5   :  { %v2214_v21 = vadd.f32 1.0, %v2198_v47  ;;  %v3126_v22 = vpop.f32.mrb[56].mxu0  ;;  %v2199_v0 = vmul.f32 0.3275911, %v2183_v57  ;;  %v2422_v16 = vmul.f32 %v2406_v56, %v2182_v26  ;;  %v2407_v33 = vsub.f32 0.0, %v2183_v57 }
 0xbc6   :  { %v2212_v42 = vadd.f32 1.0, %v2196_v49  ;;  %v2069_v5 = vpop.f32.mrb[57].mxu0  ;;  %v2197_v60 = vmul.f32 0.3275911, %v2181_v62  ;;  %v4812_v61 = vadd.f32 %v3126_v22, %v4784_v41  ;;  %v2420_v2 = vmul.f32 %v2404_v45, %v2180_v55 }
 0xbc7   :  { %3453 = vrcp.f32 %v2214_v21  ;;  %v3127_v7 = vpop.f32.mrb[58].mxu0  ;;  %v2215_v13 = vadd.f32 1.0, %v2199_v0  ;;  %v4815_v12 = vadd.f32 %v4784_v41, %v2069_v5  ;;  %v2405_v47 = vsub.f32 0.0, %v2181_v62 }
 0xbc8   :  { %3455 = vrcp.f32 %v2212_v42  ;;  %v2072_v58 = vpop.f32.mrb[59].mxu0  ;;  %v2213_v44 = vadd.f32 1.0, %v2197_v60  ;;  %v4818_v30 = vadd.f32 %v3127_v7, %v4784_v41  ;;  %v4821_v43 = vmul.f32 0.70710677, %v4812_v61 }
 0xbc9   :  { %3457 = vrcp.f32 %v2215_v13  ;;  %v4824_v1 = vmul.f32 0.70710677, %v4815_v12  ;;  %v4856_v42 = vadd.f32 %v4784_v41, %v2072_v58  ;;  %v4858_v0 = vmul.f32 0.5, %v2062_v10 }
 0xbca   :  { %3459 = vrcp.f32 %v2213_v44  ;;  %v4829_v51 = vand.u32 2147483647, %v4821_v43  ;;  %v4832_v4 = vmul.f32 0.70710677, %v4818_v30  ;;  %v2440_v7 = vmul.f32 1.442695, %v2422_v16 }
 0xbcb   :  { %v4837_v24 = vand.u32 2147483647, %v4824_v1  ;;  %v2423_v44 = vmul.f32 %v2407_v33, %v2183_v57  ;;  %v4870_v16 = vmul.f32 0.70710677, %v4856_v42  ;;  %vm2154_vm6 = vcmp.lt.f32.partialorder %v4821_v43, 0.0 }
 0xbcc   :  { %v2202_v36 = vmul.f32 0.3275911, %v4829_v51  ;;  %v4848_v34 = vand.u32 2147483647, %v4832_v4  ;;  %vm2152_vm7 = vcmp.lt.f32.partialorder %v4824_v1, 0.0  ;;  %vm2155_vm8 = vcmp.lt.f32.partialorder %v4832_v4, 0.0 }
 0xbcd   :  { %v4826_v6 = vpop.f32.mrb[60].mxu0  ;;  %v2200_v19 = vmul.f32 0.3275911, %v4837_v24  ;;  %vm2153_vm9 = vcmp.lt.f32.partialorder %v4870_v16, 0.0 }
 0xbce   :  { %v4834_v8 = vpop.f32.mrb[61].mxu0  ;;  %v2218_v49 = vadd.f32 1.0, %v2202_v36  ;;  %v2203_v22 = vmul.f32 0.3275911, %v4848_v34  ;;  %v2421_v36 = vmul.f32 %v2405_v47, %v2181_v62  ;;  %v2442_v62 = vmul.f32 1.442695, %v2423_v44 }
 0xbcf   :  { %v4839_v25 = vpop.f32.mrb[62].mxu0  ;;  %v2216_v21 = vadd.f32 1.0, %v2200_v19  ;;  %v2436_v19 = vmul.f32 1.442695, %v2420_v2  ;;  %v2411_v27 = vsub.f32 0.0, %v4848_v34 }
 0xbd0   :  { %v4842_v52 = vpop.f32.mrb[63].mxu0  ;;  %3461 = vrcp.f32 %v2218_v49  ;;  %v2219_v55 = vadd.f32 1.0, %v2203_v22  ;;  %v2438_v22 = vmul.f32 1.442695, %v2421_v36 }
 0xbd1   :  { %v4844_v32 = vpop.eup %3453  ;;  %3463 = vrcp.f32 %v2216_v21 }
 0xbd2   :  { %v4850_v29 = vpop.eup %3455  ;;  %v2262_v48 = vmul.f32 1.0614054, %v4844_v32  ;;  %3465 = vrcp.f32 %v2219_v55 }
 0xbd3   :  { %v2260_v26 = vmul.f32 1.0614054, %v4850_v29  ;;  %v4860_v13 = vpop.eup %3457  ;;  %3467 = vpow2.f32 %v2440_v7 }
 0xbd4   :  { %v2278_v5 = vadd.f32 -1.4531521, %v2262_v48  ;;  %v2263_v45 = vmul.f32 1.0614054, %v4860_v13  ;;  %v4865_v58 = vpop.eup %3459  ;;  %3469 = vpow2.f32 %v2436_v19 }
 0xbd5   :  { %v2276_v60 = vadd.f32 -1.4531521, %v2260_v26  ;;  %v2261_v48 = vmul.f32 1.0614054, %v4865_v58  ;;  %v4874_v26 = vmul.f32 0.5, %v4793_v11  ;;  %3471 = vpow2.f32 %v2442_v62 }
 0xbd6   :  { %v2294_v56 = vmul.f32 %v4844_v32, %v2278_v5  ;;  %v2279_v33 = vadd.f32 -1.4531521, %v2263_v45  ;;  %v5270_v5 = vmov 1.0   ;;  %v4888_v11 = vand.u32 2147483647, %v4870_v16 }
 0xbd7   :  { %v2292_v10 = vmul.f32 %v4850_v29, %v2276_v60  ;;  %v2277_v21 = vadd.f32 -1.4531521, %v2261_v48  ;;  %v2166_v60 = vsel %vm2150_vm2, -1.0, %v5270_v5  ;;  %v4885_v7 = vsel %vm2151_vm3, -1.0, %v5270_v5 }
 0xbd8   :  { %v2310_v57 = vadd.f32 1.4214138, %v2294_v56  ;;  %v2295_v2 = vmul.f32 %v4860_v13, %v2279_v33  ;;  %v2201_v17 = vmul.f32 0.3275911, %v4888_v11  ;;  %3473 = vpow2.f32 %v2438_v22 }
 0xbd9   :  { %v2308_v49 = vadd.f32 1.4214138, %v2292_v10  ;;  %v2293_v45 = vmul.f32 %v4865_v58, %v2277_v21  ;;  %v4894_v10 = vadd.f32 %v4826_v6, %v4784_v41 }
 0xbda   :  { %v2326_v47 = vmul.f32 %v4844_v32, %v2310_v57  ;;  %v2311_v55 = vadd.f32 1.4214138, %v2295_v2  ;;  %v4896_v57 = vpop.eup %3461  ;;  %v2217_v2 = vadd.f32 1.0, %v2201_v17 }
 0xbdb   :  { %v2324_v56 = vmul.f32 %v4850_v29, %v2308_v49  ;;  %v2309_v48 = vadd.f32 1.4214138, %v2293_v45  ;;  %v4900_v19 = vpop.eup %3463  ;;  %v2266_v62 = vmul.f32 1.0614054, %v4896_v57  ;;  %v4909_v22 = vmul.f32 0.70710677, %v4894_v10 }
 0xbdc   :  { %v2342_v44 = vadd.f32 -0.28449672, %v2326_v47  ;;  %v2327_v33 = vmul.f32 %v4860_v13, %v2311_v55  ;;  %v2410_v47 = vsub.f32 0.0, %v4829_v51  ;;  %v2264_v5 = vmul.f32 1.0614054, %v4900_v19  ;;  %v4911_v45 = vpop.eup %3465 }
 0xbdd   :  { %v2340_v36 = vadd.f32 -0.28449672, %v2324_v56  ;;  %v2325_v56 = vmul.f32 %v4865_v58, %v2309_v48  ;;  %v2408_v55 = vsub.f32 0.0, %v4837_v24  ;;  %3475 = vrcp.f32 %v2217_v2 }
 0xbde   :  { %v2358_v28 = vmul.f32 %v4844_v32, %v2342_v44  ;;  %v2343_v6 = vadd.f32 -0.28449672, %v2327_v33  ;;  %v2282_v44 = vadd.f32 -1.4531521, %v2266_v62  ;;  %v3468_v33 = vpop.eup %3467  ;;  %v2267_v62 = vmul.f32 1.0614054, %v4911_v45 }
 0xbdf   :  { %v2356_v49 = vmul.f32 %v4850_v29, %v2340_v36  ;;  %v2341_v17 = vadd.f32 -0.28449672, %v2325_v56  ;;  %vm2158_vm10 = vcmp.lt.f32.partialorder %v4909_v22, 0.0 }
 0xbe0   :  { %v2374_v21 = vadd.f32 0.2548296, %v2358_v28  ;;  %v2359_v63 = vmul.f32 %v4860_v13, %v2343_v6  ;;  %v2280_v28 = vadd.f32 -1.4531521, %v2264_v5  ;;  %v2298_v48 = vmul.f32 %v4896_v57, %v2282_v44 }
 0xbe1   :  { %v2372_v50 = vadd.f32 0.2548296, %v2356_v49  ;;  %v2357_v40 = vmul.f32 %v4865_v58, %v2341_v17  ;;  %v4922_v5 = vand.u32 2147483647, %v4909_v22  ;;  %v3470_v49 = vpop.eup %3469  ;;  %v2409_v17 = vsub.f32 0.0, %v4888_v11 }
 0xbe2   :  { %v2390_v36 = vmul.f32 %v4844_v32, %v2374_v21  ;;  %v2375_v54 = vadd.f32 0.2548296, %v2359_v63  ;;  %v2296_v46 = vmul.f32 %v4900_v19, %v2280_v28  ;;  %v2314_v18 = vadd.f32 1.4214138, %v2298_v48  ;;  %v3472_v35 = vpop.eup %3471 }
 0xbe3   :  { %v2426_v32 = vmul.f32 %v2410_v47, %v4829_v51  ;;  %v2283_v21 = vadd.f32 -1.4531521, %v2267_v62  ;;  %v2373_v44 = vadd.f32 0.2548296, %v2357_v40  ;;  %v2388_v63 = vmul.f32 %v4850_v29, %v2372_v50  ;;  %v3474_v51 = vpop.eup %3473 }
 0xbe4   :  { %v2470_v2 = vmul.f32 %v3468_v33, %v2390_v36  ;;  %v2391_v56 = vmul.f32 %v4860_v13, %v2375_v54  ;;  %v2312_v37 = vadd.f32 1.4214138, %v2296_v46  ;;  %v2206_v28 = vmul.f32 0.3275911, %v4922_v5 }
 0xbe5   :  { %v2299_v36 = vmul.f32 %v4911_v45, %v2283_v21  ;;  %v2389_v48 = vmul.f32 %v4865_v58, %v2373_v44  ;;  %v2330_v54 = vmul.f32 %v4896_v57, %v2314_v18  ;;  %v2424_v62 = vmul.f32 %v2408_v55, %v4837_v24 }
 0xbe6   :  { %v2486_v6 = vsub.f32 1.0, %v2470_v2  ;;  %v2471_v33 = vmul.f32 %v3472_v35, %v2391_v56  ;;  %v2328_v40 = vmul.f32 %v4900_v19, %v2312_v37  ;;  %v2222_v50 = vadd.f32 1.0, %v2206_v28 }
 0xbe7   :  { %v2315_v46 = vadd.f32 1.4214138, %v2299_v36  ;;  %v2469_v13 = vmul.f32 %v3474_v51, %v2389_v48  ;;  %v2427_v2 = vmul.f32 %v2411_v27, %v4848_v34  ;;  %v2448_v21 = vmul.f32 1.442695, %v2426_v32 }
 0xbe8   :  { %v2502_v47 = vmul.f32 %v2486_v6, %v2166_v60  ;;  %v2487_v29 = vsub.f32 1.0, %v2471_v33  ;;  %v4936_v60 = vpop.eup %3475  ;;  %v2425_v58 = vmul.f32 %v2409_v17, %v4888_v11  ;;  %3477 = vrcp.f32 %v2222_v50 }
 0xbe9   :  { %v2331_v35 = vmul.f32 %v4911_v45, %v2315_v46  ;;  %v2468_v6 = vmul.f32 %v3470_v49, %v2388_v63  ;;  %v2346_v56 = vadd.f32 -0.28449672, %v2330_v54  ;;  %v2344_v44 = vadd.f32 -0.28449672, %v2328_v40 }
 0xbea   :  { %v2518_v18 = vadd.f32 1.0, %v2502_v47  ;;  %v2503_v37 = vmul.f32 %v2487_v29, %v4885_v7  ;;  %v2265_v28 = vmul.f32 1.0614054, %v4936_v60  ;;  %v4944_v27 = vadd.f32 %v4784_v41, %v4834_v8 }
 0xbeb   :  { %v2347_v36 = vadd.f32 -0.28449672, %v2331_v35  ;;  %v5290_v34 = vmov 1.0   ;;  %v2485_v11 = vsub.f32 1.0, %v2469_v13  ;;  %v2450_v32 = vmul.f32 1.442695, %v2427_v2 }
 0xbec   :  { %v2519_v24 = vadd.f32 1.0, %v2503_v37  ;;  %v2165_v55 = vsel %vm2149_vm5, -1.0, %v5290_v34  ;;  %3479 = vpow2.f32 %v2448_v21  ;;  %v2444_v49 = vmul.f32 1.442695, %v2424_v62 }
 0xbed   :  { %v2281_v63 = vadd.f32 -1.4531521, %v2265_v28  ;;  %v2446_v7 = vmul.f32 1.442695, %v2425_v58  ;;  %v4950_v17 = vmul.f32 %v2518_v18, %v4858_v0  ;;  %v2484_v51 = vsub.f32 1.0, %v2468_v6 }
 0xbee   :  { %v4953_v47 = vmul.f32 %v2519_v24, %v4874_v26  ;;  %v2362_v8 = vmul.f32 %v4896_v57, %v2346_v56  ;;  %v2360_v33 = vmul.f32 %v4900_v19, %v2344_v44  ;;  %v2363_v3 = vmul.f32 %v4911_v45, %v2347_v36 }
 0xbef   :  { %v2297_v48 = vmul.f32 %v4936_v60, %v2281_v63  ;;  %v4960_v54 = vmul.f32 0.70710677, %v4944_v27  ;;  %v2501_v0 = vmul.f32 %v2485_v11, %v2165_v55  ;;  %3481 = vpow2.f32 %v2450_v32 }
 0xbf0   :  { %v2549_v40 = vpack.c.bf16 %v4953_v47, %v4950_v17  ;;  %v2164_v26 = vsel %vm2148_vm4, -1.0, %v5290_v34  ;;  %3483 = vpow2.f32 %v2444_v49  ;;  %v2378_v29 = vadd.f32 0.2548296, %v2362_v8 }
 0xbf1   :  { %v2313_v46 = vadd.f32 1.4214138, %v2297_v48  ;;  %v2500_v50 = vmul.f32 %v2484_v51, %v2164_v26  ;;  %3485 = vpow2.f32 %v2446_v7  ;;  %v4968_v13 = vand.u32 2147483647, %v4960_v54 }
 0xbf2   :  { %v4970_v62 = vpop.eup %3477  ;;  %v2376_v2 = vadd.f32 0.2548296, %v2360_v33  ;;  %v2379_v21 = vadd.f32 0.2548296, %v2363_v3  ;;  %v4975_v58 = vadd.f32 %v4839_v25, %v4784_v41  ;;  %v2517_v23 = vadd.f32 1.0, %v2501_v0 }
 0xbf3   :  { %v2329_v35 = vmul.f32 %v4936_v60, %v2313_v46  ;;  %v2270_v18 = vmul.f32 1.0614054, %v4970_v62  ;;  %v2204_v6 = vmul.f32 0.3275911, %v4968_v13  ;;  %v2116_v56 = vmul.f32 0.5, %v4788_v9 }
 0xbf4   :  { %v2117_v44 = vmul.f32 0.5, %v4803_v39  ;;  %v4982_v36 = vmul.f32 0.5, %v4812_v61  ;;  %v2516_v55 = vadd.f32 1.0, %v2500_v50  ;;  %v2394_v63 = vmul.f32 %v4896_v57, %v2378_v29 }
 0xbf5   :  { %v3134_v37 = vpop.f32.mrb[64].mxu0  ;;  %v2345_v28 = vadd.f32 -0.28449672, %v2329_v35  ;;  %v2286_v25 = vadd.f32 -1.4531521, %v2270_v18  ;;  %v2220_v11 = vadd.f32 1.0, %v2204_v6  ;;  %v2395_v7 = vmul.f32 %v4911_v45, %v2379_v21 }
 0xbf6   :  { %v2101_v24 = vpop.f32.mrb[65].mxu0  ;;  %v3480_v49 = vpop.eup %3479  ;;  %v4991_v39 = vmul.f32 0.70710677, %v4975_v58  ;;  %v2533_v51 = vmul.f32 %v2517_v23, %v2117_v44  ;;  %v2392_v8 = vmul.f32 %v4900_v19, %v2376_v2  ;;  %v4998_v3 = vmul.f32 0.5, %v4815_v12 }
 0xbf7   :  { %v4985_v32 = vpop.f32.mrb[66].mxu0  ;;  %v2361_v9 = vmul.f32 %v4936_v60, %v2345_v28  ;;  %v2302_v33 = vmul.f32 %v4970_v62, %v2286_v25  ;;  %3487 = vrcp.f32 %v2220_v11  ;;  %v2414_v57 = vsub.f32 0.0, %v4922_v5 }
 0xbf8   :  { %v4993_v61 = vpop.f32.mrb[67].mxu0  ;;  %v5002_v45 = vand.u32 2147483647, %v4991_v39  ;;  %v2532_v26 = vmul.f32 %v2516_v55, %v2116_v56  ;;  %v2170_v46 = vsel %vm2154_vm6, -1.0, %v5290_v34  ;;  %v5009_v19 = vadd.f32 %v4784_v41, %v4842_v52 }
 0xbf9   :  { %v2377_v48 = vadd.f32 0.2548296, %v2361_v9  ;;  %v3482_v0 = vpop.eup %3481  ;;  %v2318_v50 = vadd.f32 1.4214138, %v2302_v33  ;;  %v2474_v12 = vmul.f32 %v3480_v49, %v2394_v63  ;;  %v2430_v44 = vmul.f32 %v2414_v57, %v4922_v5 }
 0xbfa   :  { %v3484_v29 = vpop.eup %3483  ;;  %v2475_v2 = vmul.f32 %v3482_v0, %v2395_v7  ;;  %v2207_v35 = vmul.f32 0.3275911, %v5002_v45  ;;  %v5015_v6 = vmul.f32 0.70710677, %v5009_v19  ;;  %v2548_v43 = vpack.c.bf16 %v2533_v51, %v2532_v26 }
 0xbfb   :  { %v2393_v21 = vmul.f32 %v4936_v60, %v2377_v48  ;;  %v3486_v23 = vpop.eup %3485  ;;  %v2472_v18 = vmul.f32 %v3484_v29, %v2392_v8  ;;  %v5019_v28 = vadd.f32 %v3134_v37, %v4784_v41  ;;  %v2334_v60 = vmul.f32 %v4970_v62, %v2318_v50 }
 0xbfc   :  { %v2223_v52 = vadd.f32 1.0, %v2207_v35  ;;  %v5024_v55 = vand.u32 2147483647, %v5015_v6  ;;  %3152 = vmatprep.mubr.bf16.mxu1 %v2548_v43  ;;  %v5027_v25 = vadd.f32 %v4784_v41, %v2101_v24  ;;  %v2490_v11 = vsub.f32 1.0, %v2474_v12 }
 0xbfd   :  { %v2473_v56 = vmul.f32 %v3486_v23, %v2393_v21  ;;  %v2491_v49 = vsub.f32 1.0, %v2475_v2  ;;  %3153 = vmatmul.mubr.bf16.vlgmr.msra.gmra.mrb[44].mxu1 %v2549_v40  ;;  %v2168_v4 = vsel %vm2152_vm7, -1.0, %v5290_v34  ;;  %v2488_v5 = vsub.f32 1.0, %v2472_v18 }
 0xbfe   :  { %3489 = vrcp.f32 %v2223_v52  ;;  %v2205_v63 = vmul.f32 0.3275911, %v5024_v55  ;;  %v2171_v24 = vsel %vm2155_vm8, -1.0, %v5290_v34  ;;  %v2456_v7 = vmul.f32 1.442695, %v2430_v44 }
 0xbff   :  { %v2489_v37 = vsub.f32 1.0, %v2473_v56  ;;  %v2412_v9 = vsub.f32 0.0, %v4968_v13  ;;  %v5040_v16 = vmul.f32 0.70710677, %v5019_v28  ;;  %v2169_v17 = vsel %vm2153_vm9, -1.0, %v5290_v34 }
 0xc00   :  { %v2350_v47 = vadd.f32 -0.28449672, %v2334_v60  ;;  %v2221_v40 = vadd.f32 1.0, %v2205_v63  ;;  %v5046_v1 = vmul.f32 0.70710677, %v5027_v25  ;;  %v2506_v8 = vmul.f32 %v2490_v11, %v2170_v46 }
 0xc01   :  { %v5042_v51 = vpop.eup %3487  ;;  %v2507_v33 = vmul.f32 %v2491_v49, %v2171_v24  ;;  %v5050_v57 = vand.u32 2147483647, %v5040_v16  ;;  %v2504_v0 = vmul.f32 %v2488_v5, %v2168_v4  ;;  %v2123_v26 = vmul.f32 0.5, %v4818_v30 }
 0xc02   :  { %v2268_v48 = vmul.f32 1.0614054, %v5042_v51  ;;  %v2505_v50 = vmul.f32 %v2489_v37, %v2169_v17  ;;  %3491 = vrcp.f32 %v2221_v40  ;;  %v2428_v12 = vmul.f32 %v2412_v9, %v4968_v13 }
 0xc03   :  { %v2415_v2 = vsub.f32 0.0, %v5002_v45  ;;  %v2210_v21 = vmul.f32 0.3275911, %v5050_v57  ;;  %v2121_v46 = vmul.f32 0.5, %v4856_v42  ;;  %v2366_v35 = vmul.f32 %v4970_v62, %v2350_v47 }
 0xc04   :  { %v2284_v29 = vadd.f32 -1.4531521, %v2268_v48  ;;  %3493 = vpow2.f32 %v2456_v7  ;;  %v5059_v23 = vand.u32 2147483647, %v5046_v1  ;;  %v2522_v18 = vadd.f32 1.0, %v2506_v8 }
 0xc05   :  { %v2523_v43 = vadd.f32 1.0, %v2507_v33  ;;  %v2226_v56 = vadd.f32 1.0, %v2210_v21  ;;  %v2520_v44 = vadd.f32 1.0, %v2504_v0  ;;  %v2521_v52 = vadd.f32 1.0, %v2505_v50 }
 0xc06   :  { %v2300_v30 = vmul.f32 %v5042_v51, %v2284_v29  ;;  %v2208_v13 = vmul.f32 0.3275911, %v5059_v23  ;;  %v5066_v42 = vadd.f32 %v4985_v32, %v4784_v41  ;;  %vm2156_vm11 = vcmp.lt.f32.partialorder %v4960_v54, 0.0 }
 0xc07   :  { %v2452_v49 = vmul.f32 1.442695, %v2428_v12  ;;  %v2431_v4 = vmul.f32 %v2415_v2, %v5002_v45  ;;  %3495 = vrcp.f32 %v2226_v56  ;;  %v2382_v5 = vadd.f32 0.2548296, %v2366_v35 }
 0xc08   :  { %v5068_v60 = vpop.eup %3489  ;;  %v2316_v11 = vadd.f32 1.4214138, %v2300_v30  ;;  %v2413_v63 = vsub.f32 0.0, %v5024_v55  ;;  %v2224_v24 = vadd.f32 1.0, %v2208_v13  ;;  %v2538_v7 = vmul.f32 %v2522_v18, %v4982_v36 }
 0xc09   :  { %v2271_v37 = vmul.f32 1.0614054, %v5068_v60  ;;  %v2539_v9 = vmul.f32 %v2523_v43, %v2123_v26  ;;  %v5077_v17 = vmul.f32 0.70710677, %v5066_v42  ;;  %v2537_v47 = vmul.f32 %v2521_v52, %v2121_v46 }
 0xc0a   :  { %v2332_v32 = vmul.f32 %v5042_v51, %v2316_v11  ;;  %3497 = vrcp.f32 %v2224_v24  ;;  %v5081_v45 = vadd.f32 %v4784_v41, %v4993_v61  ;;  %v2536_v8 = vmul.f32 %v2520_v44, %v4998_v3 }
 0xc0b   :  { %v2287_v40 = vadd.f32 -1.4531521, %v2271_v37  ;;  %v2458_v48 = vmul.f32 1.442695, %v2431_v4  ;;  %v5085_v0 = vand.u32 2147483647, %v5077_v17  ;;  %v2398_v26 = vmul.f32 %v4970_v62, %v2382_v5 }
 0xc0c   :  { %v2348_v33 = vadd.f32 -0.28449672, %v2332_v32  ;;  %v5087_v36 = vpop.eup %3491  ;;  %3499 = vpow2.f32 %v2452_v49  ;;  %v2429_v29 = vmul.f32 %v2413_v63, %v5024_v55  ;;  %v2418_v61 = vsub.f32 0.0, %v5050_v57 }
 0xc0d   :  { %v2303_v50 = vmul.f32 %v5068_v60, %v2287_v40  ;;  %v2269_v41 = vmul.f32 1.0614054, %v5087_v36  ;;  %v2211_v3 = vmul.f32 0.3275911, %v5085_v0  ;;  %v5097_v46 = vmul.f32 0.70710677, %v5081_v45 }
 0xc0e   :  { %v2364_v12 = vmul.f32 %v5042_v51, %v2348_v33  ;;  %v3494_v2 = vpop.eup %3493  ;;  %v2550_v35 = vpack.c.bf16 %v2537_v47, %v2536_v8  ;;  %v2551_v62 = vpack.c.bf16 %v2539_v9, %v2538_v7  ;;  %3501 = vpow2.f32 %v2458_v48 }
 0xc0f   :  { %v2319_v21 = vadd.f32 1.4214138, %v2303_v50  ;;  %v2285_v43 = vadd.f32 -1.4531521, %v2269_v41  ;;  %v2227_v30 = vadd.f32 1.0, %v2211_v3  ;;  %v2478_v55 = vmul.f32 %v3494_v2, %v2398_v26 }
 0xc10   :  { %v2380_v18 = vadd.f32 0.2548296, %v2364_v12  ;;  %v2454_v44 = vmul.f32 1.442695, %v2429_v29  ;;  %v5101_v52 = vand.u32 2147483647, %v5097_v46  ;;  %3156 = vmatprep.mubr.bf16.mxu1 %v2550_v35  ;;  %v2434_v24 = vmul.f32 %v2418_v61, %v5050_v57 }
 0xc11   :  { %v2335_v56 = vmul.f32 %v5068_v60, %v2319_v21  ;;  %v5103_v13 = vpop.eup %3495  ;;  %v5106_v11 = vmul.f32 0.5, %v4894_v10  ;;  %v2174_v49 = vsel %vm2158_vm10, -1.0, %v5290_v34  ;;  %v2301_v4 = vmul.f32 %v5087_v36, %v2285_v43  ;;  %3157 = vmatmul.mubr.bf16.gmra.mrb[48].mxu1 %v2551_v62 }
 0xc12   :  { %3503 = vrcp.f32 %v2227_v30  ;;  %v2172_v5 = vsel %vm2156_vm11, -1.0, %v5290_v34  ;;  %v2274_v63 = vmul.f32 1.0614054, %v5103_v13  ;;  %v2396_v10 = vmul.f32 %v5042_v51, %v2380_v18 }
 0xc13   :  { %v2351_v37 = vadd.f32 -0.28449672, %v2335_v56  ;;  %vm2159_vm12 = vcmp.lt.f32.partialorder %v4991_v39, 0.0  ;;  %v2317_v7 = vadd.f32 1.4214138, %v2301_v4  ;;  %v2494_v32 = vsub.f32 1.0, %v2478_v55 }
 0xc14   :  { %v2209_v22 = vmul.f32 0.3275911, %v5101_v52  ;;  %v5120_v9 = vpop.eup %3497  ;;  %3505 = vpow2.f32 %v2454_v44  ;;  %v2290_v54 = vadd.f32 -1.4531521, %v2274_v63  ;;  %v2416_v57 = vsub.f32 0.0, %v5059_v23 }
 0xc15   :  { %v2367_v47 = vmul.f32 %v5068_v60, %v2351_v37  ;;  %v2333_v40 = vmul.f32 %v5087_v36, %v2317_v7  ;;  %v2272_v8 = vmul.f32 1.0614054, %v5120_v9  ;;  %v2464_v50 = vmul.f32 1.442695, %v2434_v24 }
 0xc16   :  { %v2225_v33 = vadd.f32 1.0, %v2209_v22  ;;  %v3500_v51 = vpop.eup %3499  ;;  %v2306_v26 = vmul.f32 %v5103_v13, %v2290_v54  ;;  %v2419_v29 = vsub.f32 0.0, %v5085_v0  ;;  %v2510_v3 = vmul.f32 %v2494_v32, %v2174_v49 }
 0xc17   :  { %v2383_v48 = vadd.f32 0.2548296, %v2367_v47  ;;  %v2476_v12 = vmul.f32 %v3500_v51, %v2396_v10  ;;  %v2349_v41 = vadd.f32 -0.28449672, %v2333_v40  ;;  %v2288_v61 = vadd.f32 -1.4531521, %v2272_v8 }
 0xc18   :  { %3507 = vrcp.f32 %v2225_v33  ;;  %v2127_v2 = vmul.f32 0.5, %v4975_v58  ;;  %v2322_v35 = vadd.f32 1.4214138, %v2306_v26  ;;  %v3502_v62 = vpop.eup %3501  ;;  %v2175_v18 = vsel %vm2159_vm12, -1.0, %v5290_v34 }
 0xc19   :  { %v2399_v21 = vmul.f32 %v5068_v60, %v2383_v48  ;;  %v2365_v43 = vmul.f32 %v5087_v36, %v2349_v41  ;;  %v2304_v30 = vmul.f32 %v5120_v9, %v2288_v61  ;;  %v2432_v55 = vmul.f32 %v2416_v57, %v5059_v23 }
 0xc1a   :  { %vm2157_vm13 = vcmp.lt.f32.partialorder %v5015_v6, 0.0  ;;  %v2338_v44 = vmul.f32 %v5103_v13, %v2322_v35  ;;  %3509 = vpow2.f32 %v2464_v50  ;;  %v2492_v60 = vsub.f32 1.0, %v2476_v12 }
 0xc1b   :  { %v2479_v56 = vmul.f32 %v3502_v62, %v2399_v21  ;;  %v2381_v49 = vadd.f32 0.2548296, %v2365_v43  ;;  %v2320_v4 = vadd.f32 1.4214138, %v2304_v30  ;;  %v2435_v39 = vmul.f32 %v2419_v29, %v5085_v0 }
 0xc1c   :  { %v5138_v58 = vpop.eup %3503  ;;  %v2526_v37 = vadd.f32 1.0, %v2510_v3  ;;  %v2354_v24 = vadd.f32 -0.28449672, %v2338_v44  ;;  %v2460_v22 = vmul.f32 1.442695, %v2432_v55  ;;  %v2417_v32 = vsub.f32 0.0, %v5101_v52 }
 0xc1d   :  { %v2495_v63 = vsub.f32 1.0, %v2479_v56  ;;  %v2275_v10 = vmul.f32 1.0614054, %v5138_v58  ;;  %v2397_v23 = vmul.f32 %v5087_v36, %v2381_v49  ;;  %v2336_v7 = vmul.f32 %v5120_v9, %v2320_v4 }
 0xc1e   :  { %v3506_v47 = vpop.eup %3505  ;;  %v2173_v40 = vsel %vm2157_vm13, -1.0, %v5290_v34  ;;  %v2370_v0 = vmul.f32 %v5103_v13, %v2354_v24  ;;  %v2508_v57 = vmul.f32 %v2492_v60, %v2172_v5  ;;  %v2466_v48 = vmul.f32 1.442695, %v2435_v39 }
 0xc1f   :  { %v2511_v54 = vmul.f32 %v2495_v63, %v2175_v18  ;;  %v2291_v8 = vadd.f32 -1.4531521, %v2275_v10  ;;  %v2477_v33 = vmul.f32 %v3506_v47, %v2397_v23  ;;  %v2352_v51 = vadd.f32 -0.28449672, %v2336_v7 }
 0xc20   :  { %v2542_v36 = vmul.f32 %v2526_v37, %v5106_v11  ;;  %v2386_v50 = vadd.f32 0.2548296, %v2370_v0  ;;  %3511 = vpow2.f32 %v2460_v22  ;;  %v2433_v6 = vmul.f32 %v2417_v32, %v5101_v52 }
 0xc21   :  { %v2527_v26 = vadd.f32 1.0, %v2511_v54  ;;  %v2307_v29 = vmul.f32 %v5138_v58, %v2291_v8  ;;  %v2493_v41 = vsub.f32 1.0, %v2477_v33  ;;  %v2368_v61 = vmul.f32 %v5120_v9, %v2352_v51 }
 0xc22   :  { %v3508_v12 = vpop.eup %3507  ;;  %v2402_v21 = vmul.f32 %v5103_v13, %v2386_v50  ;;  %v2524_v62 = vadd.f32 1.0, %v2508_v57  ;;  %3513 = vpow2.f32 %v2466_v48  ;;  %v2124_v44 = vmul.f32 0.5, %v4944_v27 }
 0xc23   :  { %v2543_v3 = vmul.f32 %v2527_v26, %v2127_v2  ;;  %v2323_v5 = vadd.f32 1.4214138, %v2307_v29  ;;  %v2273_v35 = vmul.f32 1.0614054, %v3508_v12  ;;  %v2509_v18 = vmul.f32 %v2493_v41, %v2173_v40 }
 0xc24   :  { %v3510_v11 = vpop.eup %3509  ;;  %v2384_v43 = vadd.f32 0.2548296, %v2368_v61  ;;  %v2125_v60 = vmul.f32 0.5, %v5009_v19  ;;  %v2462_v52 = vmul.f32 1.442695, %v2433_v6  ;;  %v2540_v39 = vmul.f32 %v2524_v62, %v2124_v44 }
 0xc25   :  { %v2339_v30 = vmul.f32 %v5138_v58, %v2323_v5  ;;  %v2289_v55 = vadd.f32 -1.4531521, %v2273_v35  ;;  %v2553_v56 = vpack.c.bf16 %v2543_v3, %v2542_v36  ;;  %v2525_v49 = vadd.f32 1.0, %v2509_v18 }
 0xc26   :  { %v2482_v2 = vmul.f32 %v3510_v11, %v2402_v21  ;;  %v2400_v63 = vmul.f32 %v5120_v9, %v2384_v43  ;;  %3515 = vpow2.f32 %v2462_v52  ;;  %vm2162_vm14 = vcmp.lt.f32.partialorder %v5040_v16, 0.0 }
 0xc27   :  { %v2355_v4 = vadd.f32 -0.28449672, %v2339_v30  ;;  %v2305_v13 = vmul.f32 %v3508_v12, %v2289_v55  ;;  %v2541_v37 = vmul.f32 %v2525_v49, %v2125_v60  ;;  %v2178_v9 = vsel %vm2162_vm14, -1.0, %v5290_v34 }
 0xc28   :  { %v2498_v7 = vsub.f32 1.0, %v2482_v2  ;;  %vm2163_vm15 = vcmp.lt.f32.partialorder %v5077_v17, 0.0  ;;  %vm2160_vm1 = vcmp.lt.f32.partialorder %v5046_v1, 0.0  ;;  %v2130_v29 = vmul.f32 0.5, %v5019_v28 }
 0xc29   :  { %v2371_v24 = vmul.f32 %v5138_v58, %v2355_v4  ;;  %v2321_v10 = vadd.f32 1.4214138, %v2305_v13  ;;  %v2552_v23 = vpack.c.bf16 %v2541_v37, %v2540_v39  ;;  %v2179_v48 = vsel %vm2163_vm15, -1.0, %v5290_v34 }
 0xc2a   :  { %v3512_v19 = vpop.eup %3511  ;;  %v2514_v0 = vmul.f32 %v2498_v7, %v2178_v9  ;;  %v2176_v41 = vsel %vm2160_vm1, -1.0, %v5290_v34  ;;  %v2131_v61 = vmul.f32 0.5, %v5066_v42  ;;  %vm2161_vm2 = vcmp.lt.f32.partialorder %v5097_v46, 0.0  ;;  %v2829_v46 = vld [vmem:[%s5268_s13] ss:$0 sm:$0xff] }
 0xc2b   :  { %v2387_v27 = vadd.f32 0.2548296, %v2371_v24  ;;  %v2337_v22 = vmul.f32 %v3508_v12, %v2321_v10  ;;  %3160 = vmatprep.mubr.bf16.mxu1 %v2552_v23  ;;  %v2480_v32 = vmul.f32 %v3512_v19, %v2400_v63  ;;  %v2177_v35 = vsel %vm2161_vm2, -1.0, %v5290_v34 }
 0xc2c   :  { %3161 = vmatmul.mubr.bf16.gmra.mrb[52].mxu1 %v2553_v56  ;;  %v3514_v40 = vpop.eup %3513  ;;  %v2530_v36 = vadd.f32 1.0, %v2514_v0  ;;  %v2128_v11 = vmul.f32 0.5, %v5027_v25  ;;  %v2129_v28 = vmul.f32 0.5, %v5081_v45 }
 0xc2d   :  { %v2403_v47 = vmul.f32 %v5138_v58, %v2387_v27  ;;  %v2353_v54 = vadd.f32 -0.28449672, %v2337_v22  ;;  %v2496_v16 = vsub.f32 1.0, %v2480_v32  ;;  %v5291_v22 = vld [vmem:[#allocation2_spill] sm:$0xff] }
 0xc2e   :  { %v2546_v3 = vmul.f32 %v2530_v36, %v2130_v29 }
 0xc2f   :  { %v2483_v8 = vmul.f32 %v3514_v40, %v2403_v47  ;;  %v2369_v57 = vmul.f32 %v3508_v12, %v2353_v54  ;;  %v2512_v17 = vmul.f32 %v2496_v16, %v2176_v41  ;;  %v5292_v54 = vld [vmem:[#allocation6_spill] sm:$0xff] }
 0xc30   :  { %v3516_v50 = vpop.eup %3515 }
 0xc31   :  { %v2499_v33 = vsub.f32 1.0, %v2483_v8  ;;  %v2385_v51 = vadd.f32 0.2548296, %v2369_v57  ;;  %v2528_v62 = vadd.f32 1.0, %v2512_v17  ;;  %v5293_v8 = vld [vmem:[#allocation3_spill] sm:$0xff] }
 0xc33   :  { %v2515_v26 = vmul.f32 %v2499_v33, %v2179_v48  ;;  %v2401_v58 = vmul.f32 %v3508_v12, %v2385_v51  ;;  %v2544_v30 = vmul.f32 %v2528_v62, %v2128_v11  ;;  %v5294_v33 = vld [vmem:[#allocation5_spill] sm:$0xff]  ;;  %v5295_v48 = vld [vmem:[#allocation4_spill] sm:$0xff] }
 0xc35   :  { %v2531_v6 = vadd.f32 1.0, %v2515_v26  ;;  %v2481_v1 = vmul.f32 %v3516_v50, %v2401_v58 }
 0xc37   :  { %v2547_v21 = vmul.f32 %v2531_v6, %v2131_v61  ;;  %v2497_v5 = vsub.f32 1.0, %v2481_v1  ;;  %v5296_v61 = vld [vmem:[#allocation8_spill] sm:$0xff] }
 0xc39   :  { %v2513_v18 = vmul.f32 %v2497_v5, %v2177_v35  ;;  %v2555_v12 = vpack.c.bf16 %v2547_v21, %v2546_v3  ;;  %v5297_v3 = vld [vmem:[#allocation7_spill] sm:$0xff]  ;;  %v5298_v35 = vld [vmem:[#allocation10_spill] sm:$0xff] }
 0xc3b   :  { %v2529_v43 = vadd.f32 1.0, %v2513_v18  ;;  %v5299_v18 = vld [vmem:[#allocation9_spill] sm:$0xff] }
 0xc3d   :  { %v2545_v42 = vmul.f32 %v2529_v43, %v2129_v28 }
 0xc3f   :  { %v2554_v55 = vpack.c.bf16 %v2545_v42, %v2544_v30 }
 0xc41   :  { %3164 = vmatprep.mubr.bf16.mxu1 %v2554_v55 }
 0xc42   :  { %3165 = vmatmul.mubr.bf16.gmra.mrb[56].mxu1 %v2555_v12 }
 0xcd0   :  { %v3154_v56 = vpop.f32.mrb[44].mxu1 }
 0xcd1   :  { %v2670_v44 = vadd.f32 %v3154_v56, %v2829_v46  ;;  %v2661_v34 = vpop.f32.mrb[45].mxu1 }
 0xcd2   :  { %v2662_v60 = vadd.f32 %v2829_v46, %v2661_v34  ;;  %v3155_v49 = vpop.f32.mrb[46].mxu1 }
 0xcd3   :  { %v2726_v52 = vadd.f32 %v2670_v44, %v4472_v15  ;;  %v2673_v25 = vadd.f32 %v3155_v49, %v2829_v46  ;;  %v2664_v2 = vpop.f32.mrb[47].mxu1 }
 0xcd4   :  { %v2724_v45 = vadd.f32 %v2662_v60, %v4466_v59  ;;  %v2665_v4 = vadd.f32 %v2829_v46, %v2664_v2 }
 0xcd5   :  { %2742 = vst.msk [vmem:[%s5269_s14 + $0x10] sm:$0xff] %vm66_vm0, %v2726_v52  ;;  %v2727_v13 = vadd.f32 %v2673_v25, %v4487_v38 }
 0xcd6   :  { %2740 = vst.msk [vmem:[%s5269_s14] sm:$0xff] %vm66_vm0, %v2724_v45  ;;  %v2725_v39 = vadd.f32 %v2665_v4, %v4478_v31 }
 0xcd7   :  { %2743 = vst.msk [vmem:[%s5269_s14 + $0x18] sm:$0xff] %vm66_vm0, %v2727_v13 }
 0xcd8   :  { %2741 = vst.msk [vmem:[%s5269_s14 + $0x8] sm:$0xff] %vm66_vm0, %v2725_v39 }
 0xce4   :  { %v3158_v59 = vpop.f32.mrb[48].mxu1 }
 0xce5   :  { %v2686_v15 = vadd.f32 %v3158_v59, %v2829_v46  ;;  %v2677_v38 = vpop.f32.mrb[49].mxu1 }
 0xce6   :  { %v2678_v37 = vadd.f32 %v2829_v46, %v2677_v38  ;;  %v3159_v63 = vpop.f32.mrb[50].mxu1 }
 0xce7   :  { %v2730_v24 = vadd.f32 %v2686_v15, %v4517_v20  ;;  %v2689_v10 = vadd.f32 %v3159_v63, %v2829_v46  ;;  %v2680_v23 = vpop.f32.mrb[51].mxu1 }
 0xce8   :  { %v2728_v31 = vadd.f32 %v2678_v37, %v4498_v53  ;;  %v2681_v7 = vadd.f32 %v2829_v46, %v2680_v23 }
 0xce9   :  { %2746 = vst.msk [vmem:[%s5269_s14 + $0x30] sm:$0xff] %vm66_vm0, %v2730_v24  ;;  %v2731_v27 = vadd.f32 %v2689_v10, %v4510_v14 }
 0xcea   :  { %2744 = vst.msk [vmem:[%s5269_s14 + $0x20] sm:$0xff] %vm66_vm0, %v2728_v31  ;;  %v2729_v19 = vadd.f32 %v2681_v7, %v5291_v22 }
 0xceb   :  { %2747 = vst.msk [vmem:[%s5269_s14 + $0x38] sm:$0xff] %vm66_vm0, %v2731_v27 }
 0xcec   :  { %2745 = vst.msk [vmem:[%s5269_s14 + $0x28] sm:$0xff] %vm66_vm0, %v2729_v19 }
 0xcff   :  { %v3162_v53 = vpop.f32.mrb[52].mxu1 }
 0xd00   :  { %v2702_v20 = vadd.f32 %v3162_v53, %v2829_v46  ;;  %v2693_v14 = vpop.f32.mrb[53].mxu1 }
 0xd01   :  { %v2694_v32 = vadd.f32 %v2829_v46, %v2693_v14  ;;  %v3163_v47 = vpop.f32.mrb[54].mxu1 }
 0xd02   :  { %v2734_v40 = vadd.f32 %v2702_v20, %v5292_v54  ;;  %v2705_v9 = vadd.f32 %v3163_v47, %v2829_v46  ;;  %v2696_v0 = vpop.f32.mrb[55].mxu1 }
 0xd03   :  { %v2732_v57 = vadd.f32 %v2694_v32, %v5293_v8  ;;  %v2697_v16 = vadd.f32 %v2829_v46, %v2696_v0 }
 0xd04   :  { %2750 = vst.msk [vmem:[%s5269_s14 + $0x50] sm:$0xff] %vm66_vm0, %v2734_v40  ;;  %v2735_v51 = vadd.f32 %v2705_v9, %v5294_v33 }
 0xd05   :  { %2748 = vst.msk [vmem:[%s5269_s14 + $0x40] sm:$0xff] %vm66_vm0, %v2732_v57  ;;  %v2733_v36 = vadd.f32 %v2697_v16, %v5295_v48 }
 0xd06   :  { %2751 = vst.msk [vmem:[%s5269_s14 + $0x58] sm:$0xff] %vm66_vm0, %v2735_v51 }
 0xd07   :  { %2749 = vst.msk [vmem:[%s5269_s14 + $0x48] sm:$0xff] %vm66_vm0, %v2733_v36 }
 0xd15   :  { %v3166_v26 = vpop.f32.mrb[56].mxu1 }
 0xd16   :  { %v2718_v58 = vadd.f32 %v3166_v26, %v2829_v46  ;;  %v2709_v50 = vpop.f32.mrb[57].mxu1 }
 0xd17   :  { %v2710_v29 = vadd.f32 %v2829_v46, %v2709_v50  ;;  %v3167_v41 = vpop.f32.mrb[58].mxu1 }
 0xd18   :  { %v2738_v17 = vadd.f32 %v2718_v58, %v5296_v61  ;;  %v2721_v6 = vadd.f32 %v3167_v41, %v2829_v46  ;;  %v2712_v1 = vpop.f32.mrb[59].mxu1 }
 0xd19   :  { %v2736_v21 = vadd.f32 %v2710_v29, %v5297_v3  ;;  %v2713_v5 = vadd.f32 %v2829_v46, %v2712_v1 }
 0xd1a   :  { %2754 = vst.msk [vmem:[%s5269_s14 + $0x70] sm:$0xff] %vm66_vm0, %v2738_v17  ;;  %v2739_v62 = vadd.f32 %v2721_v6, %v5298_v35 }
 0xd1b   :  { %2752 = vst.msk [vmem:[%s5269_s14 + $0x60] sm:$0xff] %vm66_vm0, %v2736_v21  ;;  %v2737_v12 = vadd.f32 %v2713_v5, %v5299_v18 }
 0xd1c   :  { %2755 = vst.msk [vmem:[%s5269_s14 + $0x78] sm:$0xff] %vm66_vm0, %v2739_v62 }
 0xd1d   :  { %2753 = vst.msk [vmem:[%s5269_s14 + $0x68] sm:$0xff] %vm66_vm0, %v2737_v12 }

</bundles_post_ra>
